<compile_context>
chip_gen: v7x
topology: tpu7x:2x2x1
jax: 0.10.0
libtpu: 0.0.40
codegen_flags: <defaults>
</compile_context>

<pallas_src>
import math

import jax
import jax.numpy as jnp
from jax import lax
from jax.experimental import pallas as pl
from jax.experimental.pallas import tpu as pltpu

# --- small, self-consistent hyperparameters ---
BATCH = 2
SEQ = 8
D_MODEL = 32
N_HEAD = 4
D_HEAD = D_MODEL // N_HEAD
N_LAYERS = 2
D_FF = 64
N_CLASSES = 5
LN_EPS = 1e-5

# Row layout of the packed (1, D)-vector table `vec_d` (shape (5 + 6*L, D)):
#   0: input_proj weight row for mz        1: input_proj weight row for intensity
#   2: input_proj bias                     3: PE frequency (repeated pairwise)
#   4: PE phase (0 / pi/2 alternating)
#   per layer l, base = 5 + 6*l:
#     +0 out_proj bias  +1 ln1 gamma  +2 ln1 beta  +3 ffn2 bias  +4 ln2 gamma  +5 ln2 beta
_VEC_ROWS = 5 + 6 * N_LAYERS


def _layernorm(x, gamma, beta):
    mu = jnp.mean(x, axis=-1, keepdims=True)
    var = jnp.mean((x - mu) ** 2, axis=-1, keepdims=True)
    return (x - mu) * lax.rsqrt(var + LN_EPS) * gamma + beta


# ---------------------------------------------------------------------------
# Single fused kernel: embed + positional enc + N_LAYERS encoder + classifier
# ---------------------------------------------------------------------------
def fused_maldi_kernel(mz_ref, inten_ref, vec_ref,
                       wqkv_ref, bqkv_ref, wo_ref,
                       w1_ref, b1_ref, w2_ref,
                       wcls_ref, bcls_ref,
                       o_ref):
    mz = mz_ref[...]            # (B, S)
    inten = inten_ref[...]      # (B, S)
    B, S = mz.shape
    D = D_MODEL
    BS = B * S
    LH = N_LAYERS * N_HEAD
    scale = 1.0 / math.sqrt(D_HEAD)

    w_mz = vec_ref[0:1, :]      # (1, D)
    w_int = vec_ref[1:2, :]
    b_in = vec_ref[2:3, :]
    div = vec_ref[3:4, :]
    phase = vec_ref[4:5, :]

    # ---- input_proj (Linear(2, D)) as two rank-1 broadcasts ----
    proj = (mz[..., None] * w_mz
            + inten[..., None] * w_int
            + b_in)                                            # (B, S, D)

    # ---- positional encoding: pos / max(pos), single sin with per-lane phase ----
    max_mz = jnp.max(mz, keepdims=True)                        # (1, 1), in-kernel
    pos_norm = mz / max_mz                                     # (B, S)
    pe = jnp.sin(pos_norm[..., None] * div + phase)            # (B, S, D)

    # TODO(synk): nn.Dropout is identity at inference; not implemented.
    x = (proj + pe).reshape(BS, D)                             # (B*S, D)

    # ---- post-norm transformer encoder layers (static Python loop) ----
    for l in range(N_LAYERS):
        base = 5 + 6 * l
        bo = vec_ref[base + 0:base + 1, :]
        g1 = vec_ref[base + 1:base + 2, :]
        be1 = vec_ref[base + 2:base + 3, :]
        b2 = vec_ref[base + 3:base + 4, :]
        g2 = vec_ref[base + 4:base + 5, :]
        be2 = vec_ref[base + 5:base + 6, :]

        attn = jnp.zeros((BS, D), jnp.float32)
        for h in range(N_HEAD):
            li = l * N_HEAD + h                 # static index -> free ref view
            qh = jnp.dot(x, wqkv_ref[li],
                         preferred_element_type=jnp.float32) + bqkv_ref[li]
            kh = jnp.dot(x, wqkv_ref[LH + li],
                         preferred_element_type=jnp.float32) + bqkv_ref[LH + li]
            vh = jnp.dot(x, wqkv_ref[2 * LH + li],
                         preferred_element_type=jnp.float32) + bqkv_ref[2 * LH + li]
            q3 = qh.reshape(B, S, D_HEAD)
            k3 = kh.reshape(B, S, D_HEAD)
            v3 = vh.reshape(B, S, D_HEAD)

            s = jnp.einsum('bqd,bkd->bqk', q3, k3,
                           preferred_element_type=jnp.float32) * scale
            s = s - jnp.max(s, axis=-1, keepdims=True)
            p = jnp.exp(s)
            p = p * pl.reciprocal(jnp.sum(p, axis=-1, keepdims=True), approx=True)
            ctx = jnp.einsum('bqk,bkd->bqd', p, v3,
                             preferred_element_type=jnp.float32)        # (B, S, DH)

            # per-head slice of out_proj, accumulated (no concat, no lane slicing)
            attn = attn + jnp.dot(ctx.reshape(BS, D_HEAD), wo_ref[li],
                                  preferred_element_type=jnp.float32)
        attn = attn + bo

        # residual + LayerNorm1
        y = _layernorm(x + attn, g1, be1)

        # FFN (relu) + residual + LayerNorm2
        h1 = jnp.maximum(
            jnp.dot(y, w1_ref[l], preferred_element_type=jnp.float32) + b1_ref[l],
            0.0)
        h2 = jnp.dot(h1, w2_ref[l], preferred_element_type=jnp.float32) + b2
        x = _layernorm(y + h2, g2, be2)

    # ---- mean over sequence + classifier head ----
    pooled = x.reshape(B, S, D).sum(axis=1) * (1.0 / S)        # (B, D)
    o_ref[...] = jnp.dot(pooled, wcls_ref[...],
                         preferred_element_type=jnp.float32) + bcls_ref[...]


def maldi_transformer_forward(mz, intensity, params):
    B, S = mz.shape
    C = params["w_cls"].shape[1]
    args = (
        mz, intensity,
        params["vec_d"],
        params["w_qkv"], params["b_qkv"], params["w_o"],
        params["w_ff1"], params["b_ff1"], params["w_ff2"],
        params["w_cls"], params["b_cls"],
    )
    vmem = pl.BlockSpec(memory_space=pltpu.MemorySpace.VMEM)
    return pl.pallas_call(
        fused_maldi_kernel,
        out_shape=jax.ShapeDtypeStruct((B, C), jnp.float32),
        in_specs=[vmem] * len(args),
        out_specs=vmem,
    )(*args)


# ---------------------------------------------------------------------------
# parameter init (deterministic, synthetic) -- packed layout
# ---------------------------------------------------------------------------
def init_params(key):
    def nrm(k, shape, scale=0.02):
        return (scale * jax.random.normal(k, shape)).astype(jnp.float32)

    D, F, H, L, DH, C = D_MODEL, D_FF, N_HEAD, N_LAYERS, D_HEAD, N_CLASSES
    LH = L * H
    keys = jax.random.split(key, 5 + L)

    w_mz = nrm(keys[0], (1, D))        # input_proj weight row for mz
    w_int = nrm(keys[1], (1, D))       # input_proj weight row for intensity
    b_in = nrm(keys[2], (1, D))
    w_cls = nrm(keys[3], (D, C))
    b_cls = nrm(keys[4], (1, C))

    # div_full[2i] = div_full[2i+1] = exp(2i * -ln(10000)/D); phase gives sin on
    # even lanes, cos (= sin + pi/2) on odd lanes.
    div = jnp.exp(jnp.arange(0, D, 2, dtype=jnp.float32) * (-math.log(10000.0) / D))
    div_full = jnp.repeat(div, 2)[None, :]                                   # (1, D)
    phase = jnp.where(jnp.arange(D) % 2 == 0, 0.0,
                      math.pi / 2.0).astype(jnp.float32)[None, :]            # (1, D)

    # Attention weights stored head-major ("math" layout):
    #   q_h = x @ w_qkv[l*H+h] + b_qkv[l*H+h]    (K/V at offsets LH and 2*LH)
    # To load real nn.MultiheadAttention weights:
    #   w_qkv[l*H+h]        = in_proj_weight[h*DH:(h+1)*DH, :].T
    #   w_qkv[LH + l*H+h]   = in_proj_weight[D + h*DH:D+(h+1)*DH, :].T
    #   w_o[l*H+h]          = out_proj.weight[:, h*DH:(h+1)*DH].T
    wq, wk, wv, bq, bk, bv, wo = [], [], [], [], [], [], []
    w1, b1, w2 = [], [], []
    layer_vecs = []
    for l in range(L):
        lk = jax.random.split(keys[5 + l], 10)
        wq.append(nrm(lk[0], (H, D, DH)))
        wk.append(nrm(lk[1], (H, D, DH)))
        wv.append(nrm(lk[2], (H, D, DH)))
        bq.append(nrm(lk[3], (H, 1, DH)))
        bk.append(nrm(lk[4], (H, 1, DH)))
        bv.append(nrm(lk[5], (H, 1, DH)))
        wo.append(nrm(lk[6], (H, DH, D)))
        w1.append(nrm(lk[7], (D, F)))
        b1.append(nrm(lk[8], (1, F)))
        w2.append(nrm(lk[9], (F, D)))
        layer_vecs += [
            jnp.zeros((1, D), jnp.float32),   # out_proj bias
            jnp.ones((1, D), jnp.float32),    # ln1 gamma
            jnp.zeros((1, D), jnp.float32),   # ln1 beta
            jnp.zeros((1, D), jnp.float32),   # ffn2 bias
            jnp.ones((1, D), jnp.float32),    # ln2 gamma
            jnp.zeros((1, D), jnp.float32),   # ln2 beta
        ]

    vec_d = jnp.concatenate([w_mz, w_int, b_in, div_full, phase] + layer_vecs,
                            axis=0)                                          # (17, D)
    assert vec_d.shape == (_VEC_ROWS, D)

    params = {
        "vec_d": vec_d,
        "w_qkv": jnp.concatenate([jnp.stack(wq).reshape(LH, D, DH),
                                  jnp.stack(wk).reshape(LH, D, DH),
                                  jnp.stack(wv).reshape(LH, D, DH)], axis=0),
        "b_qkv": jnp.concatenate([jnp.stack(bq).reshape(LH, 1, DH),
                                  jnp.stack(bk).reshape(LH, 1, DH),
                                  jnp.stack(bv).reshape(LH, 1, DH)], axis=0),
        "w_o": jnp.stack(wo).reshape(LH, DH, D),
        "w_ff1": jnp.stack(w1),
        "b_ff1": jnp.stack(b1),
        "w_ff2": jnp.stack(w2),
        "w_cls": w_cls,
        "b_cls": b_cls,
    }
    return params


if __name__ == "__main__":
    key = jax.random.PRNGKey(0)
    k_mz, k_int, k_par = jax.random.split(key, 3)

    mz = jax.random.uniform(k_mz, (BATCH, SEQ), jnp.float32, 100.0, 2000.0)
    intensity = jax.random.uniform(k_int, (BATCH, SEQ), jnp.float32, 0.0, 1.0)
    params = init_params(k_par)

    fwd = jax.jit(maldi_transformer_forward)
    logits = jax.block_until_ready(fwd(mz, intensity, params))

    assert logits.shape == (BATCH, N_CLASSES)
    assert bool(jnp.all(jnp.isfinite(logits)))
    print("KERNEL_OK")
</pallas_src>

<mosaic_0001>
module attributes {stable_mosaic.version = 11 : i64} {
  func.func @fused_maldi_kernel(%arg0: memref<2x8xf32, #tpu.memory_space<vmem>>, %arg1: memref<2x8xf32, #tpu.memory_space<vmem>>, %arg2: memref<17x32xf32, #tpu.memory_space<vmem>>, %arg3: memref<24x32x8xf32, #tpu.memory_space<vmem>>, %arg4: memref<24x1x8xf32, #tpu.memory_space<vmem>>, %arg5: memref<8x8x32xf32, #tpu.memory_space<vmem>>, %arg6: memref<2x32x64xf32, #tpu.memory_space<vmem>>, %arg7: memref<2x1x64xf32, #tpu.memory_space<vmem>>, %arg8: memref<2x64x32xf32, #tpu.memory_space<vmem>>, %arg9: memref<32x5xf32, #tpu.memory_space<vmem>>, %arg10: memref<1x5xf32, #tpu.memory_space<vmem>>, %arg11: memref<2x5xf32, #tpu.memory_space<vmem>>) attributes {dimension_semantics = [], scalar_prefetch = 0 : i64, scratch_operands = 0 : i64, tpu.core_type = #tpu.core_type<tc>} {
    %c0 = arith.constant 0 : index
    %c0_0 = arith.constant 0 : index
    %0 = vector.load %arg0[%c0, %c0_0] : memref<2x8xf32, #tpu.memory_space<vmem>>, vector<2x8xf32>
    %c0_1 = arith.constant 0 : index
    %c0_2 = arith.constant 0 : index
    %1 = vector.load %arg1[%c0_1, %c0_2] : memref<2x8xf32, #tpu.memory_space<vmem>>, vector<2x8xf32>
    %c0_3 = arith.constant 0 : index
    %c0_4 = arith.constant 0 : index
    %2 = vector.load %arg2[%c0_3, %c0_4] : memref<17x32xf32, #tpu.memory_space<vmem>>, vector<1x32xf32>
    %c1 = arith.constant 1 : index
    %c0_5 = arith.constant 0 : index
    %3 = vector.load %arg2[%c1, %c0_5] : memref<17x32xf32, #tpu.memory_space<vmem>>, vector<1x32xf32>
    %c2 = arith.constant 2 : index
    %c0_6 = arith.constant 0 : index
    %4 = vector.load %arg2[%c2, %c0_6] : memref<17x32xf32, #tpu.memory_space<vmem>>, vector<1x32xf32>
    %c3 = arith.constant 3 : index
    %c0_7 = arith.constant 0 : index
    %5 = vector.load %arg2[%c3, %c0_7] : memref<17x32xf32, #tpu.memory_space<vmem>>, vector<1x32xf32>
    %c4 = arith.constant 4 : index
    %c0_8 = arith.constant 0 : index
    %6 = vector.load %arg2[%c4, %c0_8] : memref<17x32xf32, #tpu.memory_space<vmem>>, vector<1x32xf32>
    %7 = vector.shape_cast %0 : vector<2x8xf32> to vector<2x8x1xf32>
    %8 = vector.shape_cast %2 : vector<1x32xf32> to vector<1x1x32xf32>
    %9 = vector.broadcast %7 : vector<2x8x1xf32> to vector<2x8x32xf32>
    %10 = vector.broadcast %8 : vector<1x1x32xf32> to vector<2x8x32xf32>
    %11 = arith.mulf %9, %10 : vector<2x8x32xf32>
    %12 = vector.shape_cast %1 : vector<2x8xf32> to vector<2x8x1xf32>
    %13 = vector.shape_cast %3 : vector<1x32xf32> to vector<1x1x32xf32>
    %14 = vector.broadcast %12 : vector<2x8x1xf32> to vector<2x8x32xf32>
    %15 = vector.broadcast %13 : vector<1x1x32xf32> to vector<2x8x32xf32>
    %16 = arith.mulf %14, %15 : vector<2x8x32xf32>
    %17 = arith.addf %11, %16 : vector<2x8x32xf32>
    %18 = vector.shape_cast %4 : vector<1x32xf32> to vector<1x1x32xf32>
    %19 = vector.broadcast %18 : vector<1x1x32xf32> to vector<2x8x32xf32>
    %20 = arith.addf %17, %19 : vector<2x8x32xf32>
    %21 = vector.shape_cast %0 : vector<2x8xf32> to vector<1x2x8xf32>
    %cst = arith.constant dense<0xFF800000> : vector<1xf32>
    %22 = vector.multi_reduction <maximumf>, %21, %cst [1, 2] : vector<1x2x8xf32> to vector<1xf32>
    %23 = vector.shape_cast %22 : vector<1xf32> to vector<1x1x1xf32>
    %24 = vector.extract %23[0, 0, 0] : f32 from vector<1x1x1xf32>
    %25 = vector.broadcast %24 : f32 to vector<1x1xf32>
    %26 = vector.broadcast %25 : vector<1x1xf32> to vector<2x8xf32>
    %27 = arith.divf %0, %26 : vector<2x8xf32>
    %28 = vector.shape_cast %27 : vector<2x8xf32> to vector<2x8x1xf32>
    %29 = vector.shape_cast %5 : vector<1x32xf32> to vector<1x1x32xf32>
    %30 = vector.broadcast %28 : vector<2x8x1xf32> to vector<2x8x32xf32>
    %31 = vector.broadcast %29 : vector<1x1x32xf32> to vector<2x8x32xf32>
    %32 = arith.mulf %30, %31 : vector<2x8x32xf32>
    %33 = vector.shape_cast %6 : vector<1x32xf32> to vector<1x1x32xf32>
    %34 = vector.broadcast %33 : vector<1x1x32xf32> to vector<2x8x32xf32>
    %35 = arith.addf %32, %34 : vector<2x8x32xf32>
    %36 = math.sin %35 : vector<2x8x32xf32>
    %37 = arith.addf %20, %36 : vector<2x8x32xf32>
    %38 = vector.shape_cast %37 : vector<2x8x32xf32> to vector<16x32xf32>
    %c5 = arith.constant 5 : index
    %c0_9 = arith.constant 0 : index
    %39 = vector.load %arg2[%c5, %c0_9] : memref<17x32xf32, #tpu.memory_space<vmem>>, vector<1x32xf32>
    %c6 = arith.constant 6 : index
    %c0_10 = arith.constant 0 : index
    %40 = vector.load %arg2[%c6, %c0_10] : memref<17x32xf32, #tpu.memory_space<vmem>>, vector<1x32xf32>
    %c7 = arith.constant 7 : index
    %c0_11 = arith.constant 0 : index
    %41 = vector.load %arg2[%c7, %c0_11] : memref<17x32xf32, #tpu.memory_space<vmem>>, vector<1x32xf32>
    %c8 = arith.constant 8 : index
    %c0_12 = arith.constant 0 : index
    %42 = vector.load %arg2[%c8, %c0_12] : memref<17x32xf32, #tpu.memory_space<vmem>>, vector<1x32xf32>
    %c9 = arith.constant 9 : index
    %c0_13 = arith.constant 0 : index
    %43 = vector.load %arg2[%c9, %c0_13] : memref<17x32xf32, #tpu.memory_space<vmem>>, vector<1x32xf32>
    %c10 = arith.constant 10 : index
    %c0_14 = arith.constant 0 : index
    %44 = vector.load %arg2[%c10, %c0_14] : memref<17x32xf32, #tpu.memory_space<vmem>>, vector<1x32xf32>
    %cst_15 = arith.constant 0.000000e+00 : f32
    %45 = vector.broadcast %cst_15 : f32 to vector<16x32xf32>
    %c0_16 = arith.constant 0 : index
    %c0_17 = arith.constant 0 : index
    %c0_18 = arith.constant 0 : index
    %46 = vector.load %arg3[%c0_16, %c0_17, %c0_18] : memref<24x32x8xf32, #tpu.memory_space<vmem>>, vector<1x32x8xf32>
    %47 = vector.shape_cast %46 : vector<1x32x8xf32> to vector<32x8xf32>
    %cst_19 = arith.constant dense<0.000000e+00> : vector<16x8xf32>
    %48 = tpu.matmul %38, %47, %cst_19 {dimension_numbers = #tpu.dot_dimension_numbers<[1], [0], [0], [1], [0, 0, 1, 1], [], []>} : vector<16x32xf32>, vector<32x8xf32>, vector<16x8xf32> -> vector<16x8xf32>
    %c0_20 = arith.constant 0 : index
    %c0_21 = arith.constant 0 : index
    %c0_22 = arith.constant 0 : index
    %49 = vector.load %arg4[%c0_20, %c0_21, %c0_22] : memref<24x1x8xf32, #tpu.memory_space<vmem>>, vector<1x1x8xf32>
    %50 = vector.shape_cast %49 : vector<1x1x8xf32> to vector<1x8xf32>
    %51 = vector.broadcast %50 : vector<1x8xf32> to vector<16x8xf32>
    %52 = arith.addf %48, %51 : vector<16x8xf32>
    %c8_23 = arith.constant 8 : index
    %c0_24 = arith.constant 0 : index
    %c0_25 = arith.constant 0 : index
    %53 = vector.load %arg3[%c8_23, %c0_24, %c0_25] : memref<24x32x8xf32, #tpu.memory_space<vmem>>, vector<1x32x8xf32>
    %54 = vector.shape_cast %53 : vector<1x32x8xf32> to vector<32x8xf32>
    %cst_26 = arith.constant dense<0.000000e+00> : vector<16x8xf32>
    %55 = tpu.matmul %38, %54, %cst_26 {dimension_numbers = #tpu.dot_dimension_numbers<[1], [0], [0], [1], [0, 0, 1, 1], [], []>} : vector<16x32xf32>, vector<32x8xf32>, vector<16x8xf32> -> vector<16x8xf32>
    %c8_27 = arith.constant 8 : index
    %c0_28 = arith.constant 0 : index
    %c0_29 = arith.constant 0 : index
    %56 = vector.load %arg4[%c8_27, %c0_28, %c0_29] : memref<24x1x8xf32, #tpu.memory_space<vmem>>, vector<1x1x8xf32>
    %57 = vector.shape_cast %56 : vector<1x1x8xf32> to vector<1x8xf32>
    %58 = vector.broadcast %57 : vector<1x8xf32> to vector<16x8xf32>
    %59 = arith.addf %55, %58 : vector<16x8xf32>
    %c16 = arith.constant 16 : index
    %c0_30 = arith.constant 0 : index
    %c0_31 = arith.constant 0 : index
    %60 = vector.load %arg3[%c16, %c0_30, %c0_31] : memref<24x32x8xf32, #tpu.memory_space<vmem>>, vector<1x32x8xf32>
    %61 = vector.shape_cast %60 : vector<1x32x8xf32> to vector<32x8xf32>
    %cst_32 = arith.constant dense<0.000000e+00> : vector<16x8xf32>
    %62 = tpu.matmul %38, %61, %cst_32 {dimension_numbers = #tpu.dot_dimension_numbers<[1], [0], [0], [1], [0, 0, 1, 1], [], []>} : vector<16x32xf32>, vector<32x8xf32>, vector<16x8xf32> -> vector<16x8xf32>
    %c16_33 = arith.constant 16 : index
    %c0_34 = arith.constant 0 : index
    %c0_35 = arith.constant 0 : index
    %63 = vector.load %arg4[%c16_33, %c0_34, %c0_35] : memref<24x1x8xf32, #tpu.memory_space<vmem>>, vector<1x1x8xf32>
    %64 = vector.shape_cast %63 : vector<1x1x8xf32> to vector<1x8xf32>
    %65 = vector.broadcast %64 : vector<1x8xf32> to vector<16x8xf32>
    %66 = arith.addf %62, %65 : vector<16x8xf32>
    %67 = vector.shape_cast %52 : vector<16x8xf32> to vector<2x8x8xf32>
    %68 = vector.shape_cast %59 : vector<16x8xf32> to vector<2x8x8xf32>
    %69 = vector.shape_cast %66 : vector<16x8xf32> to vector<2x8x8xf32>
    "tpu.trace_start"() <{level = 10 : i32, message = "bqd,bkd->bqk"}> : () -> ()
    %cst_36 = arith.constant dense<0.000000e+00> : vector<2x8x8xf32>
    %70 = tpu.matmul %67, %68, %cst_36 {dimension_numbers = #tpu.dot_dimension_numbers<[2], [2], [1], [1], [0, 0, 0, 1, 1, 1], [0], [0]>} : vector<2x8x8xf32>, vector<2x8x8xf32>, vector<2x8x8xf32> -> vector<2x8x8xf32>
    "tpu.trace_stop"() : () -> ()
    %cst_37 = arith.constant 0.353553385 : f32
    %71 = vector.broadcast %cst_37 : f32 to vector<2x8x8xf32>
    %72 = arith.mulf %70, %71 : vector<2x8x8xf32>
    %cst_38 = arith.constant dense<0xFF800000> : vector<2x8xf32>
    %73 = vector.multi_reduction <maximumf>, %72, %cst_38 [2] : vector<2x8x8xf32> to vector<2x8xf32>
    %74 = vector.shape_cast %73 : vector<2x8xf32> to vector<2x8x1xf32>
    %75 = vector.broadcast %74 : vector<2x8x1xf32> to vector<2x8x8xf32>
    %76 = arith.subf %72, %75 : vector<2x8x8xf32>
    %77 = math.exp %76 : vector<2x8x8xf32>
    %cst_39 = arith.constant dense<0.000000e+00> : vector<2x8xf32>
    %78 = vector.multi_reduction <add>, %77, %cst_39 [2] : vector<2x8x8xf32> to vector<2x8xf32>
    %79 = vector.shape_cast %78 : vector<2x8xf32> to vector<2x8x1xf32>
    %80 = tpu.reciprocal %79 {approx = true} : vector<2x8x1xf32> -> vector<2x8x1xf32>
    %81 = vector.broadcast %80 : vector<2x8x1xf32> to vector<2x8x8xf32>
    %82 = arith.mulf %77, %81 : vector<2x8x8xf32>
    "tpu.trace_start"() <{level = 10 : i32, message = "bqk,bkd->bqd"}> : () -> ()
    %cst_40 = arith.constant dense<0.000000e+00> : vector<2x8x8xf32>
    %83 = tpu.matmul %82, %69, %cst_40 {dimension_numbers = #tpu.dot_dimension_numbers<[2], [1], [1], [2], [0, 0, 0, 1, 1, 2], [0], [0]>} : vector<2x8x8xf32>, vector<2x8x8xf32>, vector<2x8x8xf32> -> vector<2x8x8xf32>
    "tpu.trace_stop"() : () -> ()
    %84 = vector.shape_cast %83 : vector<2x8x8xf32> to vector<16x8xf32>
    %c0_41 = arith.constant 0 : index
    %c0_42 = arith.constant 0 : index
    %c0_43 = arith.constant 0 : index
    %85 = vector.load %arg5[%c0_41, %c0_42, %c0_43] : memref<8x8x32xf32, #tpu.memory_space<vmem>>, vector<1x8x32xf32>
    %86 = vector.shape_cast %85 : vector<1x8x32xf32> to vector<8x32xf32>
    %cst_44 = arith.constant dense<0.000000e+00> : vector<16x32xf32>
    %87 = tpu.matmul %84, %86, %cst_44 {dimension_numbers = #tpu.dot_dimension_numbers<[1], [0], [0], [1], [0, 0, 1, 1], [], []>} : vector<16x8xf32>, vector<8x32xf32>, vector<16x32xf32> -> vector<16x32xf32>
    %88 = arith.addf %45, %87 : vector<16x32xf32>
    %c1_45 = arith.constant 1 : index
    %c0_46 = arith.constant 0 : index
    %c0_47 = arith.constant 0 : index
    %89 = vector.load %arg3[%c1_45, %c0_46, %c0_47] : memref<24x32x8xf32, #tpu.memory_space<vmem>>, vector<1x32x8xf32>
    %90 = vector.shape_cast %89 : vector<1x32x8xf32> to vector<32x8xf32>
    %cst_48 = arith.constant dense<0.000000e+00> : vector<16x8xf32>
    %91 = tpu.matmul %38, %90, %cst_48 {dimension_numbers = #tpu.dot_dimension_numbers<[1], [0], [0], [1], [0, 0, 1, 1], [], []>} : vector<16x32xf32>, vector<32x8xf32>, vector<16x8xf32> -> vector<16x8xf32>
    %c1_49 = arith.constant 1 : index
    %c0_50 = arith.constant 0 : index
    %c0_51 = arith.constant 0 : index
    %92 = vector.load %arg4[%c1_49, %c0_50, %c0_51] : memref<24x1x8xf32, #tpu.memory_space<vmem>>, vector<1x1x8xf32>
    %93 = vector.shape_cast %92 : vector<1x1x8xf32> to vector<1x8xf32>
    %94 = vector.broadcast %93 : vector<1x8xf32> to vector<16x8xf32>
    %95 = arith.addf %91, %94 : vector<16x8xf32>
    %c9_52 = arith.constant 9 : index
    %c0_53 = arith.constant 0 : index
    %c0_54 = arith.constant 0 : index
    %96 = vector.load %arg3[%c9_52, %c0_53, %c0_54] : memref<24x32x8xf32, #tpu.memory_space<vmem>>, vector<1x32x8xf32>
    %97 = vector.shape_cast %96 : vector<1x32x8xf32> to vector<32x8xf32>
    %cst_55 = arith.constant dense<0.000000e+00> : vector<16x8xf32>
    %98 = tpu.matmul %38, %97, %cst_55 {dimension_numbers = #tpu.dot_dimension_numbers<[1], [0], [0], [1], [0, 0, 1, 1], [], []>} : vector<16x32xf32>, vector<32x8xf32>, vector<16x8xf32> -> vector<16x8xf32>
    %c9_56 = arith.constant 9 : index
    %c0_57 = arith.constant 0 : index
    %c0_58 = arith.constant 0 : index
    %99 = vector.load %arg4[%c9_56, %c0_57, %c0_58] : memref<24x1x8xf32, #tpu.memory_space<vmem>>, vector<1x1x8xf32>
    %100 = vector.shape_cast %99 : vector<1x1x8xf32> to vector<1x8xf32>
    %101 = vector.broadcast %100 : vector<1x8xf32> to vector<16x8xf32>
    %102 = arith.addf %98, %101 : vector<16x8xf32>
    %c17 = arith.constant 17 : index
    %c0_59 = arith.constant 0 : index
    %c0_60 = arith.constant 0 : index
    %103 = vector.load %arg3[%c17, %c0_59, %c0_60] : memref<24x32x8xf32, #tpu.memory_space<vmem>>, vector<1x32x8xf32>
    %104 = vector.shape_cast %103 : vector<1x32x8xf32> to vector<32x8xf32>
    %cst_61 = arith.constant dense<0.000000e+00> : vector<16x8xf32>
    %105 = tpu.matmul %38, %104, %cst_61 {dimension_numbers = #tpu.dot_dimension_numbers<[1], [0], [0], [1], [0, 0, 1, 1], [], []>} : vector<16x32xf32>, vector<32x8xf32>, vector<16x8xf32> -> vector<16x8xf32>
    %c17_62 = arith.constant 17 : index
    %c0_63 = arith.constant 0 : index
    %c0_64 = arith.constant 0 : index
    %106 = vector.load %arg4[%c17_62, %c0_63, %c0_64] : memref<24x1x8xf32, #tpu.memory_space<vmem>>, vector<1x1x8xf32>
    %107 = vector.shape_cast %106 : vector<1x1x8xf32> to vector<1x8xf32>
    %108 = vector.broadcast %107 : vector<1x8xf32> to vector<16x8xf32>
    %109 = arith.addf %105, %108 : vector<16x8xf32>
    %110 = vector.shape_cast %95 : vector<16x8xf32> to vector<2x8x8xf32>
    %111 = vector.shape_cast %102 : vector<16x8xf32> to vector<2x8x8xf32>
    %112 = vector.shape_cast %109 : vector<16x8xf32> to vector<2x8x8xf32>
    "tpu.trace_start"() <{level = 10 : i32, message = "bqd,bkd->bqk"}> : () -> ()
    %cst_65 = arith.constant dense<0.000000e+00> : vector<2x8x8xf32>
    %113 = tpu.matmul %110, %111, %cst_65 {dimension_numbers = #tpu.dot_dimension_numbers<[2], [2], [1], [1], [0, 0, 0, 1, 1, 1], [0], [0]>} : vector<2x8x8xf32>, vector<2x8x8xf32>, vector<2x8x8xf32> -> vector<2x8x8xf32>
    "tpu.trace_stop"() : () -> ()
    %cst_66 = arith.constant 0.353553385 : f32
    %114 = vector.broadcast %cst_66 : f32 to vector<2x8x8xf32>
    %115 = arith.mulf %113, %114 : vector<2x8x8xf32>
    %cst_67 = arith.constant dense<0xFF800000> : vector<2x8xf32>
    %116 = vector.multi_reduction <maximumf>, %115, %cst_67 [2] : vector<2x8x8xf32> to vector<2x8xf32>
    %117 = vector.shape_cast %116 : vector<2x8xf32> to vector<2x8x1xf32>
    %118 = vector.broadcast %117 : vector<2x8x1xf32> to vector<2x8x8xf32>
    %119 = arith.subf %115, %118 : vector<2x8x8xf32>
    %120 = math.exp %119 : vector<2x8x8xf32>
    %cst_68 = arith.constant dense<0.000000e+00> : vector<2x8xf32>
    %121 = vector.multi_reduction <add>, %120, %cst_68 [2] : vector<2x8x8xf32> to vector<2x8xf32>
    %122 = vector.shape_cast %121 : vector<2x8xf32> to vector<2x8x1xf32>
    %123 = tpu.reciprocal %122 {approx = true} : vector<2x8x1xf32> -> vector<2x8x1xf32>
    %124 = vector.broadcast %123 : vector<2x8x1xf32> to vector<2x8x8xf32>
    %125 = arith.mulf %120, %124 : vector<2x8x8xf32>
    "tpu.trace_start"() <{level = 10 : i32, message = "bqk,bkd->bqd"}> : () -> ()
    %cst_69 = arith.constant dense<0.000000e+00> : vector<2x8x8xf32>
    %126 = tpu.matmul %125, %112, %cst_69 {dimension_numbers = #tpu.dot_dimension_numbers<[2], [1], [1], [2], [0, 0, 0, 1, 1, 2], [0], [0]>} : vector<2x8x8xf32>, vector<2x8x8xf32>, vector<2x8x8xf32> -> vector<2x8x8xf32>
    "tpu.trace_stop"() : () -> ()
    %127 = vector.shape_cast %126 : vector<2x8x8xf32> to vector<16x8xf32>
    %c1_70 = arith.constant 1 : index
    %c0_71 = arith.constant 0 : index
    %c0_72 = arith.constant 0 : index
    %128 = vector.load %arg5[%c1_70, %c0_71, %c0_72] : memref<8x8x32xf32, #tpu.memory_space<vmem>>, vector<1x8x32xf32>
    %129 = vector.shape_cast %128 : vector<1x8x32xf32> to vector<8x32xf32>
    %cst_73 = arith.constant dense<0.000000e+00> : vector<16x32xf32>
    %130 = tpu.matmul %127, %129, %cst_73 {dimension_numbers = #tpu.dot_dimension_numbers<[1], [0], [0], [1], [0, 0, 1, 1], [], []>} : vector<16x8xf32>, vector<8x32xf32>, vector<16x32xf32> -> vector<16x32xf32>
    %131 = arith.addf %88, %130 : vector<16x32xf32>
    %c2_74 = arith.constant 2 : index
    %c0_75 = arith.constant 0 : index
    %c0_76 = arith.constant 0 : index
    %132 = vector.load %arg3[%c2_74, %c0_75, %c0_76] : memref<24x32x8xf32, #tpu.memory_space<vmem>>, vector<1x32x8xf32>
    %133 = vector.shape_cast %132 : vector<1x32x8xf32> to vector<32x8xf32>
    %cst_77 = arith.constant dense<0.000000e+00> : vector<16x8xf32>
    %134 = tpu.matmul %38, %133, %cst_77 {dimension_numbers = #tpu.dot_dimension_numbers<[1], [0], [0], [1], [0, 0, 1, 1], [], []>} : vector<16x32xf32>, vector<32x8xf32>, vector<16x8xf32> -> vector<16x8xf32>
    %c2_78 = arith.constant 2 : index
    %c0_79 = arith.constant 0 : index
    %c0_80 = arith.constant 0 : index
    %135 = vector.load %arg4[%c2_78, %c0_79, %c0_80] : memref<24x1x8xf32, #tpu.memory_space<vmem>>, vector<1x1x8xf32>
    %136 = vector.shape_cast %135 : vector<1x1x8xf32> to vector<1x8xf32>
    %137 = vector.broadcast %136 : vector<1x8xf32> to vector<16x8xf32>
    %138 = arith.addf %134, %137 : vector<16x8xf32>
    %c10_81 = arith.constant 10 : index
    %c0_82 = arith.constant 0 : index
    %c0_83 = arith.constant 0 : index
    %139 = vector.load %arg3[%c10_81, %c0_82, %c0_83] : memref<24x32x8xf32, #tpu.memory_space<vmem>>, vector<1x32x8xf32>
    %140 = vector.shape_cast %139 : vector<1x32x8xf32> to vector<32x8xf32>
    %cst_84 = arith.constant dense<0.000000e+00> : vector<16x8xf32>
    %141 = tpu.matmul %38, %140, %cst_84 {dimension_numbers = #tpu.dot_dimension_numbers<[1], [0], [0], [1], [0, 0, 1, 1], [], []>} : vector<16x32xf32>, vector<32x8xf32>, vector<16x8xf32> -> vector<16x8xf32>
    %c10_85 = arith.constant 10 : index
    %c0_86 = arith.constant 0 : index
    %c0_87 = arith.constant 0 : index
    %142 = vector.load %arg4[%c10_85, %c0_86, %c0_87] : memref<24x1x8xf32, #tpu.memory_space<vmem>>, vector<1x1x8xf32>
    %143 = vector.shape_cast %142 : vector<1x1x8xf32> to vector<1x8xf32>
    %144 = vector.broadcast %143 : vector<1x8xf32> to vector<16x8xf32>
    %145 = arith.addf %141, %144 : vector<16x8xf32>
    %c18 = arith.constant 18 : index
    %c0_88 = arith.constant 0 : index
    %c0_89 = arith.constant 0 : index
    %146 = vector.load %arg3[%c18, %c0_88, %c0_89] : memref<24x32x8xf32, #tpu.memory_space<vmem>>, vector<1x32x8xf32>
    %147 = vector.shape_cast %146 : vector<1x32x8xf32> to vector<32x8xf32>
    %cst_90 = arith.constant dense<0.000000e+00> : vector<16x8xf32>
    %148 = tpu.matmul %38, %147, %cst_90 {dimension_numbers = #tpu.dot_dimension_numbers<[1], [0], [0], [1], [0, 0, 1, 1], [], []>} : vector<16x32xf32>, vector<32x8xf32>, vector<16x8xf32> -> vector<16x8xf32>
    %c18_91 = arith.constant 18 : index
    %c0_92 = arith.constant 0 : index
    %c0_93 = arith.constant 0 : index
    %149 = vector.load %arg4[%c18_91, %c0_92, %c0_93] : memref<24x1x8xf32, #tpu.memory_space<vmem>>, vector<1x1x8xf32>
    %150 = vector.shape_cast %149 : vector<1x1x8xf32> to vector<1x8xf32>
    %151 = vector.broadcast %150 : vector<1x8xf32> to vector<16x8xf32>
    %152 = arith.addf %148, %151 : vector<16x8xf32>
    %153 = vector.shape_cast %138 : vector<16x8xf32> to vector<2x8x8xf32>
    %154 = vector.shape_cast %145 : vector<16x8xf32> to vector<2x8x8xf32>
    %155 = vector.shape_cast %152 : vector<16x8xf32> to vector<2x8x8xf32>
    "tpu.trace_start"() <{level = 10 : i32, message = "bqd,bkd->bqk"}> : () -> ()
    %cst_94 = arith.constant dense<0.000000e+00> : vector<2x8x8xf32>
    %156 = tpu.matmul %153, %154, %cst_94 {dimension_numbers = #tpu.dot_dimension_numbers<[2], [2], [1], [1], [0, 0, 0, 1, 1, 1], [0], [0]>} : vector<2x8x8xf32>, vector<2x8x8xf32>, vector<2x8x8xf32> -> vector<2x8x8xf32>
    "tpu.trace_stop"() : () -> ()
    %cst_95 = arith.constant 0.353553385 : f32
    %157 = vector.broadcast %cst_95 : f32 to vector<2x8x8xf32>
    %158 = arith.mulf %156, %157 : vector<2x8x8xf32>
    %cst_96 = arith.constant dense<0xFF800000> : vector<2x8xf32>
    %159 = vector.multi_reduction <maximumf>, %158, %cst_96 [2] : vector<2x8x8xf32> to vector<2x8xf32>
    %160 = vector.shape_cast %159 : vector<2x8xf32> to vector<2x8x1xf32>
    %161 = vector.broadcast %160 : vector<2x8x1xf32> to vector<2x8x8xf32>
    %162 = arith.subf %158, %161 : vector<2x8x8xf32>
    %163 = math.exp %162 : vector<2x8x8xf32>
    %cst_97 = arith.constant dense<0.000000e+00> : vector<2x8xf32>
    %164 = vector.multi_reduction <add>, %163, %cst_97 [2] : vector<2x8x8xf32> to vector<2x8xf32>
    %165 = vector.shape_cast %164 : vector<2x8xf32> to vector<2x8x1xf32>
    %166 = tpu.reciprocal %165 {approx = true} : vector<2x8x1xf32> -> vector<2x8x1xf32>
    %167 = vector.broadcast %166 : vector<2x8x1xf32> to vector<2x8x8xf32>
    %168 = arith.mulf %163, %167 : vector<2x8x8xf32>
    "tpu.trace_start"() <{level = 10 : i32, message = "bqk,bkd->bqd"}> : () -> ()
    %cst_98 = arith.constant dense<0.000000e+00> : vector<2x8x8xf32>
    %169 = tpu.matmul %168, %155, %cst_98 {dimension_numbers = #tpu.dot_dimension_numbers<[2], [1], [1], [2], [0, 0, 0, 1, 1, 2], [0], [0]>} : vector<2x8x8xf32>, vector<2x8x8xf32>, vector<2x8x8xf32> -> vector<2x8x8xf32>
    "tpu.trace_stop"() : () -> ()
    %170 = vector.shape_cast %169 : vector<2x8x8xf32> to vector<16x8xf32>
    %c2_99 = arith.constant 2 : index
    %c0_100 = arith.constant 0 : index
    %c0_101 = arith.constant 0 : index
    %171 = vector.load %arg5[%c2_99, %c0_100, %c0_101] : memref<8x8x32xf32, #tpu.memory_space<vmem>>, vector<1x8x32xf32>
    %172 = vector.shape_cast %171 : vector<1x8x32xf32> to vector<8x32xf32>
    %cst_102 = arith.constant dense<0.000000e+00> : vector<16x32xf32>
    %173 = tpu.matmul %170, %172, %cst_102 {dimension_numbers = #tpu.dot_dimension_numbers<[1], [0], [0], [1], [0, 0, 1, 1], [], []>} : vector<16x8xf32>, vector<8x32xf32>, vector<16x32xf32> -> vector<16x32xf32>
    %174 = arith.addf %131, %173 : vector<16x32xf32>
    %c3_103 = arith.constant 3 : index
    %c0_104 = arith.constant 0 : index
    %c0_105 = arith.constant 0 : index
    %175 = vector.load %arg3[%c3_103, %c0_104, %c0_105] : memref<24x32x8xf32, #tpu.memory_space<vmem>>, vector<1x32x8xf32>
    %176 = vector.shape_cast %175 : vector<1x32x8xf32> to vector<32x8xf32>
    %cst_106 = arith.constant dense<0.000000e+00> : vector<16x8xf32>
    %177 = tpu.matmul %38, %176, %cst_106 {dimension_numbers = #tpu.dot_dimension_numbers<[1], [0], [0], [1], [0, 0, 1, 1], [], []>} : vector<16x32xf32>, vector<32x8xf32>, vector<16x8xf32> -> vector<16x8xf32>
    %c3_107 = arith.constant 3 : index
    %c0_108 = arith.constant 0 : index
    %c0_109 = arith.constant 0 : index
    %178 = vector.load %arg4[%c3_107, %c0_108, %c0_109] : memref<24x1x8xf32, #tpu.memory_space<vmem>>, vector<1x1x8xf32>
    %179 = vector.shape_cast %178 : vector<1x1x8xf32> to vector<1x8xf32>
    %180 = vector.broadcast %179 : vector<1x8xf32> to vector<16x8xf32>
    %181 = arith.addf %177, %180 : vector<16x8xf32>
    %c11 = arith.constant 11 : index
    %c0_110 = arith.constant 0 : index
    %c0_111 = arith.constant 0 : index
    %182 = vector.load %arg3[%c11, %c0_110, %c0_111] : memref<24x32x8xf32, #tpu.memory_space<vmem>>, vector<1x32x8xf32>
    %183 = vector.shape_cast %182 : vector<1x32x8xf32> to vector<32x8xf32>
    %cst_112 = arith.constant dense<0.000000e+00> : vector<16x8xf32>
    %184 = tpu.matmul %38, %183, %cst_112 {dimension_numbers = #tpu.dot_dimension_numbers<[1], [0], [0], [1], [0, 0, 1, 1], [], []>} : vector<16x32xf32>, vector<32x8xf32>, vector<16x8xf32> -> vector<16x8xf32>
    %c11_113 = arith.constant 11 : index
    %c0_114 = arith.constant 0 : index
    %c0_115 = arith.constant 0 : index
    %185 = vector.load %arg4[%c11_113, %c0_114, %c0_115] : memref<24x1x8xf32, #tpu.memory_space<vmem>>, vector<1x1x8xf32>
    %186 = vector.shape_cast %185 : vector<1x1x8xf32> to vector<1x8xf32>
    %187 = vector.broadcast %186 : vector<1x8xf32> to vector<16x8xf32>
    %188 = arith.addf %184, %187 : vector<16x8xf32>
    %c19 = arith.constant 19 : index
    %c0_116 = arith.constant 0 : index
    %c0_117 = arith.constant 0 : index
    %189 = vector.load %arg3[%c19, %c0_116, %c0_117] : memref<24x32x8xf32, #tpu.memory_space<vmem>>, vector<1x32x8xf32>
    %190 = vector.shape_cast %189 : vector<1x32x8xf32> to vector<32x8xf32>
    %cst_118 = arith.constant dense<0.000000e+00> : vector<16x8xf32>
    %191 = tpu.matmul %38, %190, %cst_118 {dimension_numbers = #tpu.dot_dimension_numbers<[1], [0], [0], [1], [0, 0, 1, 1], [], []>} : vector<16x32xf32>, vector<32x8xf32>, vector<16x8xf32> -> vector<16x8xf32>
    %c19_119 = arith.constant 19 : index
    %c0_120 = arith.constant 0 : index
    %c0_121 = arith.constant 0 : index
    %192 = vector.load %arg4[%c19_119, %c0_120, %c0_121] : memref<24x1x8xf32, #tpu.memory_space<vmem>>, vector<1x1x8xf32>
    %193 = vector.shape_cast %192 : vector<1x1x8xf32> to vector<1x8xf32>
    %194 = vector.broadcast %193 : vector<1x8xf32> to vector<16x8xf32>
    %195 = arith.addf %191, %194 : vector<16x8xf32>
    %196 = vector.shape_cast %181 : vector<16x8xf32> to vector<2x8x8xf32>
    %197 = vector.shape_cast %188 : vector<16x8xf32> to vector<2x8x8xf32>
    %198 = vector.shape_cast %195 : vector<16x8xf32> to vector<2x8x8xf32>
    "tpu.trace_start"() <{level = 10 : i32, message = "bqd,bkd->bqk"}> : () -> ()
    %cst_122 = arith.constant dense<0.000000e+00> : vector<2x8x8xf32>
    %199 = tpu.matmul %196, %197, %cst_122 {dimension_numbers = #tpu.dot_dimension_numbers<[2], [2], [1], [1], [0, 0, 0, 1, 1, 1], [0], [0]>} : vector<2x8x8xf32>, vector<2x8x8xf32>, vector<2x8x8xf32> -> vector<2x8x8xf32>
    "tpu.trace_stop"() : () -> ()
    %cst_123 = arith.constant 0.353553385 : f32
    %200 = vector.broadcast %cst_123 : f32 to vector<2x8x8xf32>
    %201 = arith.mulf %199, %200 : vector<2x8x8xf32>
    %cst_124 = arith.constant dense<0xFF800000> : vector<2x8xf32>
    %202 = vector.multi_reduction <maximumf>, %201, %cst_124 [2] : vector<2x8x8xf32> to vector<2x8xf32>
    %203 = vector.shape_cast %202 : vector<2x8xf32> to vector<2x8x1xf32>
    %204 = vector.broadcast %203 : vector<2x8x1xf32> to vector<2x8x8xf32>
    %205 = arith.subf %201, %204 : vector<2x8x8xf32>
    %206 = math.exp %205 : vector<2x8x8xf32>
    %cst_125 = arith.constant dense<0.000000e+00> : vector<2x8xf32>
    %207 = vector.multi_reduction <add>, %206, %cst_125 [2] : vector<2x8x8xf32> to vector<2x8xf32>
    %208 = vector.shape_cast %207 : vector<2x8xf32> to vector<2x8x1xf32>
    %209 = tpu.reciprocal %208 {approx = true} : vector<2x8x1xf32> -> vector<2x8x1xf32>
    %210 = vector.broadcast %209 : vector<2x8x1xf32> to vector<2x8x8xf32>
    %211 = arith.mulf %206, %210 : vector<2x8x8xf32>
    "tpu.trace_start"() <{level = 10 : i32, message = "bqk,bkd->bqd"}> : () -> ()
    %cst_126 = arith.constant dense<0.000000e+00> : vector<2x8x8xf32>
    %212 = tpu.matmul %211, %198, %cst_126 {dimension_numbers = #tpu.dot_dimension_numbers<[2], [1], [1], [2], [0, 0, 0, 1, 1, 2], [0], [0]>} : vector<2x8x8xf32>, vector<2x8x8xf32>, vector<2x8x8xf32> -> vector<2x8x8xf32>
    "tpu.trace_stop"() : () -> ()
    %213 = vector.shape_cast %212 : vector<2x8x8xf32> to vector<16x8xf32>
    %c3_127 = arith.constant 3 : index
    %c0_128 = arith.constant 0 : index
    %c0_129 = arith.constant 0 : index
    %214 = vector.load %arg5[%c3_127, %c0_128, %c0_129] : memref<8x8x32xf32, #tpu.memory_space<vmem>>, vector<1x8x32xf32>
    %215 = vector.shape_cast %214 : vector<1x8x32xf32> to vector<8x32xf32>
    %cst_130 = arith.constant dense<0.000000e+00> : vector<16x32xf32>
    %216 = tpu.matmul %213, %215, %cst_130 {dimension_numbers = #tpu.dot_dimension_numbers<[1], [0], [0], [1], [0, 0, 1, 1], [], []>} : vector<16x8xf32>, vector<8x32xf32>, vector<16x32xf32> -> vector<16x32xf32>
    %217 = arith.addf %174, %216 : vector<16x32xf32>
    %218 = vector.broadcast %39 : vector<1x32xf32> to vector<16x32xf32>
    %219 = arith.addf %217, %218 : vector<16x32xf32>
    %220 = arith.addf %38, %219 : vector<16x32xf32>
    %cst_131 = arith.constant dense<0.000000e+00> : vector<16xf32>
    %221 = vector.multi_reduction <add>, %220, %cst_131 [1] : vector<16x32xf32> to vector<16xf32>
    %222 = vector.shape_cast %221 : vector<16xf32> to vector<16x1xf32>
    %cst_132 = arith.constant 3.200000e+01 : f32
    %223 = vector.broadcast %cst_132 : f32 to vector<16x1xf32>
    %224 = arith.divf %222, %223 : vector<16x1xf32>
    %225 = vector.broadcast %224 : vector<16x1xf32> to vector<16x32xf32>
    %226 = arith.subf %220, %225 : vector<16x32xf32>
    %227 = arith.mulf %226, %226 : vector<16x32xf32>
    %cst_133 = arith.constant dense<0.000000e+00> : vector<16xf32>
    %228 = vector.multi_reduction <add>, %227, %cst_133 [1] : vector<16x32xf32> to vector<16xf32>
    %229 = vector.shape_cast %228 : vector<16xf32> to vector<16x1xf32>
    %cst_134 = arith.constant 3.200000e+01 : f32
    %230 = vector.broadcast %cst_134 : f32 to vector<16x1xf32>
    %231 = arith.divf %229, %230 : vector<16x1xf32>
    %232 = vector.broadcast %224 : vector<16x1xf32> to vector<16x32xf32>
    %233 = arith.subf %220, %232 : vector<16x32xf32>
    %cst_135 = arith.constant 9.99999974E-6 : f32
    %234 = vector.broadcast %cst_135 : f32 to vector<16x1xf32>
    %235 = arith.addf %231, %234 : vector<16x1xf32>
    %236 = math.rsqrt %235 : vector<16x1xf32>
    %237 = vector.broadcast %236 : vector<16x1xf32> to vector<16x32xf32>
    %238 = arith.mulf %233, %237 : vector<16x32xf32>
    %239 = vector.broadcast %40 : vector<1x32xf32> to vector<16x32xf32>
    %240 = arith.mulf %238, %239 : vector<16x32xf32>
    %241 = vector.broadcast %41 : vector<1x32xf32> to vector<16x32xf32>
    %242 = arith.addf %240, %241 : vector<16x32xf32>
    %c0_136 = arith.constant 0 : index
    %c0_137 = arith.constant 0 : index
    %c0_138 = arith.constant 0 : index
    %243 = vector.load %arg6[%c0_136, %c0_137, %c0_138] : memref<2x32x64xf32, #tpu.memory_space<vmem>>, vector<1x32x64xf32>
    %244 = vector.shape_cast %243 : vector<1x32x64xf32> to vector<32x64xf32>
    %cst_139 = arith.constant dense<0.000000e+00> : vector<16x64xf32>
    %245 = tpu.matmul %242, %244, %cst_139 {dimension_numbers = #tpu.dot_dimension_numbers<[1], [0], [0], [1], [0, 0, 1, 1], [], []>} : vector<16x32xf32>, vector<32x64xf32>, vector<16x64xf32> -> vector<16x64xf32>
    %c0_140 = arith.constant 0 : index
    %c0_141 = arith.constant 0 : index
    %c0_142 = arith.constant 0 : index
    %246 = vector.load %arg7[%c0_140, %c0_141, %c0_142] : memref<2x1x64xf32, #tpu.memory_space<vmem>>, vector<1x1x64xf32>
    %247 = vector.shape_cast %246 : vector<1x1x64xf32> to vector<1x64xf32>
    %248 = vector.broadcast %247 : vector<1x64xf32> to vector<16x64xf32>
    %249 = arith.addf %245, %248 : vector<16x64xf32>
    %cst_143 = arith.constant 0.000000e+00 : f32
    %250 = vector.broadcast %cst_143 : f32 to vector<16x64xf32>
    %251 = arith.maximumf %249, %250 : vector<16x64xf32>
    %c0_144 = arith.constant 0 : index
    %c0_145 = arith.constant 0 : index
    %c0_146 = arith.constant 0 : index
    %252 = vector.load %arg8[%c0_144, %c0_145, %c0_146] : memref<2x64x32xf32, #tpu.memory_space<vmem>>, vector<1x64x32xf32>
    %253 = vector.shape_cast %252 : vector<1x64x32xf32> to vector<64x32xf32>
    %cst_147 = arith.constant dense<0.000000e+00> : vector<16x32xf32>
    %254 = tpu.matmul %251, %253, %cst_147 {dimension_numbers = #tpu.dot_dimension_numbers<[1], [0], [0], [1], [0, 0, 1, 1], [], []>} : vector<16x64xf32>, vector<64x32xf32>, vector<16x32xf32> -> vector<16x32xf32>
    %255 = vector.broadcast %42 : vector<1x32xf32> to vector<16x32xf32>
    %256 = arith.addf %254, %255 : vector<16x32xf32>
    %257 = arith.addf %242, %256 : vector<16x32xf32>
    %cst_148 = arith.constant dense<0.000000e+00> : vector<16xf32>
    %258 = vector.multi_reduction <add>, %257, %cst_148 [1] : vector<16x32xf32> to vector<16xf32>
    %259 = vector.shape_cast %258 : vector<16xf32> to vector<16x1xf32>
    %cst_149 = arith.constant 3.200000e+01 : f32
    %260 = vector.broadcast %cst_149 : f32 to vector<16x1xf32>
    %261 = arith.divf %259, %260 : vector<16x1xf32>
    %262 = vector.broadcast %261 : vector<16x1xf32> to vector<16x32xf32>
    %263 = arith.subf %257, %262 : vector<16x32xf32>
    %264 = arith.mulf %263, %263 : vector<16x32xf32>
    %cst_150 = arith.constant dense<0.000000e+00> : vector<16xf32>
    %265 = vector.multi_reduction <add>, %264, %cst_150 [1] : vector<16x32xf32> to vector<16xf32>
    %266 = vector.shape_cast %265 : vector<16xf32> to vector<16x1xf32>
    %cst_151 = arith.constant 3.200000e+01 : f32
    %267 = vector.broadcast %cst_151 : f32 to vector<16x1xf32>
    %268 = arith.divf %266, %267 : vector<16x1xf32>
    %269 = vector.broadcast %261 : vector<16x1xf32> to vector<16x32xf32>
    %270 = arith.subf %257, %269 : vector<16x32xf32>
    %cst_152 = arith.constant 9.99999974E-6 : f32
    %271 = vector.broadcast %cst_152 : f32 to vector<16x1xf32>
    %272 = arith.addf %268, %271 : vector<16x1xf32>
    %273 = math.rsqrt %272 : vector<16x1xf32>
    %274 = vector.broadcast %273 : vector<16x1xf32> to vector<16x32xf32>
    %275 = arith.mulf %270, %274 : vector<16x32xf32>
    %276 = vector.broadcast %43 : vector<1x32xf32> to vector<16x32xf32>
    %277 = arith.mulf %275, %276 : vector<16x32xf32>
    %278 = vector.broadcast %44 : vector<1x32xf32> to vector<16x32xf32>
    %279 = arith.addf %277, %278 : vector<16x32xf32>
    %c11_153 = arith.constant 11 : index
    %c0_154 = arith.constant 0 : index
    %280 = vector.load %arg2[%c11_153, %c0_154] : memref<17x32xf32, #tpu.memory_space<vmem>>, vector<1x32xf32>
    %c12 = arith.constant 12 : index
    %c0_155 = arith.constant 0 : index
    %281 = vector.load %arg2[%c12, %c0_155] : memref<17x32xf32, #tpu.memory_space<vmem>>, vector<1x32xf32>
    %c13 = arith.constant 13 : index
    %c0_156 = arith.constant 0 : index
    %282 = vector.load %arg2[%c13, %c0_156] : memref<17x32xf32, #tpu.memory_space<vmem>>, vector<1x32xf32>
    %c14 = arith.constant 14 : index
    %c0_157 = arith.constant 0 : index
    %283 = vector.load %arg2[%c14, %c0_157] : memref<17x32xf32, #tpu.memory_space<vmem>>, vector<1x32xf32>
    %c15 = arith.constant 15 : index
    %c0_158 = arith.constant 0 : index
    %284 = vector.load %arg2[%c15, %c0_158] : memref<17x32xf32, #tpu.memory_space<vmem>>, vector<1x32xf32>
    %c16_159 = arith.constant 16 : index
    %c0_160 = arith.constant 0 : index
    %285 = vector.load %arg2[%c16_159, %c0_160] : memref<17x32xf32, #tpu.memory_space<vmem>>, vector<1x32xf32>
    %cst_161 = arith.constant 0.000000e+00 : f32
    %286 = vector.broadcast %cst_161 : f32 to vector<16x32xf32>
    %c4_162 = arith.constant 4 : index
    %c0_163 = arith.constant 0 : index
    %c0_164 = arith.constant 0 : index
    %287 = vector.load %arg3[%c4_162, %c0_163, %c0_164] : memref<24x32x8xf32, #tpu.memory_space<vmem>>, vector<1x32x8xf32>
    %288 = vector.shape_cast %287 : vector<1x32x8xf32> to vector<32x8xf32>
    %cst_165 = arith.constant dense<0.000000e+00> : vector<16x8xf32>
    %289 = tpu.matmul %279, %288, %cst_165 {dimension_numbers = #tpu.dot_dimension_numbers<[1], [0], [0], [1], [0, 0, 1, 1], [], []>} : vector<16x32xf32>, vector<32x8xf32>, vector<16x8xf32> -> vector<16x8xf32>
    %c4_166 = arith.constant 4 : index
    %c0_167 = arith.constant 0 : index
    %c0_168 = arith.constant 0 : index
    %290 = vector.load %arg4[%c4_166, %c0_167, %c0_168] : memref<24x1x8xf32, #tpu.memory_space<vmem>>, vector<1x1x8xf32>
    %291 = vector.shape_cast %290 : vector<1x1x8xf32> to vector<1x8xf32>
    %292 = vector.broadcast %291 : vector<1x8xf32> to vector<16x8xf32>
    %293 = arith.addf %289, %292 : vector<16x8xf32>
    %c12_169 = arith.constant 12 : index
    %c0_170 = arith.constant 0 : index
    %c0_171 = arith.constant 0 : index
    %294 = vector.load %arg3[%c12_169, %c0_170, %c0_171] : memref<24x32x8xf32, #tpu.memory_space<vmem>>, vector<1x32x8xf32>
    %295 = vector.shape_cast %294 : vector<1x32x8xf32> to vector<32x8xf32>
    %cst_172 = arith.constant dense<0.000000e+00> : vector<16x8xf32>
    %296 = tpu.matmul %279, %295, %cst_172 {dimension_numbers = #tpu.dot_dimension_numbers<[1], [0], [0], [1], [0, 0, 1, 1], [], []>} : vector<16x32xf32>, vector<32x8xf32>, vector<16x8xf32> -> vector<16x8xf32>
    %c12_173 = arith.constant 12 : index
    %c0_174 = arith.constant 0 : index
    %c0_175 = arith.constant 0 : index
    %297 = vector.load %arg4[%c12_173, %c0_174, %c0_175] : memref<24x1x8xf32, #tpu.memory_space<vmem>>, vector<1x1x8xf32>
    %298 = vector.shape_cast %297 : vector<1x1x8xf32> to vector<1x8xf32>
    %299 = vector.broadcast %298 : vector<1x8xf32> to vector<16x8xf32>
    %300 = arith.addf %296, %299 : vector<16x8xf32>
    %c20 = arith.constant 20 : index
    %c0_176 = arith.constant 0 : index
    %c0_177 = arith.constant 0 : index
    %301 = vector.load %arg3[%c20, %c0_176, %c0_177] : memref<24x32x8xf32, #tpu.memory_space<vmem>>, vector<1x32x8xf32>
    %302 = vector.shape_cast %301 : vector<1x32x8xf32> to vector<32x8xf32>
    %cst_178 = arith.constant dense<0.000000e+00> : vector<16x8xf32>
    %303 = tpu.matmul %279, %302, %cst_178 {dimension_numbers = #tpu.dot_dimension_numbers<[1], [0], [0], [1], [0, 0, 1, 1], [], []>} : vector<16x32xf32>, vector<32x8xf32>, vector<16x8xf32> -> vector<16x8xf32>
    %c20_179 = arith.constant 20 : index
    %c0_180 = arith.constant 0 : index
    %c0_181 = arith.constant 0 : index
    %304 = vector.load %arg4[%c20_179, %c0_180, %c0_181] : memref<24x1x8xf32, #tpu.memory_space<vmem>>, vector<1x1x8xf32>
    %305 = vector.shape_cast %304 : vector<1x1x8xf32> to vector<1x8xf32>
    %306 = vector.broadcast %305 : vector<1x8xf32> to vector<16x8xf32>
    %307 = arith.addf %303, %306 : vector<16x8xf32>
    %308 = vector.shape_cast %293 : vector<16x8xf32> to vector<2x8x8xf32>
    %309 = vector.shape_cast %300 : vector<16x8xf32> to vector<2x8x8xf32>
    %310 = vector.shape_cast %307 : vector<16x8xf32> to vector<2x8x8xf32>
    "tpu.trace_start"() <{level = 10 : i32, message = "bqd,bkd->bqk"}> : () -> ()
    %cst_182 = arith.constant dense<0.000000e+00> : vector<2x8x8xf32>
    %311 = tpu.matmul %308, %309, %cst_182 {dimension_numbers = #tpu.dot_dimension_numbers<[2], [2], [1], [1], [0, 0, 0, 1, 1, 1], [0], [0]>} : vector<2x8x8xf32>, vector<2x8x8xf32>, vector<2x8x8xf32> -> vector<2x8x8xf32>
    "tpu.trace_stop"() : () -> ()
    %cst_183 = arith.constant 0.353553385 : f32
    %312 = vector.broadcast %cst_183 : f32 to vector<2x8x8xf32>
    %313 = arith.mulf %311, %312 : vector<2x8x8xf32>
    %cst_184 = arith.constant dense<0xFF800000> : vector<2x8xf32>
    %314 = vector.multi_reduction <maximumf>, %313, %cst_184 [2] : vector<2x8x8xf32> to vector<2x8xf32>
    %315 = vector.shape_cast %314 : vector<2x8xf32> to vector<2x8x1xf32>
    %316 = vector.broadcast %315 : vector<2x8x1xf32> to vector<2x8x8xf32>
    %317 = arith.subf %313, %316 : vector<2x8x8xf32>
    %318 = math.exp %317 : vector<2x8x8xf32>
    %cst_185 = arith.constant dense<0.000000e+00> : vector<2x8xf32>
    %319 = vector.multi_reduction <add>, %318, %cst_185 [2] : vector<2x8x8xf32> to vector<2x8xf32>
    %320 = vector.shape_cast %319 : vector<2x8xf32> to vector<2x8x1xf32>
    %321 = tpu.reciprocal %320 {approx = true} : vector<2x8x1xf32> -> vector<2x8x1xf32>
    %322 = vector.broadcast %321 : vector<2x8x1xf32> to vector<2x8x8xf32>
    %323 = arith.mulf %318, %322 : vector<2x8x8xf32>
    "tpu.trace_start"() <{level = 10 : i32, message = "bqk,bkd->bqd"}> : () -> ()
    %cst_186 = arith.constant dense<0.000000e+00> : vector<2x8x8xf32>
    %324 = tpu.matmul %323, %310, %cst_186 {dimension_numbers = #tpu.dot_dimension_numbers<[2], [1], [1], [2], [0, 0, 0, 1, 1, 2], [0], [0]>} : vector<2x8x8xf32>, vector<2x8x8xf32>, vector<2x8x8xf32> -> vector<2x8x8xf32>
    "tpu.trace_stop"() : () -> ()
    %325 = vector.shape_cast %324 : vector<2x8x8xf32> to vector<16x8xf32>
    %c4_187 = arith.constant 4 : index
    %c0_188 = arith.constant 0 : index
    %c0_189 = arith.constant 0 : index
    %326 = vector.load %arg5[%c4_187, %c0_188, %c0_189] : memref<8x8x32xf32, #tpu.memory_space<vmem>>, vector<1x8x32xf32>
    %327 = vector.shape_cast %326 : vector<1x8x32xf32> to vector<8x32xf32>
    %cst_190 = arith.constant dense<0.000000e+00> : vector<16x32xf32>
    %328 = tpu.matmul %325, %327, %cst_190 {dimension_numbers = #tpu.dot_dimension_numbers<[1], [0], [0], [1], [0, 0, 1, 1], [], []>} : vector<16x8xf32>, vector<8x32xf32>, vector<16x32xf32> -> vector<16x32xf32>
    %329 = arith.addf %286, %328 : vector<16x32xf32>
    %c5_191 = arith.constant 5 : index
    %c0_192 = arith.constant 0 : index
    %c0_193 = arith.constant 0 : index
    %330 = vector.load %arg3[%c5_191, %c0_192, %c0_193] : memref<24x32x8xf32, #tpu.memory_space<vmem>>, vector<1x32x8xf32>
    %331 = vector.shape_cast %330 : vector<1x32x8xf32> to vector<32x8xf32>
    %cst_194 = arith.constant dense<0.000000e+00> : vector<16x8xf32>
    %332 = tpu.matmul %279, %331, %cst_194 {dimension_numbers = #tpu.dot_dimension_numbers<[1], [0], [0], [1], [0, 0, 1, 1], [], []>} : vector<16x32xf32>, vector<32x8xf32>, vector<16x8xf32> -> vector<16x8xf32>
    %c5_195 = arith.constant 5 : index
    %c0_196 = arith.constant 0 : index
    %c0_197 = arith.constant 0 : index
    %333 = vector.load %arg4[%c5_195, %c0_196, %c0_197] : memref<24x1x8xf32, #tpu.memory_space<vmem>>, vector<1x1x8xf32>
    %334 = vector.shape_cast %333 : vector<1x1x8xf32> to vector<1x8xf32>
    %335 = vector.broadcast %334 : vector<1x8xf32> to vector<16x8xf32>
    %336 = arith.addf %332, %335 : vector<16x8xf32>
    %c13_198 = arith.constant 13 : index
    %c0_199 = arith.constant 0 : index
    %c0_200 = arith.constant 0 : index
    %337 = vector.load %arg3[%c13_198, %c0_199, %c0_200] : memref<24x32x8xf32, #tpu.memory_space<vmem>>, vector<1x32x8xf32>
    %338 = vector.shape_cast %337 : vector<1x32x8xf32> to vector<32x8xf32>
    %cst_201 = arith.constant dense<0.000000e+00> : vector<16x8xf32>
    %339 = tpu.matmul %279, %338, %cst_201 {dimension_numbers = #tpu.dot_dimension_numbers<[1], [0], [0], [1], [0, 0, 1, 1], [], []>} : vector<16x32xf32>, vector<32x8xf32>, vector<16x8xf32> -> vector<16x8xf32>
    %c13_202 = arith.constant 13 : index
    %c0_203 = arith.constant 0 : index
    %c0_204 = arith.constant 0 : index
    %340 = vector.load %arg4[%c13_202, %c0_203, %c0_204] : memref<24x1x8xf32, #tpu.memory_space<vmem>>, vector<1x1x8xf32>
    %341 = vector.shape_cast %340 : vector<1x1x8xf32> to vector<1x8xf32>
    %342 = vector.broadcast %341 : vector<1x8xf32> to vector<16x8xf32>
    %343 = arith.addf %339, %342 : vector<16x8xf32>
    %c21 = arith.constant 21 : index
    %c0_205 = arith.constant 0 : index
    %c0_206 = arith.constant 0 : index
    %344 = vector.load %arg3[%c21, %c0_205, %c0_206] : memref<24x32x8xf32, #tpu.memory_space<vmem>>, vector<1x32x8xf32>
    %345 = vector.shape_cast %344 : vector<1x32x8xf32> to vector<32x8xf32>
    %cst_207 = arith.constant dense<0.000000e+00> : vector<16x8xf32>
    %346 = tpu.matmul %279, %345, %cst_207 {dimension_numbers = #tpu.dot_dimension_numbers<[1], [0], [0], [1], [0, 0, 1, 1], [], []>} : vector<16x32xf32>, vector<32x8xf32>, vector<16x8xf32> -> vector<16x8xf32>
    %c21_208 = arith.constant 21 : index
    %c0_209 = arith.constant 0 : index
    %c0_210 = arith.constant 0 : index
    %347 = vector.load %arg4[%c21_208, %c0_209, %c0_210] : memref<24x1x8xf32, #tpu.memory_space<vmem>>, vector<1x1x8xf32>
    %348 = vector.shape_cast %347 : vector<1x1x8xf32> to vector<1x8xf32>
    %349 = vector.broadcast %348 : vector<1x8xf32> to vector<16x8xf32>
    %350 = arith.addf %346, %349 : vector<16x8xf32>
    %351 = vector.shape_cast %336 : vector<16x8xf32> to vector<2x8x8xf32>
    %352 = vector.shape_cast %343 : vector<16x8xf32> to vector<2x8x8xf32>
    %353 = vector.shape_cast %350 : vector<16x8xf32> to vector<2x8x8xf32>
    "tpu.trace_start"() <{level = 10 : i32, message = "bqd,bkd->bqk"}> : () -> ()
    %cst_211 = arith.constant dense<0.000000e+00> : vector<2x8x8xf32>
    %354 = tpu.matmul %351, %352, %cst_211 {dimension_numbers = #tpu.dot_dimension_numbers<[2], [2], [1], [1], [0, 0, 0, 1, 1, 1], [0], [0]>} : vector<2x8x8xf32>, vector<2x8x8xf32>, vector<2x8x8xf32> -> vector<2x8x8xf32>
    "tpu.trace_stop"() : () -> ()
    %cst_212 = arith.constant 0.353553385 : f32
    %355 = vector.broadcast %cst_212 : f32 to vector<2x8x8xf32>
    %356 = arith.mulf %354, %355 : vector<2x8x8xf32>
    %cst_213 = arith.constant dense<0xFF800000> : vector<2x8xf32>
    %357 = vector.multi_reduction <maximumf>, %356, %cst_213 [2] : vector<2x8x8xf32> to vector<2x8xf32>
    %358 = vector.shape_cast %357 : vector<2x8xf32> to vector<2x8x1xf32>
    %359 = vector.broadcast %358 : vector<2x8x1xf32> to vector<2x8x8xf32>
    %360 = arith.subf %356, %359 : vector<2x8x8xf32>
    %361 = math.exp %360 : vector<2x8x8xf32>
    %cst_214 = arith.constant dense<0.000000e+00> : vector<2x8xf32>
    %362 = vector.multi_reduction <add>, %361, %cst_214 [2] : vector<2x8x8xf32> to vector<2x8xf32>
    %363 = vector.shape_cast %362 : vector<2x8xf32> to vector<2x8x1xf32>
    %364 = tpu.reciprocal %363 {approx = true} : vector<2x8x1xf32> -> vector<2x8x1xf32>
    %365 = vector.broadcast %364 : vector<2x8x1xf32> to vector<2x8x8xf32>
    %366 = arith.mulf %361, %365 : vector<2x8x8xf32>
    "tpu.trace_start"() <{level = 10 : i32, message = "bqk,bkd->bqd"}> : () -> ()
    %cst_215 = arith.constant dense<0.000000e+00> : vector<2x8x8xf32>
    %367 = tpu.matmul %366, %353, %cst_215 {dimension_numbers = #tpu.dot_dimension_numbers<[2], [1], [1], [2], [0, 0, 0, 1, 1, 2], [0], [0]>} : vector<2x8x8xf32>, vector<2x8x8xf32>, vector<2x8x8xf32> -> vector<2x8x8xf32>
    "tpu.trace_stop"() : () -> ()
    %368 = vector.shape_cast %367 : vector<2x8x8xf32> to vector<16x8xf32>
    %c5_216 = arith.constant 5 : index
    %c0_217 = arith.constant 0 : index
    %c0_218 = arith.constant 0 : index
    %369 = vector.load %arg5[%c5_216, %c0_217, %c0_218] : memref<8x8x32xf32, #tpu.memory_space<vmem>>, vector<1x8x32xf32>
    %370 = vector.shape_cast %369 : vector<1x8x32xf32> to vector<8x32xf32>
    %cst_219 = arith.constant dense<0.000000e+00> : vector<16x32xf32>
    %371 = tpu.matmul %368, %370, %cst_219 {dimension_numbers = #tpu.dot_dimension_numbers<[1], [0], [0], [1], [0, 0, 1, 1], [], []>} : vector<16x8xf32>, vector<8x32xf32>, vector<16x32xf32> -> vector<16x32xf32>
    %372 = arith.addf %329, %371 : vector<16x32xf32>
    %c6_220 = arith.constant 6 : index
    %c0_221 = arith.constant 0 : index
    %c0_222 = arith.constant 0 : index
    %373 = vector.load %arg3[%c6_220, %c0_221, %c0_222] : memref<24x32x8xf32, #tpu.memory_space<vmem>>, vector<1x32x8xf32>
    %374 = vector.shape_cast %373 : vector<1x32x8xf32> to vector<32x8xf32>
    %cst_223 = arith.constant dense<0.000000e+00> : vector<16x8xf32>
    %375 = tpu.matmul %279, %374, %cst_223 {dimension_numbers = #tpu.dot_dimension_numbers<[1], [0], [0], [1], [0, 0, 1, 1], [], []>} : vector<16x32xf32>, vector<32x8xf32>, vector<16x8xf32> -> vector<16x8xf32>
    %c6_224 = arith.constant 6 : index
    %c0_225 = arith.constant 0 : index
    %c0_226 = arith.constant 0 : index
    %376 = vector.load %arg4[%c6_224, %c0_225, %c0_226] : memref<24x1x8xf32, #tpu.memory_space<vmem>>, vector<1x1x8xf32>
    %377 = vector.shape_cast %376 : vector<1x1x8xf32> to vector<1x8xf32>
    %378 = vector.broadcast %377 : vector<1x8xf32> to vector<16x8xf32>
    %379 = arith.addf %375, %378 : vector<16x8xf32>
    %c14_227 = arith.constant 14 : index
    %c0_228 = arith.constant 0 : index
    %c0_229 = arith.constant 0 : index
    %380 = vector.load %arg3[%c14_227, %c0_228, %c0_229] : memref<24x32x8xf32, #tpu.memory_space<vmem>>, vector<1x32x8xf32>
    %381 = vector.shape_cast %380 : vector<1x32x8xf32> to vector<32x8xf32>
    %cst_230 = arith.constant dense<0.000000e+00> : vector<16x8xf32>
    %382 = tpu.matmul %279, %381, %cst_230 {dimension_numbers = #tpu.dot_dimension_numbers<[1], [0], [0], [1], [0, 0, 1, 1], [], []>} : vector<16x32xf32>, vector<32x8xf32>, vector<16x8xf32> -> vector<16x8xf32>
    %c14_231 = arith.constant 14 : index
    %c0_232 = arith.constant 0 : index
    %c0_233 = arith.constant 0 : index
    %383 = vector.load %arg4[%c14_231, %c0_232, %c0_233] : memref<24x1x8xf32, #tpu.memory_space<vmem>>, vector<1x1x8xf32>
    %384 = vector.shape_cast %383 : vector<1x1x8xf32> to vector<1x8xf32>
    %385 = vector.broadcast %384 : vector<1x8xf32> to vector<16x8xf32>
    %386 = arith.addf %382, %385 : vector<16x8xf32>
    %c22 = arith.constant 22 : index
    %c0_234 = arith.constant 0 : index
    %c0_235 = arith.constant 0 : index
    %387 = vector.load %arg3[%c22, %c0_234, %c0_235] : memref<24x32x8xf32, #tpu.memory_space<vmem>>, vector<1x32x8xf32>
    %388 = vector.shape_cast %387 : vector<1x32x8xf32> to vector<32x8xf32>
    %cst_236 = arith.constant dense<0.000000e+00> : vector<16x8xf32>
    %389 = tpu.matmul %279, %388, %cst_236 {dimension_numbers = #tpu.dot_dimension_numbers<[1], [0], [0], [1], [0, 0, 1, 1], [], []>} : vector<16x32xf32>, vector<32x8xf32>, vector<16x8xf32> -> vector<16x8xf32>
    %c22_237 = arith.constant 22 : index
    %c0_238 = arith.constant 0 : index
    %c0_239 = arith.constant 0 : index
    %390 = vector.load %arg4[%c22_237, %c0_238, %c0_239] : memref<24x1x8xf32, #tpu.memory_space<vmem>>, vector<1x1x8xf32>
    %391 = vector.shape_cast %390 : vector<1x1x8xf32> to vector<1x8xf32>
    %392 = vector.broadcast %391 : vector<1x8xf32> to vector<16x8xf32>
    %393 = arith.addf %389, %392 : vector<16x8xf32>
    %394 = vector.shape_cast %379 : vector<16x8xf32> to vector<2x8x8xf32>
    %395 = vector.shape_cast %386 : vector<16x8xf32> to vector<2x8x8xf32>
    %396 = vector.shape_cast %393 : vector<16x8xf32> to vector<2x8x8xf32>
    "tpu.trace_start"() <{level = 10 : i32, message = "bqd,bkd->bqk"}> : () -> ()
    %cst_240 = arith.constant dense<0.000000e+00> : vector<2x8x8xf32>
    %397 = tpu.matmul %394, %395, %cst_240 {dimension_numbers = #tpu.dot_dimension_numbers<[2], [2], [1], [1], [0, 0, 0, 1, 1, 1], [0], [0]>} : vector<2x8x8xf32>, vector<2x8x8xf32>, vector<2x8x8xf32> -> vector<2x8x8xf32>
    "tpu.trace_stop"() : () -> ()
    %cst_241 = arith.constant 0.353553385 : f32
    %398 = vector.broadcast %cst_241 : f32 to vector<2x8x8xf32>
    %399 = arith.mulf %397, %398 : vector<2x8x8xf32>
    %cst_242 = arith.constant dense<0xFF800000> : vector<2x8xf32>
    %400 = vector.multi_reduction <maximumf>, %399, %cst_242 [2] : vector<2x8x8xf32> to vector<2x8xf32>
    %401 = vector.shape_cast %400 : vector<2x8xf32> to vector<2x8x1xf32>
    %402 = vector.broadcast %401 : vector<2x8x1xf32> to vector<2x8x8xf32>
    %403 = arith.subf %399, %402 : vector<2x8x8xf32>
    %404 = math.exp %403 : vector<2x8x8xf32>
    %cst_243 = arith.constant dense<0.000000e+00> : vector<2x8xf32>
    %405 = vector.multi_reduction <add>, %404, %cst_243 [2] : vector<2x8x8xf32> to vector<2x8xf32>
    %406 = vector.shape_cast %405 : vector<2x8xf32> to vector<2x8x1xf32>
    %407 = tpu.reciprocal %406 {approx = true} : vector<2x8x1xf32> -> vector<2x8x1xf32>
    %408 = vector.broadcast %407 : vector<2x8x1xf32> to vector<2x8x8xf32>
    %409 = arith.mulf %404, %408 : vector<2x8x8xf32>
    "tpu.trace_start"() <{level = 10 : i32, message = "bqk,bkd->bqd"}> : () -> ()
    %cst_244 = arith.constant dense<0.000000e+00> : vector<2x8x8xf32>
    %410 = tpu.matmul %409, %396, %cst_244 {dimension_numbers = #tpu.dot_dimension_numbers<[2], [1], [1], [2], [0, 0, 0, 1, 1, 2], [0], [0]>} : vector<2x8x8xf32>, vector<2x8x8xf32>, vector<2x8x8xf32> -> vector<2x8x8xf32>
    "tpu.trace_stop"() : () -> ()
    %411 = vector.shape_cast %410 : vector<2x8x8xf32> to vector<16x8xf32>
    %c6_245 = arith.constant 6 : index
    %c0_246 = arith.constant 0 : index
    %c0_247 = arith.constant 0 : index
    %412 = vector.load %arg5[%c6_245, %c0_246, %c0_247] : memref<8x8x32xf32, #tpu.memory_space<vmem>>, vector<1x8x32xf32>
    %413 = vector.shape_cast %412 : vector<1x8x32xf32> to vector<8x32xf32>
    %cst_248 = arith.constant dense<0.000000e+00> : vector<16x32xf32>
    %414 = tpu.matmul %411, %413, %cst_248 {dimension_numbers = #tpu.dot_dimension_numbers<[1], [0], [0], [1], [0, 0, 1, 1], [], []>} : vector<16x8xf32>, vector<8x32xf32>, vector<16x32xf32> -> vector<16x32xf32>
    %415 = arith.addf %372, %414 : vector<16x32xf32>
    %c7_249 = arith.constant 7 : index
    %c0_250 = arith.constant 0 : index
    %c0_251 = arith.constant 0 : index
    %416 = vector.load %arg3[%c7_249, %c0_250, %c0_251] : memref<24x32x8xf32, #tpu.memory_space<vmem>>, vector<1x32x8xf32>
    %417 = vector.shape_cast %416 : vector<1x32x8xf32> to vector<32x8xf32>
    %cst_252 = arith.constant dense<0.000000e+00> : vector<16x8xf32>
    %418 = tpu.matmul %279, %417, %cst_252 {dimension_numbers = #tpu.dot_dimension_numbers<[1], [0], [0], [1], [0, 0, 1, 1], [], []>} : vector<16x32xf32>, vector<32x8xf32>, vector<16x8xf32> -> vector<16x8xf32>
    %c7_253 = arith.constant 7 : index
    %c0_254 = arith.constant 0 : index
    %c0_255 = arith.constant 0 : index
    %419 = vector.load %arg4[%c7_253, %c0_254, %c0_255] : memref<24x1x8xf32, #tpu.memory_space<vmem>>, vector<1x1x8xf32>
    %420 = vector.shape_cast %419 : vector<1x1x8xf32> to vector<1x8xf32>
    %421 = vector.broadcast %420 : vector<1x8xf32> to vector<16x8xf32>
    %422 = arith.addf %418, %421 : vector<16x8xf32>
    %c15_256 = arith.constant 15 : index
    %c0_257 = arith.constant 0 : index
    %c0_258 = arith.constant 0 : index
    %423 = vector.load %arg3[%c15_256, %c0_257, %c0_258] : memref<24x32x8xf32, #tpu.memory_space<vmem>>, vector<1x32x8xf32>
    %424 = vector.shape_cast %423 : vector<1x32x8xf32> to vector<32x8xf32>
    %cst_259 = arith.constant dense<0.000000e+00> : vector<16x8xf32>
    %425 = tpu.matmul %279, %424, %cst_259 {dimension_numbers = #tpu.dot_dimension_numbers<[1], [0], [0], [1], [0, 0, 1, 1], [], []>} : vector<16x32xf32>, vector<32x8xf32>, vector<16x8xf32> -> vector<16x8xf32>
    %c15_260 = arith.constant 15 : index
    %c0_261 = arith.constant 0 : index
    %c0_262 = arith.constant 0 : index
    %426 = vector.load %arg4[%c15_260, %c0_261, %c0_262] : memref<24x1x8xf32, #tpu.memory_space<vmem>>, vector<1x1x8xf32>
    %427 = vector.shape_cast %426 : vector<1x1x8xf32> to vector<1x8xf32>
    %428 = vector.broadcast %427 : vector<1x8xf32> to vector<16x8xf32>
    %429 = arith.addf %425, %428 : vector<16x8xf32>
    %c23 = arith.constant 23 : index
    %c0_263 = arith.constant 0 : index
    %c0_264 = arith.constant 0 : index
    %430 = vector.load %arg3[%c23, %c0_263, %c0_264] : memref<24x32x8xf32, #tpu.memory_space<vmem>>, vector<1x32x8xf32>
    %431 = vector.shape_cast %430 : vector<1x32x8xf32> to vector<32x8xf32>
    %cst_265 = arith.constant dense<0.000000e+00> : vector<16x8xf32>
    %432 = tpu.matmul %279, %431, %cst_265 {dimension_numbers = #tpu.dot_dimension_numbers<[1], [0], [0], [1], [0, 0, 1, 1], [], []>} : vector<16x32xf32>, vector<32x8xf32>, vector<16x8xf32> -> vector<16x8xf32>
    %c23_266 = arith.constant 23 : index
    %c0_267 = arith.constant 0 : index
    %c0_268 = arith.constant 0 : index
    %433 = vector.load %arg4[%c23_266, %c0_267, %c0_268] : memref<24x1x8xf32, #tpu.memory_space<vmem>>, vector<1x1x8xf32>
    %434 = vector.shape_cast %433 : vector<1x1x8xf32> to vector<1x8xf32>
    %435 = vector.broadcast %434 : vector<1x8xf32> to vector<16x8xf32>
    %436 = arith.addf %432, %435 : vector<16x8xf32>
    %437 = vector.shape_cast %422 : vector<16x8xf32> to vector<2x8x8xf32>
    %438 = vector.shape_cast %429 : vector<16x8xf32> to vector<2x8x8xf32>
    %439 = vector.shape_cast %436 : vector<16x8xf32> to vector<2x8x8xf32>
    "tpu.trace_start"() <{level = 10 : i32, message = "bqd,bkd->bqk"}> : () -> ()
    %cst_269 = arith.constant dense<0.000000e+00> : vector<2x8x8xf32>
    %440 = tpu.matmul %437, %438, %cst_269 {dimension_numbers = #tpu.dot_dimension_numbers<[2], [2], [1], [1], [0, 0, 0, 1, 1, 1], [0], [0]>} : vector<2x8x8xf32>, vector<2x8x8xf32>, vector<2x8x8xf32> -> vector<2x8x8xf32>
    "tpu.trace_stop"() : () -> ()
    %cst_270 = arith.constant 0.353553385 : f32
    %441 = vector.broadcast %cst_270 : f32 to vector<2x8x8xf32>
    %442 = arith.mulf %440, %441 : vector<2x8x8xf32>
    %cst_271 = arith.constant dense<0xFF800000> : vector<2x8xf32>
    %443 = vector.multi_reduction <maximumf>, %442, %cst_271 [2] : vector<2x8x8xf32> to vector<2x8xf32>
    %444 = vector.shape_cast %443 : vector<2x8xf32> to vector<2x8x1xf32>
    %445 = vector.broadcast %444 : vector<2x8x1xf32> to vector<2x8x8xf32>
    %446 = arith.subf %442, %445 : vector<2x8x8xf32>
    %447 = math.exp %446 : vector<2x8x8xf32>
    %cst_272 = arith.constant dense<0.000000e+00> : vector<2x8xf32>
    %448 = vector.multi_reduction <add>, %447, %cst_272 [2] : vector<2x8x8xf32> to vector<2x8xf32>
    %449 = vector.shape_cast %448 : vector<2x8xf32> to vector<2x8x1xf32>
    %450 = tpu.reciprocal %449 {approx = true} : vector<2x8x1xf32> -> vector<2x8x1xf32>
    %451 = vector.broadcast %450 : vector<2x8x1xf32> to vector<2x8x8xf32>
    %452 = arith.mulf %447, %451 : vector<2x8x8xf32>
    "tpu.trace_start"() <{level = 10 : i32, message = "bqk,bkd->bqd"}> : () -> ()
    %cst_273 = arith.constant dense<0.000000e+00> : vector<2x8x8xf32>
    %453 = tpu.matmul %452, %439, %cst_273 {dimension_numbers = #tpu.dot_dimension_numbers<[2], [1], [1], [2], [0, 0, 0, 1, 1, 2], [0], [0]>} : vector<2x8x8xf32>, vector<2x8x8xf32>, vector<2x8x8xf32> -> vector<2x8x8xf32>
    "tpu.trace_stop"() : () -> ()
    %454 = vector.shape_cast %453 : vector<2x8x8xf32> to vector<16x8xf32>
    %c7_274 = arith.constant 7 : index
    %c0_275 = arith.constant 0 : index
    %c0_276 = arith.constant 0 : index
    %455 = vector.load %arg5[%c7_274, %c0_275, %c0_276] : memref<8x8x32xf32, #tpu.memory_space<vmem>>, vector<1x8x32xf32>
    %456 = vector.shape_cast %455 : vector<1x8x32xf32> to vector<8x32xf32>
    %cst_277 = arith.constant dense<0.000000e+00> : vector<16x32xf32>
    %457 = tpu.matmul %454, %456, %cst_277 {dimension_numbers = #tpu.dot_dimension_numbers<[1], [0], [0], [1], [0, 0, 1, 1], [], []>} : vector<16x8xf32>, vector<8x32xf32>, vector<16x32xf32> -> vector<16x32xf32>
    %458 = arith.addf %415, %457 : vector<16x32xf32>
    %459 = vector.broadcast %280 : vector<1x32xf32> to vector<16x32xf32>
    %460 = arith.addf %458, %459 : vector<16x32xf32>
    %461 = arith.addf %279, %460 : vector<16x32xf32>
    %cst_278 = arith.constant dense<0.000000e+00> : vector<16xf32>
    %462 = vector.multi_reduction <add>, %461, %cst_278 [1] : vector<16x32xf32> to vector<16xf32>
    %463 = vector.shape_cast %462 : vector<16xf32> to vector<16x1xf32>
    %cst_279 = arith.constant 3.200000e+01 : f32
    %464 = vector.broadcast %cst_279 : f32 to vector<16x1xf32>
    %465 = arith.divf %463, %464 : vector<16x1xf32>
    %466 = vector.broadcast %465 : vector<16x1xf32> to vector<16x32xf32>
    %467 = arith.subf %461, %466 : vector<16x32xf32>
    %468 = arith.mulf %467, %467 : vector<16x32xf32>
    %cst_280 = arith.constant dense<0.000000e+00> : vector<16xf32>
    %469 = vector.multi_reduction <add>, %468, %cst_280 [1] : vector<16x32xf32> to vector<16xf32>
    %470 = vector.shape_cast %469 : vector<16xf32> to vector<16x1xf32>
    %cst_281 = arith.constant 3.200000e+01 : f32
    %471 = vector.broadcast %cst_281 : f32 to vector<16x1xf32>
    %472 = arith.divf %470, %471 : vector<16x1xf32>
    %473 = vector.broadcast %465 : vector<16x1xf32> to vector<16x32xf32>
    %474 = arith.subf %461, %473 : vector<16x32xf32>
    %cst_282 = arith.constant 9.99999974E-6 : f32
    %475 = vector.broadcast %cst_282 : f32 to vector<16x1xf32>
    %476 = arith.addf %472, %475 : vector<16x1xf32>
    %477 = math.rsqrt %476 : vector<16x1xf32>
    %478 = vector.broadcast %477 : vector<16x1xf32> to vector<16x32xf32>
    %479 = arith.mulf %474, %478 : vector<16x32xf32>
    %480 = vector.broadcast %281 : vector<1x32xf32> to vector<16x32xf32>
    %481 = arith.mulf %479, %480 : vector<16x32xf32>
    %482 = vector.broadcast %282 : vector<1x32xf32> to vector<16x32xf32>
    %483 = arith.addf %481, %482 : vector<16x32xf32>
    %c1_283 = arith.constant 1 : index
    %c0_284 = arith.constant 0 : index
    %c0_285 = arith.constant 0 : index
    %484 = vector.load %arg6[%c1_283, %c0_284, %c0_285] : memref<2x32x64xf32, #tpu.memory_space<vmem>>, vector<1x32x64xf32>
    %485 = vector.shape_cast %484 : vector<1x32x64xf32> to vector<32x64xf32>
    %cst_286 = arith.constant dense<0.000000e+00> : vector<16x64xf32>
    %486 = tpu.matmul %483, %485, %cst_286 {dimension_numbers = #tpu.dot_dimension_numbers<[1], [0], [0], [1], [0, 0, 1, 1], [], []>} : vector<16x32xf32>, vector<32x64xf32>, vector<16x64xf32> -> vector<16x64xf32>
    %c1_287 = arith.constant 1 : index
    %c0_288 = arith.constant 0 : index
    %c0_289 = arith.constant 0 : index
    %487 = vector.load %arg7[%c1_287, %c0_288, %c0_289] : memref<2x1x64xf32, #tpu.memory_space<vmem>>, vector<1x1x64xf32>
    %488 = vector.shape_cast %487 : vector<1x1x64xf32> to vector<1x64xf32>
    %489 = vector.broadcast %488 : vector<1x64xf32> to vector<16x64xf32>
    %490 = arith.addf %486, %489 : vector<16x64xf32>
    %cst_290 = arith.constant 0.000000e+00 : f32
    %491 = vector.broadcast %cst_290 : f32 to vector<16x64xf32>
    %492 = arith.maximumf %490, %491 : vector<16x64xf32>
    %c1_291 = arith.constant 1 : index
    %c0_292 = arith.constant 0 : index
    %c0_293 = arith.constant 0 : index
    %493 = vector.load %arg8[%c1_291, %c0_292, %c0_293] : memref<2x64x32xf32, #tpu.memory_space<vmem>>, vector<1x64x32xf32>
    %494 = vector.shape_cast %493 : vector<1x64x32xf32> to vector<64x32xf32>
    %cst_294 = arith.constant dense<0.000000e+00> : vector<16x32xf32>
    %495 = tpu.matmul %492, %494, %cst_294 {dimension_numbers = #tpu.dot_dimension_numbers<[1], [0], [0], [1], [0, 0, 1, 1], [], []>} : vector<16x64xf32>, vector<64x32xf32>, vector<16x32xf32> -> vector<16x32xf32>
    %496 = vector.broadcast %283 : vector<1x32xf32> to vector<16x32xf32>
    %497 = arith.addf %495, %496 : vector<16x32xf32>
    %498 = arith.addf %483, %497 : vector<16x32xf32>
    %cst_295 = arith.constant dense<0.000000e+00> : vector<16xf32>
    %499 = vector.multi_reduction <add>, %498, %cst_295 [1] : vector<16x32xf32> to vector<16xf32>
    %500 = vector.shape_cast %499 : vector<16xf32> to vector<16x1xf32>
    %cst_296 = arith.constant 3.200000e+01 : f32
    %501 = vector.broadcast %cst_296 : f32 to vector<16x1xf32>
    %502 = arith.divf %500, %501 : vector<16x1xf32>
    %503 = vector.broadcast %502 : vector<16x1xf32> to vector<16x32xf32>
    %504 = arith.subf %498, %503 : vector<16x32xf32>
    %505 = arith.mulf %504, %504 : vector<16x32xf32>
    %cst_297 = arith.constant dense<0.000000e+00> : vector<16xf32>
    %506 = vector.multi_reduction <add>, %505, %cst_297 [1] : vector<16x32xf32> to vector<16xf32>
    %507 = vector.shape_cast %506 : vector<16xf32> to vector<16x1xf32>
    %cst_298 = arith.constant 3.200000e+01 : f32
    %508 = vector.broadcast %cst_298 : f32 to vector<16x1xf32>
    %509 = arith.divf %507, %508 : vector<16x1xf32>
    %510 = vector.broadcast %502 : vector<16x1xf32> to vector<16x32xf32>
    %511 = arith.subf %498, %510 : vector<16x32xf32>
    %cst_299 = arith.constant 9.99999974E-6 : f32
    %512 = vector.broadcast %cst_299 : f32 to vector<16x1xf32>
    %513 = arith.addf %509, %512 : vector<16x1xf32>
    %514 = math.rsqrt %513 : vector<16x1xf32>
    %515 = vector.broadcast %514 : vector<16x1xf32> to vector<16x32xf32>
    %516 = arith.mulf %511, %515 : vector<16x32xf32>
    %517 = vector.broadcast %284 : vector<1x32xf32> to vector<16x32xf32>
    %518 = arith.mulf %516, %517 : vector<16x32xf32>
    %519 = vector.broadcast %285 : vector<1x32xf32> to vector<16x32xf32>
    %520 = arith.addf %518, %519 : vector<16x32xf32>
    %521 = vector.shape_cast %520 : vector<16x32xf32> to vector<2x8x32xf32>
    %cst_300 = arith.constant dense<0.000000e+00> : vector<2x32xf32>
    %522 = vector.multi_reduction <add>, %521, %cst_300 [1] : vector<2x8x32xf32> to vector<2x32xf32>
    %cst_301 = arith.constant 1.250000e-01 : f32
    %523 = vector.broadcast %cst_301 : f32 to vector<2x32xf32>
    %524 = arith.mulf %522, %523 : vector<2x32xf32>
    %c0_302 = arith.constant 0 : index
    %c0_303 = arith.constant 0 : index
    %525 = vector.load %arg9[%c0_302, %c0_303] : memref<32x5xf32, #tpu.memory_space<vmem>>, vector<32x5xf32>
    %cst_304 = arith.constant dense<0.000000e+00> : vector<2x5xf32>
    %526 = tpu.matmul %524, %525, %cst_304 {dimension_numbers = #tpu.dot_dimension_numbers<[1], [0], [0], [1], [0, 0, 1, 1], [], []>} : vector<2x32xf32>, vector<32x5xf32>, vector<2x5xf32> -> vector<2x5xf32>
    %c0_305 = arith.constant 0 : index
    %c0_306 = arith.constant 0 : index
    %527 = vector.load %arg10[%c0_305, %c0_306] : memref<1x5xf32, #tpu.memory_space<vmem>>, vector<1x5xf32>
    %528 = vector.broadcast %527 : vector<1x5xf32> to vector<2x5xf32>
    %529 = arith.addf %526, %528 : vector<2x5xf32>
    %c0_307 = arith.constant 0 : index
    %c0_308 = arith.constant 0 : index
    %530 = vector.load %arg11[%c0_307, %c0_308] : memref<2x5xf32, #tpu.memory_space<vmem>>, vector<2x5xf32>
    tpu.vector_store %arg11[%c0_307, %c0_308], %529 {strides = array<i32>} : memref<2x5xf32, #tpu.memory_space<vmem>>, vector<2x5xf32>,
    return
  }
}

</mosaic_0001>

<bundles_post_ra>
// kernel: maldi_transformer_forward.1
= control target key start
LH: loop header
LB: loop body
LE: loop exit
PB: predicated region body
PF: predicated region fallthrough
CT: control target
= control target key end

     0   :  { %vm94_vm0 = vcmask 58368   ;;  %s8949_s0 = inlined_call_operand.vmem [shape: f32[2,8], index: 0, kind: input, shape index: {}]   ;;  %s8950_s1 = inlined_call_operand.vmem [shape: f32[2,8], index: 1, kind: input, shape index: {}]   ;;  %s8951_s2 = inlined_call_operand.vmem [shape: f32[17,32], index: 2, kind: input, shape index: {}]   ;;  %s8952_s3 = inlined_call_operand.vmem [shape: f32[24,32,8], index: 3, kind: input, shape index: {}]   ;;  %s8953_s4 = inlined_call_operand.vmem [shape: f32[24,1,8], index: 4, kind: input, shape index: {}]   ;;  %s8954_s5 = inlined_call_operand.vmem [shape: f32[8,8,32], index: 5, kind: input, shape index: {}]   ;;  %s8955_s6 = inlined_call_operand.vmem [shape: f32[2,32,64], index: 6, kind: input, shape index: {}]   ;;  %s8956_s7 = inlined_call_operand.vmem [shape: f32[2,1,64], index: 7, kind: input, shape index: {}]   ;;  %s8957_s8 = inlined_call_operand.vmem [shape: f32[2,64,32], index: 8, kind: input, shape index: {}]   ;;  %s8958_s9 = inlined_call_operand.vmem [shape: f32[32,5], index: 9, kind: input, shape index: {}]   ;;  %s8959_s10 = inlined_call_operand.vmem [shape: f32[1,5], index: 10, kind: input, shape index: {}]   ;;  %s8960_s11 = inlined_call_operand.hbm [shape: f32[2,5], index: 11, kind: output, shape index: {}]  }
   0x1   :  { %v39_v0 = vld [vmem:[%s8949_s0] sm:$0x3] }
   0x2   :  { %16 = vsyncpa [#allocation3], 0  ;;  %v95_v1 = vsel %vm94_vm0, %v39_v0, -inf  ;;  %v46_v10 = vlaneseq  ;;  %v40_v19 = vld [vmem:[%s8950_s1] sm:$0x3]  ;;  %v351_v24 = vld [vmem:[%s8952_s3 + $0x8] sm:$0xff] }
   0x3   :  { %96 = vmax.xlane.f32.xlu0 %v95_v1  ;;  %v350_v23 = vld [vmem:[%s8952_s3] sm:$0xff]  ;;  %v6414_v27 = vld [vmem:[%s8952_s3 + $0x108] sm:$0xff]  ;;  %v352_v29 = vld [vmem:[%s8952_s3 + $0x10] sm:$0xff]  ;;  %s7910_s24 = smov [#allocation2]  }
   0x4   :  { %v47_v11 = vshrl.u32 %v46_v10, 7  ;;  %v7509_v25 = vpack.c.bf16 %v351_v24, %v350_v23  ;;  %v6413_v26 = vld [vmem:[%s8952_s3 + $0x100] sm:$0xff]  ;;  %v353_v30 = vld [vmem:[%s8952_s3 + $0x18] sm:$0xff]  ;;  %v6415_v32 = vld [vmem:[%s8952_s3 + $0x110] sm:$0xff]  ;;  %v7904_v10 = vmov 2102212464  }
   0x5   :  { %v7517_v28 = vpack.c.bf16 %v6414_v27, %v6413_v26  ;;  %v7513_v31 = vpack.c.bf16 %v353_v30, %v352_v29  ;;  %v6416_v33 = vld [vmem:[%s8952_s3 + $0x118] sm:$0xff]  ;;  %v6421_v35 = vld [vmem:[%s8952_s3 + $0x200] sm:$0xff]  ;;  %v6422_v36 = vld [vmem:[%s8952_s3 + $0x208] sm:$0xff]  ;;  %s6389_s25 = sshll.u32 %s7910_s24, 4  ;;  %s6390_s25 = int_to_ptr.vmem [resolvable:$true] %s6389_s25 }
   0x6   :  { %v55_v12 = vsub.s32 1, %v47_v11  ;;  %v48_v13 = vsub.s32 0, %v47_v11  ;;  %7510 = vmatprep.subr.bf16.mxu0 %v7509_v25  ;;  %v7521_v34 = vpack.c.bf16 %v6416_v33, %v6415_v32  ;;  %v8007_v37 = vpack.c.bf16 %v6422_v36, %v6421_v35  ;;  %v6400_v38 = vld [vmem:[%s8951_s2 + $0x3] ss:$0 sm:$0xff]  ;;  %v6401_v39 = vld [vmem:[%s8951_s2 + $0x4] ss:$0 sm:$0xff]  ;;  %p7882_p1 = scmp.lt.s32.totalorder %s6390_s25, %s6390_s25 }
   0x7   :  { %7512 = vmatpush3.bf16.msra.mxu0 %v7509_v25  ;;  %7518 = vmatprep.subr.bf16.mxu1 %v7517_v28  ;;  %s7877_s26 = scalar_lea.vmem %s6390_s25, 32 }
   0x8   :  { %v49_v18 = vrot.slane %v39_v0, %v48_v13  ;;  %v69_v20 = vrot.slane %v40_v19, %v48_v13  ;;  %v56_v21 = vrot.slane %v39_v0, %v55_v12  ;;  %v76_v22 = vrot.slane %v40_v19, %v55_v12  ;;  %7520 = vmatpush3.bf16.msra.mxu1 %v7517_v28  ;;  %p7878_p0 = scmp.ne.s32.totalorder %s6390_s25, %s7877_s26  ;;  %p7883_p2 = scmp.lt.s32.totalorder %s7877_s26, %s7877_s26 }
   0x9   :  { %7514 = vmatprep.subr.bf16.mxu0 %v7513_v31  ;;  %7522 = vmatprep.subr.bf16.mxu1 %v7521_v34  ;;  %v7906_v19 = vmov 1326507024  }
   0xa   :  { %p7884_p3 = por %p7883_p2, %p7882_p1 }
   0xb   :  { %7516 = vmatpush3.bf16.msra.mxu0 %v7513_v31 }
   0xc   :  { %7524 = vmatpush3.bf16.msra.mxu1 %v7521_v34  ;;  %7526 = vmatprep.subr.bf16.mxu0 %v8007_v37  ;;  %p7885_p4 = pnand %p7884_p3, %p7878_p0 }
  0x90   :  { %v97_v2 = vpop.xlane.xlu0 %96 }
  0x91   :  { %v98_v3 = vrot.slane %v97_v2, 4 }
  0x93   :  { %v99_v4 = vmax.f32 %v97_v2, %v98_v3  ;;  %v7901_v2 = vmov 683565275  }
  0x95   :  { %v100_v5 = vrot.slane %v99_v4, 2 }
  0x97   :  { %v101_v6 = vmax.f32 %v99_v4, %v100_v5 }
  0x99   :  { %v102_v7 = vrot.slane %v101_v6, 1 }
  0x9b   :  { %v103_v8 = vmax.f32 %v101_v6, %v102_v7  ;;  %v7902_v6 = vmov 2475754826  }
  0x9d   :  { %7767 = vpush %v103_v8  ;;  %v7903_v8 = vmov 2131351028  }
  0xce   :  { %s7768_s19 = spop %7767 }
  0xcf   :  { %v105_v9 = vstv %s7768_s19 }
  0xd0   :  { %7787 = vrcp.f32 %v105_v9 }
  0xda   :  { %v7788_v14 = vpop.eup %7787 }
  0xdb   :  { %v107_v15 = vmul.f32 %v7788_v14, %v39_v0 }
  0xdd   :  { %v118_v16 = vrot.slane %v107_v15, %v55_v12  ;;  %v111_v17 = vrot.slane %v107_v15, %v48_v13  ;;  %v7905_v12 = vmov 920167782  }
  0xdf   :  { %120 = vbcast.lane.b32.xlu1 %v118_v16, 256  ;;  %113 = vbcast.lane.b32.xlu0 %v111_v17, 256 }
  0xe3   :  { %51 = vbcast.lane.b32.xlu1 %v49_v18, 256 }
  0xe7   :  { %71 = vbcast.lane.b32.xlu1 %v69_v20, 256 }
  0xeb   :  { %58 = vbcast.lane.b32.xlu1 %v56_v21, 256 }
  0xef   :  { %78 = vbcast.lane.b32.xlu1 %v76_v22, 256 }
 0x151   :  { %v121_v40 = vpop.permute.xlu1 %120  ;;  %v114_v41 = vpop.permute.xlu0 %113 }
 0x152   :  { %v127_v42 = vmul.f32 %v6400_v38, %v121_v40  ;;  %v126_v43 = vmul.f32 %v6400_v38, %v114_v41 }
 0x154   :  { %v8016_v44 = vadd.f32 %v6401_v39, %v127_v42  ;;  %v8018_v45 = vadd.f32 %v6401_v39, %v126_v43 }
 0x156   :  { %v238_v46 = vand.u32 2147483647, %v8016_v44  ;;  %v241_v47 = vand.u32 2139095040, %v8016_v44  ;;  %v137_v48 = vand.u32 2139095040, %v8018_v45  ;;  %v134_v51 = vand.u32 2147483647, %v8018_v45 }
 0x157   :  { %vm240_vm15 = vcmp.lt.s32.totalorder %v8016_v44, 0 }
 0x158   :  { %v242_v49 = vshrl.u32 %v241_v47, 23  ;;  %v245_v50 = vand.u32 8388607, %v238_v46  ;;  %v138_v52 = vshrl.u32 %v137_v48, 23  ;;  %v8028_v57 = vand.u32 8388607, %v134_v51 }
 0x159   :  { %vm8071_vm0 = vcmp.le.f32.partialorder %v238_v46, 0.7853982 }
 0x15a   :  { %v6406_v53 = vadd.s32 4294967169, %v242_v49  ;;  %v6402_v54 = vadd.s32 4294967169, %v138_v52  ;;  %v246_v56 = vor.u32 8388608, %v245_v50  ;;  %v142_v0 = vor.u32 8388608, %v8028_v57 }
 0x15c   :  { %v248_v55 = vadd.s32 1, %v6406_v53  ;;  %v144_v58 = vadd.s32 1, %v6402_v54  ;;  %v8030_v63 = vshll.u32 %v246_v56, 8 }
 0x15e   :  { %vm249_vm1 = vcmp.gt.s32.totalorder %v248_v55, 0  ;;  %vm145_vm2 = vcmp.gt.s32.totalorder %v144_v58, 0 }
 0x15f   :  { %v250_v59 = vsel %vm249_vm1, %v248_v55, 0  ;;  %v146_v62 = vsel %vm145_vm2, %v144_v58, 0  ;;  %vm136_vm1 = vcmp.lt.s32.totalorder %v8018_v45, 0  ;;  %vm8083_vm2 = vcmp.le.f32.partialorder %v134_v51, 0.7853982 }
 0x160   :  { %v251_v60 = vshrl.u32 %v250_v59, 5  ;;  %v252_v61 = vand.u32 31, %v250_v59  ;;  %v8033_v4 = vshrl.u32 %v146_v62, 5  ;;  %v148_v5 = vand.u32 31, %v146_v62 }
 0x161   :  { %v182_v59 = vshll.u32 %v142_v0, 8 }
 0x162   :  { %v253_v1 = vsub.s32 32, %v252_v61  ;;  %v255_v3 = vshll.u32 %v7901_v2, %v252_v61  ;;  %v258_v7 = vshll.u32 %v7902_v6, %v252_v61  ;;  %v261_v9 = vshll.u32 %v7903_v8, %v252_v61 }
 0x163   :  { %v264_v11 = vshll.u32 %v7904_v10, %v252_v61  ;;  %v267_v13 = vshll.u32 %v7905_v12, %v252_v61  ;;  %vm270_vm3 = vcmp.lt.s32.totalorder %v251_v60, 1  ;;  %vm271_vm4 = vcmp.lt.s32.totalorder %v251_v60, 2 }
 0x164   :  { %v256_v14 = vshrl.u32 %v7902_v6, %v253_v1  ;;  %v259_v15 = vshrl.u32 %v7903_v8, %v253_v1  ;;  %v262_v16 = vshrl.u32 %v7904_v10, %v253_v1  ;;  %v254_v17 = vshrl.u32 %v7901_v2, %v253_v1 }
 0x165   :  { %v265_v18 = vshrl.u32 %v7905_v12, %v253_v1  ;;  %v268_v20 = vshrl.u32 %v7906_v19, %v253_v1  ;;  %v149_v24 = vsub.s32 32, %v148_v5  ;;  %vm272_vm5 = vcmp.lt.s32.totalorder %v251_v60, 3 }
 0x166   :  { %v257_v21 = vor.u32 %v256_v14, %v255_v3  ;;  %v260_v22 = vor.u32 %v259_v15, %v258_v7  ;;  %v263_v23 = vor.u32 %v262_v16, %v261_v9  ;;  %vm273_vm6 = vcmp.lt.s32.totalorder %v251_v60, 4 }
 0x167   :  { %v266_v25 = vor.u32 %v265_v18, %v264_v11  ;;  %v269_v26 = vor.u32 %v268_v20, %v267_v13  ;;  %v151_v34 = vshll.u32 %v7901_v2, %v148_v5  ;;  %v152_v38 = vshrl.u32 %v7902_v6, %v149_v24 }
 0x168   :  { %v274_v27 = vsel %vm270_vm3, %v254_v17, %v257_v21  ;;  %v275_v28 = vsel %vm273_vm6, %v263_v23, 2102212464  ;;  %v278_v29 = vsel %vm270_vm3, %v257_v21, %v260_v22  ;;  %v282_v30 = vsel %vm270_vm3, %v260_v22, %v263_v23 }
 0x169   :  { %v276_v31 = vsel %vm272_vm5, %v260_v22, %v275_v28  ;;  %v279_v32 = vsel %vm273_vm6, %v266_v25, 920167782  ;;  %v283_v33 = vsel %vm273_vm6, %v269_v26, 1326507024  ;;  %v154_v39 = vshll.u32 %v7902_v6, %v148_v5 }
 0x16a   :  { %v280_v35 = vsel %vm272_vm5, %v263_v23, %v279_v32  ;;  %v284_v36 = vsel %vm272_vm5, %v266_v25, %v283_v33  ;;  %v277_v40 = vsel %vm271_vm4, %v274_v27, %v276_v31  ;;  %v155_v43 = vshrl.u32 %v7903_v8, %v149_v24 }
 0x16b   :  { %v281_v41 = vsel %vm271_vm4, %v278_v29, %v280_v35  ;;  %v285_v42 = vsel %vm271_vm4, %v282_v30, %v284_v36  ;;  %v153_v52 = vor.u32 %v152_v38, %v151_v34  ;;  %v157_v54 = vshll.u32 %v7903_v8, %v148_v5 }
 0x16c   :  { %v8042_v47 = vmul.u32.u64.low %v8030_v63, %v285_v42  ;;  %v8043_v48 = vmul.u32.u64.high %v8030_v63, %v285_v42, %v8042_v47  ;;  %v8046_v49 = vmul.u32.u64.low %v8030_v63, %v281_v41  ;;  %v8047_v50 = vmul.u32.u64.high %v8030_v63, %v281_v41, %v8046_v49 }
 0x16d   :  { %v156_v53 = vor.u32 %v155_v43, %v154_v39  ;;  %v158_v55 = vshrl.u32 %v7904_v10, %v149_v24  ;;  %v160_v56 = vshll.u32 %v7904_v10, %v148_v5  ;;  %v161_v57 = vshrl.u32 %v7905_v12, %v149_v24 }
 0x16e   :  { %v164_v58 = vshrl.u32 %v7906_v19, %v149_v24  ;;  %v293_v60 = vmul.u32 %v8030_v63, %v277_v40  ;;  %v150_v61 = vshrl.u32 %v7901_v2, %v149_v24  ;;  %v163_v1 = vshll.u32 %v7905_v12, %v148_v5 }
 0x16f   :  { %v159_v62 = vor.u32 %v158_v55, %v157_v54  ;;  %vm295_vm7 = vc.u32 %v8043_v48, %v8046_v49  ;;  %v296_v3 = vadd.s32 1, %v8047_v50  ;;  %v162_v6 = vor.u32 %v161_v57, %v160_v56 }
 0x170   :  { %vm166_vm8 = vcmp.lt.s32.totalorder %v8033_v4, 1  ;;  %v165_v7 = vor.u32 %v164_v58, %v163_v1  ;;  %vm168_vm9 = vcmp.lt.s32.totalorder %v8033_v4, 3  ;;  %vm169_vm10 = vcmp.lt.s32.totalorder %v8033_v4, 4 }
 0x171   :  { %v174_v8 = vsel %vm166_vm8, %v153_v52, %v156_v53  ;;  %v297_v0 = vsel %vm295_vm7, %v296_v3, %v8047_v50  ;;  %v171_v9 = vsel %vm169_vm10, %v159_v62, 2102212464  ;;  %v175_v63 = vsel %vm169_vm10, %v162_v6, 920167782 }
 0x172   :  { %v178_v2 = vsel %vm166_vm8, %v156_v53, %v159_v62  ;;  %v298_v10 = vadd.s32 %v297_v0, %v293_v60  ;;  %vm167_vm11 = vcmp.lt.s32.totalorder %v8033_v4, 2  ;;  %v176_v5 = vsel %vm168_vm9, %v159_v62, %v175_v63 }
 0x173   :  { %v179_v11 = vsel %vm169_vm10, %v165_v7, 1326507024  ;;  %v170_v12 = vsel %vm166_vm8, %v150_v61, %v153_v52  ;;  %v172_v13 = vsel %vm168_vm9, %v156_v53, %v171_v9  ;;  %v177_v14 = vsel %vm167_vm11, %v174_v8, %v176_v5 }
 0x174   :  { %v180_v15 = vsel %vm168_vm9, %v162_v6, %v179_v11  ;;  %v299_v16 = vadd.s32 536870912, %v298_v10  ;;  %v8057_v18 = vmul.u32.u64.low %v182_v59, %v177_v14  ;;  %v8058_v19 = vmul.u32.u64.high %v182_v59, %v177_v14, %v8057_v18 }
 0x175   :  { %v181_v17 = vsel %vm167_vm11, %v178_v2, %v180_v15  ;;  %v173_v23 = vsel %vm167_vm11, %v170_v12, %v172_v13  ;;  %v294_v40 = vadd.s32 %v8046_v49, %v8043_v48  ;;  %v52_v49 = vpop.permute.xlu1 %51  ;;  %vm330_vm7 = vweird.f32 %v8016_v44  ;;  %v6453_v2 = vld [vmem:[%s8952_s3 + $0x230] sm:$0xff] }
 0x176   :  { %v8060_v20 = vmul.u32.u64.low %v182_v59, %v181_v17  ;;  %v8061_v21 = vmul.u32.u64.high %v182_v59, %v181_v17, %v8060_v20  ;;  %v300_v22 = vshrl.u32 %v299_v16, 30  ;;  %v192_v25 = vadd.s32 1, %v8058_v19 }
 0x177   :  { %v189_v4 = vmul.u32 %v182_v59, %v173_v23  ;;  %vm226_vm10 = vweird.f32 %v8018_v45  ;;  %vm361_vm11 = vcmask 261120   ;;  %v6426_v20 = vld [vmem:[%s8953_s4 + $0x10] ss:$0 sm:$0xff] }
 0x178   :  { %v301_v24 = vshll.u32 %v300_v22, 30  ;;  %vm191_vm12 = vc.u32 %v8061_v21, %v8057_v18  ;;  %v190_v61 = vadd.s32 %v8057_v18, %v8061_v21  ;;  %v324_v63 = vsub.s32 4, %v300_v22 }
 0x179   :  { %v193_v27 = vsel %vm191_vm12, %v192_v25, %v8058_v19  ;;  %v72_v12 = vpop.permute.xlu1 %71  ;;  %vm7908_vm12 = vmmov 0  }
 0x17a   :  { %v302_v26 = vsub.s32 %v298_v10, %v301_v24  ;;  %v194_v28 = vadd.s32 %v193_v27, %v189_v4  ;;  %v325_v15 = vsel %vm240_vm15, %v324_v63, %v300_v22 }
 0x17b   :  { %v327_v46 = vsel %vm8071_vm0, 0, %v325_v15 }
 0x17c   :  { %v304_v29 = vsub.s32 0, %v302_v26  ;;  %v195_v30 = vadd.s32 536870912, %v194_v28  ;;  %v331_v24 = vadd.s32 3, %v327_v46 }
 0x17d   :  { %v59_v19 = vpop.permute.xlu1 %58 }
 0x17e   :  { %v6407_v31 = vmin.u32 %v304_v29, %v302_v26  ;;  %v196_v32 = vshrl.u32 %v195_v30, 30  ;;  %v332_v27 = vand.u32 3, %v331_v24  ;;  %v6397_v30 = vld [vmem:[%s8951_s2] ss:$0 sm:$0xff] }
 0x180   :  { %v306_v33 = vclz %v6407_v31  ;;  %v197_v34 = vshll.u32 %v196_v32, 30  ;;  %v220_v17 = vsub.s32 4, %v196_v32  ;;  %v6398_v31 = vld [vmem:[%s8951_s2 + $0x1] ss:$0 sm:$0xff]  ;;  %vm334_vm3 = vcmp.eq.s32.totalorder %v332_v27, 0 }
 0x181   :  { %v79_v29 = vpop.permute.xlu1 %78  ;;  %vm337_vm4 = vcmp.eq.s32.totalorder %v332_v27, 2  ;;  %vm333_vm5 = vcmp.lt.s32.totalorder %v332_v27, 2  ;;  %v6456_v27 = vld [vmem:[%s8953_s4 + $0x11] ss:$0 sm:$0xff] }
 0x182   :  { %v6408_v35 = vadd.s32 4294967294, %v306_v33  ;;  %v198_v36 = vsub.s32 %v194_v28, %v197_v34  ;;  %v221_v23 = vsel %vm136_vm1, %v220_v17, %v196_v32  ;;  %v65_v33 = vmul.f32 %v6397_v30, %v59_v19  ;;  %v6410_v17 = vld [vmem:[%s8953_s4] ss:$0 sm:$0xff] }
 0x183   :  { %v223_v4 = vsel %vm8083_vm2, 0, %v221_v23  ;;  %v85_v34 = vmul.f32 %v6398_v31, %v79_v29 }
 0x184   :  { %vm6409_vm13 = vcmp.lt.s32.totalorder %v6408_v35, 0  ;;  %v200_v39 = vsub.s32 0, %v198_v36  ;;  %v227_v32 = vadd.s32 3, %v223_v4 }
 0x185   :  { %v309_v38 = vsel %vm6409_vm13, 0, %v6408_v35  ;;  %v64_v35 = vmul.f32 %v6397_v30, %v52_v49  ;;  %vm619_vm13 = vcmask 64512  }
 0x186   :  { %v310_v41 = vsub.s32 32, %v309_v38  ;;  %v314_v42 = vsub.s32 4294967266, %v309_v38  ;;  %v6403_v43 = vmin.u32 %v200_v39, %v198_v36  ;;  %v311_v47 = vshll.u32 %v302_v26, %v309_v38 }
 0x188   :  { %v312_v50 = vshrl.u32 %v294_v40, %v310_v41  ;;  %v315_v52 = vadd.s32 127, %v314_v42  ;;  %v202_v53 = vclz %v6403_v43  ;;  %v228_v40 = vand.u32 3, %v227_v32 }
 0x189   :  { %v87_v43 = vadd.f32 %v85_v34, %v65_v33 }
 0x18a   :  { %v313_v54 = vor.u32 %v312_v50, %v311_v47  ;;  %v316_v55 = vshll.u32 %v315_v52, 23  ;;  %v6404_v56 = vadd.s32 4294967294, %v202_v53  ;;  %v6399_v53 = vld [vmem:[%s8951_s2 + $0x2] ss:$0 sm:$0xff]  ;;  %vm233_vm6 = vcmp.eq.s32.totalorder %v228_v40, 2 }
 0x18b   :  { %vm230_vm8 = vcmp.eq.s32.totalorder %v228_v40, 0  ;;  %vm229_vm9 = vcmp.lt.s32.totalorder %v228_v40, 2 }
 0x18c   :  { %v317_v57 = vor.u32 4788187, %v316_v55  ;;  %vm6405_vm14 = vcmp.lt.s32.totalorder %v6404_v56, 0  ;;  %v320_v59 = vcvt.s32.f32 %v313_v54 }
 0x18d   :  { %v205_v60 = vsel %vm6405_vm14, 0, %v6404_v56  ;;  %vm3188_vm14 = vcmask 523264  }
 0x18e   :  { %v318_v58 = vand.u32 2147483647, %v317_v57  ;;  %v206_v62 = vsub.s32 32, %v205_v60  ;;  %v210_v1 = vsub.s32 4294967266, %v205_v60  ;;  %v207_v3 = vshll.u32 %v198_v36, %v205_v60 }
 0x18f   :  { %v84_v36 = vmul.f32 %v6398_v31, %v72_v12  ;;  %v6418_v12 = vld [vmem:[%s8953_s4 + $0x8] ss:$0 sm:$0xff] }
 0x190   :  { %v321_v48 = vmul.f32 %v320_v59, %v318_v58  ;;  %v208_v6 = vshrl.u32 %v190_v61, %v206_v62  ;;  %v211_v7 = vadd.s32 127, %v210_v1  ;;  %v93_v58 = vadd.f32 %v6399_v53, %v87_v43  ;;  %v6423_v61 = vld [vmem:[%s8952_s3 + $0x210] sm:$0xff]  ;;  %v6424_v62 = vld [vmem:[%s8952_s3 + $0x218] sm:$0xff] }
 0x191   :  { %v86_v52 = vadd.f32 %v84_v36, %v64_v35  ;;  %v7529_v49 = vpack.c.bf16 %v6424_v62, %v6423_v61 }
 0x192   :  { %v322_v8 = vxor.u32 2147483648, %v321_v48  ;;  %v209_v0 = vor.u32 %v208_v6, %v207_v3  ;;  %v212_v9 = vshll.u32 %v211_v7, 23  ;;  %v6436_v3 = vld [vmem:[%s8952_s3 + $0x28] sm:$0xff]  ;;  %v6437_v7 = vld [vmem:[%s8952_s3 + $0x30] sm:$0xff] }
 0x193   :  { %v92_v60 = vadd.f32 %v6399_v53, %v86_v52 }
 0x194   :  { %v323_v10 = vsel %vm240_vm15, %v322_v8, %v321_v48  ;;  %v213_v11 = vor.u32 4788187, %v212_v9  ;;  %v216_v14 = vcvt.s32.f32 %v209_v0  ;;  %v6438_v8 = vld [vmem:[%s8952_s3 + $0x38] sm:$0xff]  ;;  %v6452_v9 = vld [vmem:[%s8952_s3 + $0x228] sm:$0xff]  ;;  %vm6307_vm15 = vcmask 1041409  }
 0x195   :  { %v326_v5 = vsel %vm8071_vm0, %v8016_v44, %v323_v10  ;;  %v7537_v0 = vpack.c.bf16 %v6438_v8, %v6437_v7  ;;  %v6454_v10 = vld [vmem:[%s8952_s3 + $0x238] sm:$0xff]  ;;  %vm6381_vm0 = vcmask 33792  }
 0x196   :  { %7789 = vcosq.f32 %v326_v5  ;;  %v214_v13 = vand.u32 2147483647, %v213_v11  ;;  %v7907_v11 = vmov 0.0  }
 0x197   :  { %7791 = vsinq.f32 %v326_v5  ;;  %v7553_v5 = vpack.c.bf16 %v6454_v10, %v6453_v2  ;;  %7007 = vmatprep.subr.mxu1 %v7907_v11  ;;  %v6440_v10 = vld [vmem:[%s8953_s4 + $0x1] ss:$0 sm:$0xff] }
 0x198   :  { %v217_v16 = vmul.f32 %v216_v14, %v214_v13 }
 0x19a   :  { %v218_v18 = vxor.u32 2147483648, %v217_v16 }
 0x19c   :  { %v219_v21 = vsel %vm136_vm1, %v218_v18, %v217_v16 }
 0x19d   :  { %v222_v22 = vsel %vm8083_vm2, %v8018_v45, %v219_v21  ;;  %v6435_v45 = vld [vmem:[%s8952_s3 + $0x20] sm:$0xff] }
 0x19e   :  { %7793 = vcosq.f32 %v222_v22  ;;  %v7533_v6 = vpack.c.bf16 %v6436_v3, %v6435_v45 }
 0x19f   :  { %7795 = vsinq.f32 %v222_v22 }
 0x1a0   :  { %v7790_v25 = vpop.eup %7789 }
 0x1a1   :  { %v7792_v26 = vpop.eup %7791  ;;  %v338_v51 = vxor.u32 2147483648, %v7790_v25 }
 0x1a2   :  { %v335_v28 = vxor.u32 2147483648, %v7792_v26 }
 0x1a3   :  { %v339_v39 = vsel %vm337_vm4, %v338_v51, %v7792_v26 }
 0x1a4   :  { %v336_v38 = vsel %vm334_vm3, %v7790_v25, %v335_v28 }
 0x1a5   :  { %v340_v42 = vsel %vm333_vm5, %v336_v38, %v339_v39 }
 0x1a6   :  { %v341_v56 = vsel %vm330_vm7, nan, %v340_v42 }
 0x1a7   :  { %v8109_v44 = vadd.f32 %v341_v56, %v93_v58  ;;  %v6443_v58 = vld [vmem:[%s8952_s3 + $0x120] sm:$0xff] }
 0x1a8   :  { %v7794_v41 = vpop.eup %7793 }
 0x1a9   :  { %v7796_v47 = vpop.eup %7795  ;;  %v234_v50 = vxor.u32 2147483648, %v7794_v41 }
 0x1aa   :  { %v231_v54 = vxor.u32 2147483648, %v7796_v47 }
 0x1ab   :  { %v235_v55 = vsel %vm233_vm6, %v234_v50, %v7796_v47 }
 0x1ac   :  { %v232_v57 = vsel %vm230_vm8, %v7794_v41, %v231_v54 }
 0x1ad   :  { %v236_v59 = vsel %vm229_vm9, %v232_v57, %v235_v55 }
 0x1ae   :  { %v237_v1 = vsel %vm226_vm10, nan, %v236_v59  ;;  %v6444_v59 = vld [vmem:[%s8952_s3 + $0x128] sm:$0xff] }
 0x1af   :  { %v8111_v48 = vadd.f32 %v237_v1, %v92_v60  ;;  %v7541_v62 = vpack.c.bf16 %v6444_v59, %v6443_v58  ;;  %v6445_v1 = vld [vmem:[%s8952_s3 + $0x130] sm:$0xff]  ;;  %v6478_v58 = vld [vmem:[%s8952_s3 + $0x140] sm:$0xff]  ;;  %v6479_v59 = vld [vmem:[%s8952_s3 + $0x148] sm:$0xff] }
 0x1b1   :  { %6982 = vmatprep.mubr.msk.f32.mxu0 %vm361_vm11, %v8111_v48  ;;  %6993 = vmatprep.mubr.msk.f32.mxu1 %vm361_vm11, %v8111_v48 }
 0x1b2   :  { %6983 = vmatmul.mubr.msk.f32.vlgmr.msra.gmra.mrb[0].mxu0 %vm361_vm11, %v8109_v44  ;;  %6994 = vmatmul.mubr.msk.f32.vlgmr.msra.gmra.mrb[0].mxu1 %vm361_vm11, %v8109_v44 }
 0x1b3   :  { %7528 = vmatpush3.bf16.msra.mxu0 %v8007_v37  ;;  %7004 = vmatprep.mubr.msk.f32.mxu0 %vm361_vm11, %v8111_v48  ;;  %v6451_v37 = vld [vmem:[%s8952_s3 + $0x220] sm:$0xff] }
 0x1b4   :  { %7530 = vmatprep.subr.bf16.mxu0 %v7529_v49  ;;  %v7549_v63 = vpack.c.bf16 %v6452_v9, %v6451_v37  ;;  %7009 = vmatprep.mubr.msk.f32.mxu1 %vm7908_vm12, %v7907_v11  ;;  %v6448_v9 = vld [vmem:[%s8953_s4 + $0x9] ss:$0 sm:$0xff] }
 0x1b7   :  { %7532 = vmatpush3.bf16.msra.mxu0 %v7529_v49  ;;  %v6446_v49 = vld [vmem:[%s8952_s3 + $0x138] sm:$0xff] }
 0x1b8   :  { %7534 = vmatprep.subr.bf16.mxu0 %v7533_v6 }
 0x1ba   :  { %7005 = vmatmul.mubr.msk.f32.vlgmr.msra.gmra.mrb[2].mxu0 %vm361_vm11, %v8109_v44 }
 0x1bb   :  { %7536 = vmatpush3.bf16.msra.mxu0 %v7533_v6  ;;  %7035 = vmatprep.mubr.msk.f32.mxu0 %vm361_vm11, %v8111_v48  ;;  %v7545_v6 = vpack.c.bf16 %v6446_v49, %v6445_v1  ;;  %v6480_v49 = vld [vmem:[%s8952_s3 + $0x150] sm:$0xff] }
 0x1bc   :  { %7538 = vmatprep.subr.bf16.mxu0 %v7537_v0 }
 0x1bf   :  { %7540 = vmatpush3.bf16.msra.mxu0 %v7537_v0 }
 0x1c0   :  { %7550 = vmatprep.subr.bf16.mxu0 %v7549_v63 }
 0x1c2   :  { %7036 = vmatmul.mubr.msk.f32.vlgmr.msra.gmra.mrb[4].mxu0 %vm361_vm11, %v8109_v44 }
 0x1c3   :  { %7552 = vmatpush3.bf16.msra.mxu0 %v7549_v63  ;;  %7057 = vmatprep.mubr.msk.f32.mxu0 %vm361_vm11, %v8111_v48 }
 0x1c4   :  { %7554 = vmatprep.subr.bf16.mxu0 %v7553_v5 }
 0x1c7   :  { %7556 = vmatpush3.bf16.msra.mxu0 %v7553_v5 }
 0x1c8   :  { %7070 = vmatprep.subr.mxu0 %v7907_v11 }
 0x1ca   :  { %7058 = vmatmul.mubr.msk.f32.vlgmr.msra.gmra.mrb[6].mxu0 %vm361_vm11, %v8109_v44 }
 0x1cb   :  { %7072 = vmatprep.mubr.msk.f32.mxu0 %vm7908_vm12, %v7907_v11 }
 0x285   :  { %v6984_v13 = vpop.f32.mrb[0].mxu0  ;;  %v6995_v14 = vpop.f32.mrb[0].mxu1 }
 0x286   :  { %v434_v15 = vpop.f32.mrb[1].mxu0  ;;  %v522_v16 = vpop.f32.mrb[1].mxu1  ;;  %v528_v19 = vadd.f32 %v6995_v14, %v6418_v12  ;;  %v440_v23 = vadd.f32 %v6984_v13, %v6410_v17 }
 0x287   :  { %v523_v46 = vadd.f32 %v6418_v12, %v522_v16  ;;  %v435_v18 = vadd.f32 %v6410_v17, %v434_v15 }
 0x289   :  { %7008 = vmatpush3.xpose.msk.msra.mxu1 %vm619_vm13, %v523_v46 }
 0x28a   :  { %7012 = vmatprep.subr.mxu1 %v7907_v11 }
 0x28c   :  { %7010 = vmatmul.mubr.msk.f32.vlgmr.msra.gmra.mrb[2].mxu1 %vm619_vm13, %v435_v18 }
 0x28d   :  { %v7006_v21 = vpop.f32.mrb[2].mxu0  ;;  %7013 = vmatpush3.xpose.msk.msra.mxu1 %vm619_vm13, %v528_v19  ;;  %7014 = vmatprep.mubr.msk.f32.mxu1 %vm7908_vm12, %v7907_v11 }
 0x28e   :  { %v616_v24 = vadd.f32 %v7006_v21, %v6426_v20  ;;  %v610_v22 = vpop.f32.mrb[3].mxu0  ;;  %7017 = vmatprep.subr.mxu1 %v7907_v11 }
 0x28f   :  { %v611_v25 = vadd.f32 %v6426_v20, %v610_v22 }
 0x290   :  { %7015 = vmatmul.mubr.msk.f32.vlgmr.msra.gmra.mrb[4].mxu1 %vm619_vm13, %v440_v23 }
 0x291   :  { %7018 = vmatpush3.msra.mxu1 %v611_v25  ;;  %7019 = vmatprep.mubr.msk.f32.mxu1 %vm7908_vm12, %v7907_v11 }
 0x292   :  { %7022 = vmatprep.subr.mxu1 %v7907_v11 }
 0x295   :  { %v8184_v4 = vpop.f32.mrb[4].mxu0 }
 0x296   :  { %v8186_v26 = vpop.f32.mrb[5].mxu0  ;;  %v1028_v14 = vadd.f32 %v8184_v4, %v6440_v10 }
 0x297   :  { %v1023_v12 = vadd.f32 %v6440_v10, %v8186_v26 }
 0x29d   :  { %v7059_v28 = vpop.f32.mrb[6].mxu0 }
 0x29e   :  { %v8191_v51 = vadd.f32 %v7059_v28, %v6456_v27  ;;  %v1198_v29 = vpop.f32.mrb[7].mxu0 }
 0x29f   :  { %v1199_v30 = vadd.f32 %v6456_v27, %v1198_v29 }
 0x2a1   :  { %7071 = vmatpush3.msra.mxu0 %v1199_v30  ;;  %v6470_v30 = vld [vmem:[%s8952_s3 + $0x40] sm:$0xff] }
 0x35f   :  { %v692_v31 = vpop.f32.mrb[2].mxu1 }
 0x360   :  { %v772_v32 = vmul.f32 0.35355338, %v692_v31  ;;  %v7011_v33 = vpop.f32.mrb[3].mxu1  ;;  %v6471_v31 = vld [vmem:[%s8952_s3 + $0x48] sm:$0xff] }
 0x362   :  { %v774_v34 = vsel %vm619_vm13, %v772_v32, -inf }
 0x363   :  { %775 = vmax.xlane.f32.xlu1 %v774_v34  ;;  %v768_v35 = vpop.f32.mrb[4].mxu1 }
 0x364   :  { %v773_v36 = vmul.f32 0.35355338, %v768_v35  ;;  %v7016_v38 = vpop.f32.mrb[5].mxu1 }
 0x365   :  { %v6472_v38 = vld [vmem:[%s8952_s3 + $0x50] sm:$0xff] }
 0x366   :  { %v777_v39 = vsel %vm619_vm13, %v773_v36, -inf }
 0x367   :  { %778 = vmax.xlane.f32.xlu0 %v777_v39  ;;  %v6473_v39 = vld [vmem:[%s8952_s3 + $0x58] sm:$0xff] }
 0x3f0   :  { %v776_v40 = vpop.xlane.xlu1 %775 }
 0x3f1   :  { %v780_v41 = vsub.f32 %v772_v32, %v776_v40  ;;  %v7557_v32 = vpack.c.bf16 %v6471_v31, %v6470_v30 }
 0x3f3   :  { %v782_v42 = vmul.f32 1.442695, %v780_v41 }
 0x3f4   :  { %v779_v43 = vpop.xlane.xlu0 %778 }
 0x3f5   :  { %7797 = vpow2.f32 %v782_v42  ;;  %v781_v47 = vsub.f32 %v773_v36, %v779_v43  ;;  %v7561_v42 = vpack.c.bf16 %v6473_v39, %v6472_v38  ;;  %v6486_v43 = vld [vmem:[%s8952_s3 + $0x240] sm:$0xff]  ;;  %v6505_v39 = vld [vmem:[%s8952_s3 + $0x70] sm:$0xff] }
 0x3f7   :  { %v784_v50 = vmul.f32 1.442695, %v781_v47  ;;  %v6487_v47 = vld [vmem:[%s8952_s3 + $0x248] sm:$0xff] }
 0x3f9   :  { %7799 = vpow2.f32 %v784_v50  ;;  %v7573_v50 = vpack.c.bf16 %v6487_v47, %v6486_v43 }
 0x3ff   :  { %v7798_v52 = vpop.eup %7797 }
 0x400   :  { %v786_v53 = vsel %vm619_vm13, %v7798_v52, 0.0 }
 0x401   :  { %787 = vadd.xlane.f32.xlu1 %v786_v53  ;;  %v6489_v53 = vld [vmem:[%s8952_s3 + $0x258] sm:$0xff] }
 0x403   :  { %v7800_v54 = vpop.eup %7799 }
 0x404   :  { %v789_v55 = vsel %vm619_vm13, %v7800_v54, 0.0 }
 0x405   :  { %790 = vadd.xlane.f32.xlu0 %v789_v55  ;;  %v6465_v55 = vld [vmem:[%s8954_s5 + $0x8] sm:$0xff] }
 0x406   :  { %7080 = vmatprep.subr.mxu0 %v6465_v55 }
 0x48e   :  { %v788_v56 = vpop.xlane.xlu1 %787 }
 0x48f   :  { %7801 = vrcp.f32 %v788_v56  ;;  %v942_v56 = vld [vmem:[%s8954_s5] sm:$0xff] }
 0x492   :  { %v791_v57 = vpop.xlane.xlu0 %790 }
 0x493   :  { %7803 = vrcp.f32 %v791_v57 }
 0x499   :  { %v7802_v60 = vpop.eup %7801 }
 0x49a   :  { %v794_v61 = vmul.f32 %v7802_v60, %v7798_v52  ;;  %v6488_v52 = vld [vmem:[%s8952_s3 + $0x250] sm:$0xff] }
 0x49c   :  { %7020 = vmatmul.mubr.msk.f32.vlgmr.msra.gmra.mrb[6].mxu1 %vm619_vm13, %v794_v61  ;;  %v7565_v61 = vpack.c.bf16 %v6479_v59, %v6478_v58  ;;  %v6511_v58 = vld [vmem:[%s8952_s3 + $0x160] sm:$0xff]  ;;  %v6512_v59 = vld [vmem:[%s8952_s3 + $0x168] sm:$0xff] }
 0x49d   :  { %v7804_v45 = vpop.eup %7803  ;;  %7023 = vmatpush3.msra.mxu1 %v616_v24  ;;  %7024 = vmatprep.mubr.msk.f32.mxu1 %vm7908_vm12, %v7907_v11 }
 0x49e   :  { %v795_v3 = vmul.f32 %v7804_v45, %v7800_v54  ;;  %7542 = vmatprep.subr.bf16.mxu1 %v7541_v62  ;;  %v7577_v54 = vpack.c.bf16 %v6489_v53, %v6488_v52  ;;  %v6481_v45 = vld [vmem:[%s8952_s3 + $0x158] sm:$0xff]  ;;  %v6519_v52 = vld [vmem:[%s8952_s3 + $0x260] sm:$0xff]  ;;  %v6520_v53 = vld [vmem:[%s8952_s3 + $0x268] sm:$0xff] }
 0x4a0   :  { %7025 = vmatmul.mubr.msk.f32.vlgmr.msra.gmra.mrb[8].mxu1 %vm619_vm13, %v795_v3  ;;  %v7569_v3 = vpack.c.bf16 %v6481_v45, %v6480_v49 }
 0x4a1   :  { %7544 = vmatpush3.bf16.msra.mxu1 %v7541_v62  ;;  %7046 = vmatprep.mubr.msk.f32.mxu1 %vm361_vm11, %v8111_v48 }
 0x4a2   :  { %7546 = vmatprep.subr.bf16.mxu1 %v7545_v6 }
 0x4a5   :  { %7548 = vmatpush3.bf16.msra.mxu1 %v7545_v6 }
 0x4a6   :  { %7060 = vmatprep.subr.mxu1 %v7907_v11 }
 0x4a8   :  { %7047 = vmatmul.mubr.msk.f32.vlgmr.msra.gmra.mrb[10].mxu1 %vm361_vm11, %v8109_v44 }
 0x4a9   :  { %7062 = vmatprep.mubr.msk.f32.mxu1 %vm7908_vm12, %v7907_v11 }
 0x56f   :  { %v8220_v7 = vpop.f32.mrb[6].mxu1 }
 0x570   :  { %v7021_v8 = vpop.f32.mrb[7].mxu1 }
 0x573   :  { %v8222_v0 = vpop.f32.mrb[8].mxu1 }
 0x574   :  { %v7026_v37 = vpop.f32.mrb[9].mxu1 }
 0x57b   :  { %v7048_v63 = vpop.f32.mrb[10].mxu1 }
 0x57c   :  { %v1110_v2 = vpop.f32.mrb[11].mxu1  ;;  %v1116_v13 = vadd.f32 %v7048_v63, %v6448_v9  ;;  %v6475_v63 = vld [vmem:[%s8953_s4 + $0x2] ss:$0 sm:$0xff] }
 0x57d   :  { %v1111_v5 = vadd.f32 %v6448_v9, %v1110_v2 }
 0x57f   :  { %7061 = vmatpush3.xpose.msk.msra.mxu1 %vm619_vm13, %v1111_v5  ;;  %v6491_v5 = vld [vmem:[%s8953_s4 + $0x12] ss:$0 sm:$0xff] }
 0x580   :  { %7065 = vmatprep.subr.mxu1 %v7907_v11 }
 0x582   :  { %7063 = vmatmul.mubr.msk.f32.vlgmr.msra.gmra.mrb[12].mxu1 %vm619_vm13, %v1023_v12 }
 0x583   :  { %7066 = vmatpush3.xpose.msk.msra.mxu1 %vm619_vm13, %v1116_v13  ;;  %7067 = vmatprep.mubr.msk.f32.mxu1 %vm7908_vm12, %v7907_v11 }
 0x584   :  { %7075 = vmatprep.subr.mxu1 %v7907_v11 }
 0x586   :  { %7068 = vmatmul.mubr.msk.f32.vlgmr.msra.gmra.mrb[14].mxu1 %vm619_vm13, %v1028_v14 }
 0x587   :  { %7076 = vmatpush3.msra.mxu1 %v8191_v51  ;;  %7077 = vmatprep.mubr.msk.f32.mxu1 %vm7908_vm12, %v7907_v11 }
 0x588   :  { %7558 = vmatprep.subr.bf16.mxu1 %v7557_v32 }
 0x655   :  { %v1279_v15 = vpop.f32.mrb[12].mxu1 }
 0x656   :  { %v1359_v16 = vmul.f32 0.35355338, %v1279_v15  ;;  %v7064_v17 = vpop.f32.mrb[13].mxu1 }
 0x658   :  { %v1361_v46 = vsel %vm619_vm13, %v1359_v16, -inf }
 0x659   :  { %1362 = vmax.xlane.f32.xlu1 %v1361_v46  ;;  %v1355_v18 = vpop.f32.mrb[14].mxu1 }
 0x65a   :  { %v1360_v19 = vmul.f32 0.35355338, %v1355_v18  ;;  %v7069_v20 = vpop.f32.mrb[15].mxu1 }
 0x65c   :  { %v1364_v21 = vsel %vm619_vm13, %v1360_v19, -inf }
 0x65d   :  { %1365 = vmax.xlane.f32.xlu0 %v1364_v21 }
 0x6e6   :  { %v1363_v23 = vpop.xlane.xlu1 %1362 }
 0x6e7   :  { %v1367_v24 = vsub.f32 %v1359_v16, %v1363_v23 }
 0x6e9   :  { %v1369_v22 = vmul.f32 1.442695, %v1367_v24 }
 0x6ea   :  { %v1366_v25 = vpop.xlane.xlu0 %1365 }
 0x6eb   :  { %7805 = vpow2.f32 %v1369_v22  ;;  %v1368_v4 = vsub.f32 %v1360_v19, %v1366_v25 }
 0x6ed   :  { %v1371_v26 = vmul.f32 1.442695, %v1368_v4 }
 0x6ef   :  { %7807 = vpow2.f32 %v1371_v26 }
 0x6f5   :  { %v7806_v27 = vpop.eup %7805 }
 0x6f6   :  { %v1373_v28 = vsel %vm619_vm13, %v7806_v27, 0.0 }
 0x6f7   :  { %1374 = vadd.xlane.f32.xlu1 %v1373_v28 }
 0x6f9   :  { %v7808_v51 = vpop.eup %7807 }
 0x6fa   :  { %v1376_v29 = vsel %vm619_vm13, %v7808_v51, 0.0 }
 0x6fb   :  { %1377 = vadd.xlane.f32.xlu0 %v1376_v29 }
 0x784   :  { %v1375_v33 = vpop.xlane.xlu1 %1374 }
 0x785   :  { %7809 = vrcp.f32 %v1375_v33  ;;  %v6504_v33 = vld [vmem:[%s8952_s3 + $0x68] sm:$0xff] }
 0x788   :  { %v1378_v34 = vpop.xlane.xlu0 %1377 }
 0x789   :  { %7811 = vrcp.f32 %v1378_v34 }
 0x78f   :  { %v7810_v35 = vpop.eup %7809 }
 0x790   :  { %v1381_v36 = vmul.f32 %v7810_v35, %v7806_v27  ;;  %v6500_v35 = vld [vmem:[%s8954_s5 + $0x10] sm:$0xff] }
 0x792   :  { %7073 = vmatmul.mubr.msk.f32.vlgmr.msra.gmra.mrb[8].mxu0 %vm619_vm13, %v1381_v36 }
 0x793   :  { %v7812_v40 = vpop.eup %7811  ;;  %7081 = vmatpush3.msra.mxu0 %v6465_v55  ;;  %v6521_v55 = vld [vmem:[%s8952_s3 + $0x270] sm:$0xff] }
 0x794   :  { %v1382_v41 = vmul.f32 %v7812_v40, %v7808_v51  ;;  %7085 = vmatprep.subr.mxu0 %v942_v56  ;;  %v6506_v40 = vld [vmem:[%s8952_s3 + $0x78] sm:$0xff] }
 0x795   :  { %v7585_v47 = vpack.c.bf16 %v6506_v40, %v6505_v39  ;;  %v6533_v40 = vld [vmem:[%s8954_s5 + $0x18] sm:$0xff] }
 0x796   :  { %7078 = vmatmul.mubr.msk.f32.vlgmr.msra.gmra.mrb[16].mxu1 %vm619_vm13, %v1382_v41 }
 0x797   :  { %7560 = vmatpush3.bf16.msra.mxu1 %v7557_v32  ;;  %7098 = vmatprep.mubr.msk.f32.mxu1 %vm361_vm11, %v8111_v48  ;;  %v6503_v32 = vld [vmem:[%s8952_s3 + $0x60] sm:$0xff] }
 0x798   :  { %7562 = vmatprep.subr.bf16.mxu1 %v7561_v42  ;;  %v7581_v34 = vpack.c.bf16 %v6504_v33, %v6503_v32 }
 0x79b   :  { %7564 = vmatpush3.bf16.msra.mxu1 %v7561_v42 }
 0x79c   :  { %7574 = vmatprep.subr.bf16.mxu1 %v7573_v50 }
 0x79e   :  { %7099 = vmatmul.mubr.msk.f32.vlgmr.msra.gmra.mrb[18].mxu1 %vm361_vm11, %v8109_v44 }
 0x79f   :  { %7576 = vmatpush3.bf16.msra.mxu1 %v7573_v50  ;;  %7120 = vmatprep.mubr.msk.f32.mxu1 %vm361_vm11, %v8111_v48 }
 0x7a0   :  { %7578 = vmatprep.subr.bf16.mxu1 %v7577_v54 }
 0x7a3   :  { %7580 = vmatpush3.bf16.msra.mxu1 %v7577_v54  ;;  %v7597_v54 = vpack.c.bf16 %v6520_v53, %v6519_v52 }
 0x7a4   :  { %7128 = vmatprep.subr.mxu1 %v7907_v11 }
 0x7a6   :  { %7121 = vmatmul.mubr.msk.f32.vlgmr.msra.gmra.mrb[20].mxu1 %vm361_vm11, %v8109_v44 }
 0x7a7   :  { %7130 = vmatprep.mubr.msk.f32.mxu1 %vm7908_vm12, %v7907_v11 }
 0x865   :  { %v1452_v57 = vpop.f32.mrb[8].mxu0 }
 0x866   :  { %v7074_v60 = vpop.f32.mrb[9].mxu0  ;;  %7082 = vmatprep.mubr.msk.f32.mxu0 %vm619_vm13, %v1452_v57 }
 0x867   :  { %v7589_v60 = vpack.c.bf16 %v6512_v59, %v6511_v58 }
 0x869   :  { %v1525_v62 = vpop.f32.mrb[16].mxu1 }
 0x86a   :  { %v7079_v1 = vpop.f32.mrb[17].mxu1  ;;  %7083 = vmatmul.mubr.msk.f32.vlgmr.msra.gmra.mrb[10].mxu0 %vm619_vm13, %v1525_v62  ;;  %v6514_v62 = vld [vmem:[%s8952_s3 + $0x178] sm:$0xff] }
 0x86b   :  { %7086 = vmatpush3.msra.mxu0 %v942_v56  ;;  %7087 = vmatprep.mubr.msk.f32.mxu0 %vm619_vm13, %v8220_v7  ;;  %v6522_v56 = vld [vmem:[%s8952_s3 + $0x278] sm:$0xff] }
 0x86c   :  { %7566 = vmatprep.subr.bf16.mxu0 %v7565_v61  ;;  %v7601_v57 = vpack.c.bf16 %v6522_v56, %v6521_v55 }
 0x871   :  { %v7100_v6 = vpop.f32.mrb[18].mxu1 }
 0x872   :  { %v1772_v8 = vpop.f32.mrb[19].mxu1  ;;  %7088 = vmatmul.mubr.msk.f32.vlgmr.msra.gmra.mrb[10].mxu0 %vm619_vm13, %v8222_v0  ;;  %v6483_v0 = vld [vmem:[%s8953_s4 + $0xa] ss:$0 sm:$0xff]  ;;  %v1778_v13 = vadd.f32 %v7100_v6, %v6475_v63 }
 0x873   :  { %7568 = vmatpush3.bf16.msra.mxu0 %v7565_v61  ;;  %7109 = vmatprep.mubr.msk.f32.mxu0 %vm361_vm11, %v8111_v48  ;;  %v1773_v14 = vadd.f32 %v6475_v63, %v1772_v8  ;;  %v6513_v61 = vld [vmem:[%s8952_s3 + $0x170] sm:$0xff] }
 0x874   :  { %7570 = vmatprep.subr.bf16.mxu0 %v7569_v3 }
 0x877   :  { %7572 = vmatpush3.bf16.msra.mxu0 %v7569_v3  ;;  %v7593_v3 = vpack.c.bf16 %v6514_v62, %v6513_v61 }
 0x878   :  { %7123 = vmatprep.subr.mxu0 %v7907_v11 }
 0x879   :  { %v7122_v7 = vpop.f32.mrb[20].mxu1 }
 0x87a   :  { %7110 = vmatmul.mubr.msk.f32.vlgmr.msra.gmra.mrb[12].mxu0 %vm361_vm11, %v8109_v44  ;;  %v1948_v37 = vpop.f32.mrb[21].mxu1  ;;  %v1954_v15 = vadd.f32 %v7122_v7, %v6491_v5 }
 0x87b   :  { %7125 = vmatprep.mubr.msk.f32.mxu0 %vm7908_vm12, %v7907_v11  ;;  %v1949_v16 = vadd.f32 %v6491_v5, %v1948_v37  ;;  %v6524_v37 = vld [vmem:[%s8953_s4 + $0x13] ss:$0 sm:$0xff] }
 0x94d   :  { %v7111_v9 = vpop.f32.mrb[12].mxu0 }
 0x94e   :  { %v1866_v2 = vadd.f32 %v7111_v9, %v6483_v0  ;;  %v1860_v10 = vpop.f32.mrb[13].mxu0 }
 0x94f   :  { %v1861_v12 = vadd.f32 %v6483_v0, %v1860_v10  ;;  %v6516_v10 = vld [vmem:[%s8953_s4 + $0xb] ss:$0 sm:$0xff] }
 0x950   :  { %7129 = vmatpush3.xpose.msk.msra.mxu1 %vm619_vm13, %v1866_v2 }
 0x951   :  { %7124 = vmatpush3.xpose.msk.msra.mxu0 %vm619_vm13, %v1861_v12  ;;  %7138 = vmatprep.subr.mxu1 %v7907_v11 }
 0x952   :  { %7133 = vmatprep.subr.mxu0 %v7907_v11 }
 0x953   :  { %7131 = vmatmul.mubr.msk.f32.vlgmr.msra.gmra.mrb[22].mxu1 %vm619_vm13, %v1778_v13  ;;  %v6508_v13 = vld [vmem:[%s8953_s4 + $0x3] ss:$0 sm:$0xff] }
 0x954   :  { %7126 = vmatmul.mubr.msk.f32.vlgmr.msra.gmra.mrb[14].mxu0 %vm619_vm13, %v1773_v14  ;;  %7139 = vmatpush3.msra.mxu1 %v1954_v15 }
 0x955   :  { %7134 = vmatpush3.msra.mxu0 %v1949_v16  ;;  %7140 = vmatprep.mubr.msk.f32.mxu1 %vm7908_vm12, %v7907_v11 }
 0x956   :  { %7135 = vmatprep.mubr.msk.f32.mxu0 %vm7908_vm12, %v7907_v11  ;;  %7582 = vmatprep.subr.bf16.mxu1 %v7581_v34 }
 0x957   :  { %7143 = vmatprep.subr.mxu0 %v6500_v35 }
 0xa26   :  { %v2105_v17 = vpop.f32.mrb[22].mxu1 }
 0xa27   :  { %v2110_v46 = vmul.f32 0.35355338, %v2105_v17  ;;  %v2029_v18 = vpop.f32.mrb[14].mxu0  ;;  %v7132_v19 = vpop.f32.mrb[23].mxu1 }
 0xa28   :  { %v2109_v20 = vmul.f32 0.35355338, %v2029_v18  ;;  %v7127_v21 = vpop.f32.mrb[15].mxu0 }
 0xa29   :  { %v2114_v23 = vsel %vm619_vm13, %v2110_v46, -inf }
 0xa2a   :  { %2115 = vmax.xlane.f32.xlu0 %v2114_v23  ;;  %v2111_v24 = vsel %vm619_vm13, %v2109_v20, -inf }
 0xa2b   :  { %2112 = vmax.xlane.f32.xlu1 %v2111_v24 }
 0xab7   :  { %v2116_v22 = vpop.xlane.xlu0 %2115 }
 0xab8   :  { %v2118_v25 = vsub.f32 %v2110_v46, %v2116_v22  ;;  %v2113_v4 = vpop.xlane.xlu1 %2112 }
 0xab9   :  { %v2117_v26 = vsub.f32 %v2109_v20, %v2113_v4 }
 0xaba   :  { %v2121_v27 = vmul.f32 1.442695, %v2118_v25 }
 0xabb   :  { %v2119_v28 = vmul.f32 1.442695, %v2117_v26 }
 0xabc   :  { %7813 = vpow2.f32 %v2121_v27 }
 0xabd   :  { %7815 = vpow2.f32 %v2119_v28 }
 0xac6   :  { %v7814_v51 = vpop.eup %7813 }
 0xac7   :  { %v7816_v29 = vpop.eup %7815  ;;  %v2126_v30 = vsel %vm619_vm13, %v7814_v51, 0.0 }
 0xac8   :  { %2127 = vadd.xlane.f32.xlu0 %v2126_v30  ;;  %v2123_v31 = vsel %vm619_vm13, %v7816_v29, 0.0 }
 0xac9   :  { %2124 = vadd.xlane.f32.xlu1 %v2123_v31 }
 0xb55   :  { %v2128_v36 = vpop.xlane.xlu0 %2127 }
 0xb56   :  { %7817 = vrcp.f32 %v2128_v36  ;;  %v2125_v38 = vpop.xlane.xlu1 %2124 }
 0xb57   :  { %7819 = vrcp.f32 %v2125_v38 }
 0xb60   :  { %v7818_v41 = vpop.eup %7817 }
 0xb61   :  { %v7820_v42 = vpop.eup %7819  ;;  %v2132_v43 = vmul.f32 %v7818_v41, %v7814_v51 }
 0xb62   :  { %v2131_v50 = vmul.f32 %v7820_v42, %v7816_v29 }
 0xb63   :  { %7141 = vmatmul.mubr.msk.f32.vlgmr.msra.gmra.mrb[24].mxu1 %vm619_vm13, %v2132_v43 }
 0xb64   :  { %7584 = vmatpush3.bf16.msra.mxu1 %v7581_v34  ;;  %7136 = vmatmul.mubr.msk.f32.vlgmr.msra.gmra.mrb[16].mxu0 %vm619_vm13, %v2131_v50  ;;  %v6536_v50 = vld [vmem:[%s8951_s2 + $0x5] ss:$0 sm:$0xff] }
 0xb65   :  { %7156 = vmatprep.mubr.msk.f32.mxu1 %vm361_vm11, %v8111_v48  ;;  %7586 = vmatprep.subr.bf16.mxu1 %v7585_v47 }
 0xb66   :  { %7144 = vmatpush3.msra.mxu0 %v6500_v35 }
 0xb67   :  { %7590 = vmatprep.subr.bf16.mxu0 %v7589_v60 }
 0xb68   :  { %7588 = vmatpush3.bf16.msra.mxu1 %v7585_v47 }
 0xb69   :  { %7598 = vmatprep.subr.bf16.mxu1 %v7597_v54 }
 0xb6b   :  { %7157 = vmatmul.mubr.msk.f32.vlgmr.msra.gmra.mrb[26].mxu1 %vm361_vm11, %v8109_v44 }
 0xb6c   :  { %7600 = vmatpush3.bf16.msra.mxu1 %v7597_v54  ;;  %7178 = vmatprep.mubr.msk.f32.mxu1 %vm361_vm11, %v8111_v48 }
 0xb6d   :  { %7602 = vmatprep.subr.bf16.mxu1 %v7601_v57 }
 0xb70   :  { %7604 = vmatpush3.bf16.msra.mxu1 %v7601_v57 }
 0xb71   :  { %7191 = vmatprep.subr.mxu1 %v7907_v11 }
 0xb73   :  { %7179 = vmatmul.mubr.msk.f32.vlgmr.msra.gmra.mrb[28].mxu1 %vm361_vm11, %v8109_v44 }
 0xb74   :  { %7193 = vmatprep.mubr.msk.f32.mxu1 %vm7908_vm12, %v7907_v11 }
 0xc36   :  { %v2275_v1 = vpop.f32.mrb[24].mxu1 }
 0xc37   :  { %v2202_v49 = vpop.f32.mrb[16].mxu0  ;;  %v7142_v45 = vpop.f32.mrb[25].mxu1 }
 0xc38   :  { %v7137_v6 = vpop.f32.mrb[17].mxu0  ;;  %7145 = vmatprep.mubr.msk.f32.mxu0 %vm619_vm13, %v2202_v49 }
 0xc39   :  { %7146 = vmatmul.mubr.msk.f32.vlgmr.msra.gmra.mrb[10].mxu0 %vm619_vm13, %v2275_v1 }
 0xc3a   :  { %7592 = vmatpush3.bf16.msra.mxu0 %v7589_v60  ;;  %7167 = vmatprep.mubr.msk.f32.mxu0 %vm361_vm11, %v8111_v48 }
 0xc3b   :  { %7594 = vmatprep.subr.bf16.mxu0 %v7593_v3 }
 0xc3e   :  { %v7158_v8 = vpop.f32.mrb[26].mxu1  ;;  %7596 = vmatpush3.bf16.msra.mxu0 %v7593_v3 }
 0xc3f   :  { %v2443_v7 = vpop.f32.mrb[27].mxu1  ;;  %7181 = vmatprep.subr.mxu0 %v7907_v11  ;;  %v2449_v17 = vadd.f32 %v7158_v8, %v6508_v13 }
 0xc40   :  { %v2444_v15 = vadd.f32 %v6508_v13, %v2443_v7  ;;  %v3083_v7 = vld [vmem:[%s8955_s6 + $0x8] sm:$0xff]  ;;  %v3179_v13 = vld [vmem:[%s8957_s8 + $0x18] sm:$0xff] }
 0xc41   :  { %7168 = vmatmul.mubr.msk.f32.vlgmr.msra.gmra.mrb[18].mxu0 %vm361_vm11, %v8109_v44 }
 0xc42   :  { %7183 = vmatprep.mubr.msk.f32.mxu0 %vm7908_vm12, %v7907_v11 }
 0xc46   :  { %v7180_v0 = vpop.f32.mrb[28].mxu1 }
 0xc47   :  { %v2625_v9 = vadd.f32 %v7180_v0, %v6524_v37  ;;  %v2619_v63 = vpop.f32.mrb[29].mxu1  ;;  %v3084_v0 = vld [vmem:[%s8955_s6 + $0x10] sm:$0xff] }
 0xc48   :  { %v2620_v2 = vadd.f32 %v6524_v37, %v2619_v63 }
 0xc4a   :  { %7192 = vmatpush3.msra.mxu1 %v2620_v2  ;;  %v3176_v2 = vld [vmem:[%s8957_s8] sm:$0xff] }
 0xd14   :  { %v7169_v5 = vpop.f32.mrb[18].mxu0 }
 0xd15   :  { %v2531_v12 = vpop.f32.mrb[19].mxu0  ;;  %v2537_v16 = vadd.f32 %v7169_v5, %v6516_v10  ;;  %v3178_v5 = vld [vmem:[%s8957_s8 + $0x10] sm:$0xff] }
 0xd16   :  { %v2532_v14 = vadd.f32 %v6516_v10, %v2531_v12  ;;  %v3177_v10 = vld [vmem:[%s8957_s8 + $0x8] sm:$0xff] }
 0xd17   :  { %v7613_v12 = vpack.c.bf16 %v3177_v10, %v3176_v2  ;;  %v6565_v2 = vld [vmem:[%s8952_s3 + $0x290] sm:$0xff]  ;;  %v6566_v10 = vld [vmem:[%s8952_s3 + $0x298] sm:$0xff] }
 0xd18   :  { %7182 = vmatpush3.xpose.msk.msra.mxu0 %vm619_vm13, %v2532_v14  ;;  %v7617_v14 = vpack.c.bf16 %v3179_v13, %v3178_v5  ;;  %v7649_v5 = vpack.c.bf16 %v6566_v10, %v6565_v2  ;;  %v6556_v13 = vld [vmem:[%s8952_s3 + $0x188] sm:$0xff] }
 0xd19   :  { %7186 = vmatprep.subr.mxu0 %v7907_v11 }
 0xd1b   :  { %7184 = vmatmul.mubr.msk.f32.vlgmr.msra.gmra.mrb[20].mxu0 %vm619_vm13, %v2444_v15  ;;  %v3180_v15 = vld [vmem:[%s8957_s8 + $0x20] sm:$0xff] }
 0xd1c   :  { %7187 = vmatpush3.xpose.msk.msra.mxu0 %vm619_vm13, %v2537_v16  ;;  %7188 = vmatprep.mubr.msk.f32.mxu0 %vm7908_vm12, %v7907_v11  ;;  %v3181_v16 = vld [vmem:[%s8957_s8 + $0x28] sm:$0xff] }
 0xd1d   :  { %7196 = vmatprep.subr.mxu0 %v7907_v11 }
 0xd1f   :  { %7189 = vmatmul.mubr.msk.f32.vlgmr.msra.gmra.mrb[22].mxu0 %vm619_vm13, %v2449_v17  ;;  %v7621_v17 = vpack.c.bf16 %v3181_v16, %v3180_v15 }
 0xd20   :  { %7197 = vmatpush3.msra.mxu0 %v2625_v9  ;;  %7198 = vmatprep.mubr.msk.f32.mxu0 %vm7908_vm12, %v7907_v11  ;;  %v3085_v9 = vld [vmem:[%s8955_s6 + $0x18] sm:$0xff] }
 0xd21   :  { %7201 = vmatprep.subr.mxu0 %v6533_v40  ;;  %v7609_v63 = vpack.c.bf16 %v3085_v9, %v3084_v0  ;;  %v6549_v0 = vld [vmem:[%s8952_s3 + $0x90] sm:$0xff]  ;;  %v6550_v9 = vld [vmem:[%s8952_s3 + $0x98] sm:$0xff] }
 0xdee   :  { %v2700_v46 = vpop.f32.mrb[20].mxu0 }
 0xdef   :  { %v2780_v18 = vmul.f32 0.35355338, %v2700_v46  ;;  %v7185_v19 = vpop.f32.mrb[21].mxu0 }
 0xdf1   :  { %v2782_v20 = vsel %vm619_vm13, %v2780_v18, -inf }
 0xdf2   :  { %2783 = vmax.xlane.f32.xlu1 %v2782_v20  ;;  %v2776_v21 = vpop.f32.mrb[22].mxu0 }
 0xdf3   :  { %v2781_v23 = vmul.f32 0.35355338, %v2776_v21  ;;  %v7190_v24 = vpop.f32.mrb[23].mxu0 }
 0xdf5   :  { %v2785_v22 = vsel %vm619_vm13, %v2781_v23, -inf }
 0xdf6   :  { %2786 = vmax.xlane.f32.xlu0 %v2785_v22  ;;  %v6537_v22 = vld [vmem:[%s8951_s2 + $0x6] ss:$0 sm:$0xff] }
 0xe7f   :  { %v2784_v25 = vpop.xlane.xlu1 %2783 }
 0xe80   :  { %v2788_v4 = vsub.f32 %v2780_v18, %v2784_v25 }
 0xe82   :  { %v2790_v26 = vmul.f32 1.442695, %v2788_v4 }
 0xe83   :  { %v2787_v27 = vpop.xlane.xlu0 %2786 }
 0xe84   :  { %7821 = vpow2.f32 %v2790_v26  ;;  %v2789_v28 = vsub.f32 %v2781_v23, %v2787_v27  ;;  %v6538_v27 = vld [vmem:[%s8951_s2 + $0x7] ss:$0 sm:$0xff] }
 0xe86   :  { %v2792_v51 = vmul.f32 1.442695, %v2789_v28 }
 0xe88   :  { %7823 = vpow2.f32 %v2792_v51 }
 0xe8e   :  { %v7822_v29 = vpop.eup %7821 }
 0xe8f   :  { %v2794_v30 = vsel %vm619_vm13, %v7822_v29, 0.0 }
 0xe90   :  { %2795 = vadd.xlane.f32.xlu1 %v2794_v30 }
 0xe92   :  { %v7824_v31 = vpop.eup %7823 }
 0xe93   :  { %v2797_v32 = vsel %vm619_vm13, %v7824_v31, 0.0 }
 0xe94   :  { %2798 = vadd.xlane.f32.xlu0 %v2797_v32  ;;  %v3183_v32 = vld [vmem:[%s8957_s8 + $0x38] sm:$0xff] }
 0xf1d   :  { %v2796_v33 = vpop.xlane.xlu1 %2795 }
 0xf1e   :  { %7825 = vrcp.f32 %v2796_v33 }
 0xf21   :  { %v2799_v34 = vpop.xlane.xlu0 %2798 }
 0xf22   :  { %7827 = vrcp.f32 %v2799_v34  ;;  %v6539_v34 = vld [vmem:[%s8956_s7] ss:$0 sm:$0xff] }
 0xf28   :  { %v7826_v35 = vpop.eup %7825 }
 0xf29   :  { %v2802_v36 = vmul.f32 %v7826_v35, %v7822_v29 }
 0xf2b   :  { %7194 = vmatmul.mubr.msk.f32.vlgmr.msra.gmra.mrb[30].mxu1 %vm619_vm13, %v2802_v36 }
 0xf2c   :  { %v7828_v38 = vpop.eup %7827 }
 0xf2d   :  { %v2803_v39 = vmul.f32 %v7828_v38, %v7824_v31  ;;  %v3182_v31 = vld [vmem:[%s8957_s8 + $0x30] sm:$0xff] }
 0xf2e   :  { %v7625_v33 = vpack.c.bf16 %v3183_v32, %v3182_v31  ;;  %v6568_v31 = vld [vmem:[%s8953_s4 + $0x14] ss:$0 sm:$0xff] }
 0xf2f   :  { %7199 = vmatmul.mubr.msk.f32.vlgmr.msra.gmra.mrb[24].mxu0 %vm619_vm13, %v2803_v39 }
 0xf30   :  { %7202 = vmatpush3.msra.mxu0 %v6533_v40 }
 0xf31   :  { %7614 = vmatprep.subr.bf16.mxu0 %v7613_v12 }
 0xffe   :  { %v2873_v41 = vpop.f32.mrb[30].mxu1 }
 0xfff   :  { %v7195_v42 = vpop.f32.mrb[31].mxu1  ;;  %7203 = vmatprep.mubr.msk.f32.mxu0 %vm619_vm13, %v2873_v41 }
0x1000   :  { %v6542_v42 = vld [vmem:[%s8951_s2 + $0x8] ss:$0 sm:$0xff] }
0x1002   :  { %v2946_v43 = vpop.f32.mrb[24].mxu0 }
0x1003   :  { %v7200_v47 = vpop.f32.mrb[25].mxu0  ;;  %7204 = vmatmul.mubr.msk.f32.vlgmr.msra.gmra.mrb[10].mxu0 %vm619_vm13, %v2946_v43 }
0x1004   :  { %7616 = vmatpush3.bf16.msra.mxu0 %v7613_v12  ;;  %v6555_v12 = vld [vmem:[%s8952_s3 + $0x180] sm:$0xff] }
0x1005   :  { %7618 = vmatprep.subr.bf16.mxu0 %v7617_v14 }
0x1008   :  { %7620 = vmatpush3.bf16.msra.mxu0 %v7617_v14  ;;  %v7637_v14 = vpack.c.bf16 %v6556_v13, %v6555_v12  ;;  %v6580_v12 = vld [vmem:[%s8952_s3 + $0xb0] sm:$0xff]  ;;  %v6581_v13 = vld [vmem:[%s8952_s3 + $0xb8] sm:$0xff] }
0x1009   :  { %7622 = vmatprep.subr.bf16.mxu0 %v7621_v17 }
0x100c   :  { %7624 = vmatpush3.bf16.msra.mxu0 %v7621_v17 }
0x100d   :  { %7626 = vmatprep.subr.bf16.mxu0 %v7625_v33 }
0x1010   :  { %7628 = vmatpush3.bf16.msra.mxu0 %v7625_v33 }
0x10d6   :  { %v7205_v52 = vpop.f32.mrb[10].mxu0 }
0x10d7   :  { %v3040_v53 = vadd.f32 %v7205_v52, %v6536_v50  ;;  %v3024_v54 = vpop.f32.mrb[11].mxu0 }
0x10d8   :  { %v3039_v55 = vadd.f32 %v6536_v50, %v3024_v54 }
0x10d9   :  { %v3042_v56 = vadd.f32 %v3040_v53, %v8109_v44 }
0x10da   :  { %v3041_v57 = vadd.f32 %v3039_v55, %v8111_v48  ;;  %v3082_v48 = vld [vmem:[%s8955_s6] sm:$0xff] }
0x10db   :  { %v3046_v58 = vsel %vm361_vm11, %v3042_v56, 0.0  ;;  %v7605_v37 = vpack.c.bf16 %v3083_v7, %v3082_v48  ;;  %v6563_v48 = vld [vmem:[%s8952_s3 + $0x280] sm:$0xff]  ;;  %v6564_v7 = vld [vmem:[%s8952_s3 + $0x288] sm:$0xff] }
0x10dc   :  { %3047 = vadd.xlane.f32.xlu0 %v3046_v58  ;;  %v3043_v59 = vsel %vm361_vm11, %v3041_v57, 0.0 }
0x10dd   :  { %3044 = vadd.xlane.f32.xlu1 %v3043_v59  ;;  %7606 = vmatprep.subr.bf16.mxu1 %v7605_v37 }
0x10de   :  { %7608 = vmatpush3.bf16.msra.mxu1 %v7605_v37  ;;  %v7645_v37 = vpack.c.bf16 %v6564_v7, %v6563_v48  ;;  %v6578_v7 = vld [vmem:[%s8952_s3 + $0xa0] sm:$0xff] }
0x10df   :  { %7610 = vmatprep.subr.bf16.mxu1 %v7609_v63 }
0x10e0   :  { %7646 = vmatprep.subr.bf16.mxu0 %v7645_v37 }
0x10e2   :  { %7612 = vmatpush3.bf16.msra.mxu1 %v7609_v63  ;;  %v7633_v63 = vpack.c.bf16 %v6550_v9, %v6549_v0  ;;  %v6586_v9 = vld [vmem:[%s8952_s3 + $0x1a0] sm:$0xff] }
0x1169   :  { %v3048_v60 = vpop.xlane.xlu0 %3047 }
0x116a   :  { %v3051_v61 = vmul.f32 0.03125, %v3048_v60  ;;  %v3045_v62 = vpop.xlane.xlu1 %3044 }
0x116b   :  { %v3050_v1 = vmul.f32 0.03125, %v3045_v62 }
0x116c   :  { %v3053_v49 = vsub.f32 %v3042_v56, %v3051_v61 }
0x116d   :  { %v3052_v45 = vsub.f32 %v3041_v57, %v3050_v1 }
0x116e   :  { %v3055_v3 = vmul.f32 %v3053_v49, %v3053_v49 }
0x116f   :  { %v3054_v6 = vmul.f32 %v3052_v45, %v3052_v45 }
0x1170   :  { %v3059_v8 = vsel %vm361_vm11, %v3055_v3, 0.0 }
0x1171   :  { %3060 = vadd.xlane.f32.xlu0 %v3059_v8  ;;  %v3056_v44 = vsel %vm361_vm11, %v3054_v6, 0.0  ;;  %v6547_v6 = vld [vmem:[%s8952_s3 + $0x80] sm:$0xff]  ;;  %v6548_v8 = vld [vmem:[%s8952_s3 + $0x88] sm:$0xff] }
0x1172   :  { %3057 = vadd.xlane.f32.xlu1 %v3056_v44  ;;  %v7629_v44 = vpack.c.bf16 %v6548_v8, %v6547_v6 }
0x1174   :  { %7630 = vmatprep.subr.bf16.mxu1 %v7629_v44 }
0x11fe   :  { %v3061_v46 = vpop.xlane.xlu0 %3060 }
0x11ff   :  { %v3063_v18 = vmul.f32 0.03125, %v3061_v46  ;;  %v3058_v19 = vpop.xlane.xlu1 %3057 }
0x1200   :  { %v3062_v20 = vmul.f32 0.03125, %v3058_v19 }
0x1201   :  { %v3065_v21 = vadd.f32 1e-05, %v3063_v18 }
0x1202   :  { %v3064_v23 = vadd.f32 1e-05, %v3062_v20 }
0x1203   :  { %7829 = vrsqrt.f32 %v3065_v21  ;;  %v6545_v21 = vld [vmem:[%s8951_s2 + $0x9] ss:$0 sm:$0xff] }
0x1204   :  { %7831 = vrsqrt.f32 %v3064_v23 }
0x120d   :  { %v7830_v24 = vpop.eup %7829 }
0x120e   :  { %v7832_v25 = vpop.eup %7831  ;;  %v3069_v4 = vmul.f32 %v7830_v24, %v3053_v49 }
0x120f   :  { %v3068_v26 = vmul.f32 %v7832_v25, %v3052_v45  ;;  %v6546_v25 = vld [vmem:[%s8951_s2 + $0xa] ss:$0 sm:$0xff] }
0x1210   :  { %v3075_v28 = vmul.f32 %v6537_v22, %v3069_v4 }
0x1211   :  { %v3074_v51 = vmul.f32 %v6537_v22, %v3068_v26 }
0x1212   :  { %v3081_v30 = vadd.f32 %v6538_v27, %v3075_v28  ;;  %v6558_v28 = vld [vmem:[%s8952_s3 + $0x198] sm:$0xff] }
0x1213   :  { %v3080_v29 = vadd.f32 %v6538_v27, %v3074_v51  ;;  %v6557_v27 = vld [vmem:[%s8952_s3 + $0x190] sm:$0xff] }
0x1215   :  { %7214 = vmatprep.mubr.msk.f32.mxu1 %vm361_vm11, %v3080_v29 }
0x1216   :  { %7215 = vmatmul.mubr.msk.f32.vlgmr.msra.gmra.mrb[32].mxu1 %vm361_vm11, %v3081_v30 }
0x1217   :  { %7632 = vmatpush3.bf16.msra.mxu1 %v7629_v44 }
0x1218   :  { %7634 = vmatprep.subr.bf16.mxu1 %v7633_v63 }
0x121b   :  { %7636 = vmatpush3.bf16.msra.mxu1 %v7633_v63  ;;  %v6587_v63 = vld [vmem:[%s8952_s3 + $0x1a8] sm:$0xff] }
0x121c   :  { %7638 = vmatprep.subr.bf16.mxu1 %v7637_v14  ;;  %v7661_v2 = vpack.c.bf16 %v6587_v63, %v6586_v9 }
0x12e9   :  { %v7216_v35 = vpop.f32.mrb[32].mxu1 }
0x12ea   :  { %v3171_v36 = vadd.f32 %v7216_v35, %v6539_v34  ;;  %v3165_v38 = vpop.f32.mrb[33].mxu1 }
0x12eb   :  { %v3166_v39 = vadd.f32 %v6539_v34, %v3165_v38  ;;  %v6560_v38 = vld [vmem:[%s8953_s4 + $0xc] ss:$0 sm:$0xff] }
0x12ec   :  { %v3175_v41 = vmax.f32 %v3171_v36, 0.0 }
0x12ed   :  { %v3174_v40 = vmax.f32 %v3166_v39, 0.0 }
0x12ef   :  { %7233 = vmatprep.mubr.msk.f32.mxu0 %vm3188_vm14, %v3174_v40 }
0x12f0   :  { %7234 = vmatmul.mubr.msk.f32.vlgmr.msra.gmra.mrb[26].mxu0 %vm3188_vm14, %v3175_v41  ;;  %v6552_v41 = vld [vmem:[%s8953_s4 + $0x4] ss:$0 sm:$0xff] }
0x12f1   :  { %7648 = vmatpush3.bf16.msra.mxu0 %v7645_v37  ;;  %v6579_v37 = vld [vmem:[%s8952_s3 + $0xa8] sm:$0xff] }
0x12f2   :  { %7650 = vmatprep.subr.bf16.mxu0 %v7649_v5  ;;  %v7653_v0 = vpack.c.bf16 %v6579_v37, %v6578_v7  ;;  %v6613_v7 = vld [vmem:[%s8952_s3 + $0xc0] sm:$0xff]  ;;  %v6614_v37 = vld [vmem:[%s8952_s3 + $0xc8] sm:$0xff] }
0x12f5   :  { %7652 = vmatpush3.bf16.msra.mxu0 %v7649_v5 }
0x12f6   :  { %7279 = vmatprep.subr.mxu0 %v7907_v11 }
0x13c3   :  { %v7235_v43 = vpop.f32.mrb[26].mxu0 }
0x13c4   :  { %v3267_v47 = vadd.f32 %v7235_v43, %v6542_v42  ;;  %v3261_v50 = vpop.f32.mrb[27].mxu0 }
0x13c5   :  { %v3262_v52 = vadd.f32 %v6542_v42, %v3261_v50 }
0x13c6   :  { %v3271_v53 = vadd.f32 %v3267_v47, %v3081_v30  ;;  %v7641_v30 = vpack.c.bf16 %v6558_v28, %v6557_v27 }
0x13c7   :  { %v3270_v54 = vadd.f32 %v3262_v52, %v3080_v29 }
0x13c8   :  { %v3275_v55 = vsel %vm361_vm11, %v3271_v53, 0.0 }
0x13c9   :  { %3276 = vadd.xlane.f32.xlu0 %v3275_v55  ;;  %v3272_v56 = vsel %vm361_vm11, %v3270_v54, 0.0 }
0x13ca   :  { %3273 = vadd.xlane.f32.xlu1 %v3272_v56 }
0x1456   :  { %v3277_v57 = vpop.xlane.xlu0 %3276 }
0x1457   :  { %v3279_v58 = vmul.f32 0.03125, %v3277_v57  ;;  %v3274_v59 = vpop.xlane.xlu1 %3273 }
0x1458   :  { %v3278_v60 = vmul.f32 0.03125, %v3274_v59 }
0x1459   :  { %v3281_v61 = vsub.f32 %v3271_v53, %v3279_v58 }
0x145a   :  { %v3280_v62 = vsub.f32 %v3270_v54, %v3278_v60 }
0x145b   :  { %v3283_v1 = vmul.f32 %v3281_v61, %v3281_v61 }
0x145c   :  { %v3282_v49 = vmul.f32 %v3280_v62, %v3280_v62 }
0x145d   :  { %v3287_v45 = vsel %vm361_vm11, %v3283_v1, 0.0 }
0x145e   :  { %3288 = vadd.xlane.f32.xlu0 %v3287_v45  ;;  %v3284_v3 = vsel %vm361_vm11, %v3282_v49, 0.0 }
0x145f   :  { %3285 = vadd.xlane.f32.xlu1 %v3284_v3 }
0x14eb   :  { %v3289_v15 = vpop.xlane.xlu0 %3288 }
0x14ec   :  { %v3291_v16 = vmul.f32 0.03125, %v3289_v15  ;;  %v3286_v17 = vpop.xlane.xlu1 %3285 }
0x14ed   :  { %v3290_v46 = vmul.f32 0.03125, %v3286_v17  ;;  %v6588_v17 = vld [vmem:[%s8952_s3 + $0x1b0] sm:$0xff] }
0x14ee   :  { %v3293_v18 = vadd.f32 1e-05, %v3291_v16  ;;  %v7657_v16 = vpack.c.bf16 %v6581_v13, %v6580_v12  ;;  %v6616_v12 = vld [vmem:[%s8952_s3 + $0xd8] sm:$0xff] }
0x14ef   :  { %v3292_v19 = vadd.f32 1e-05, %v3290_v46  ;;  %v6589_v46 = vld [vmem:[%s8952_s3 + $0x1b8] sm:$0xff] }
0x14f0   :  { %7833 = vrsqrt.f32 %v3293_v18  ;;  %v6594_v18 = vld [vmem:[%s8952_s3 + $0x2a0] sm:$0xff] }
0x14f1   :  { %7835 = vrsqrt.f32 %v3292_v19  ;;  %v6595_v19 = vld [vmem:[%s8952_s3 + $0x2a8] sm:$0xff] }
0x14fa   :  { %v7834_v20 = vpop.eup %7833 }
0x14fb   :  { %v7836_v23 = vpop.eup %7835  ;;  %v3297_v24 = vmul.f32 %v7834_v20, %v3281_v61 }
0x14fc   :  { %v3296_v22 = vmul.f32 %v7836_v23, %v3280_v62  ;;  %v7665_v23 = vpack.c.bf16 %v6589_v46, %v6588_v17  ;;  %v6630_v17 = vld [vmem:[%s8952_s3 + $0x2c8] sm:$0xff] }
0x14fd   :  { %v3303_v4 = vmul.f32 %v6545_v21, %v3297_v24  ;;  %v7669_v24 = vpack.c.bf16 %v6595_v19, %v6594_v18  ;;  %v6631_v18 = vld [vmem:[%s8952_s3 + $0x2d0] sm:$0xff]  ;;  %v6632_v19 = vld [vmem:[%s8952_s3 + $0x2d8] sm:$0xff] }
0x14fe   :  { %v3302_v26 = vmul.f32 %v6545_v21, %v3296_v22  ;;  %v6596_v22 = vld [vmem:[%s8952_s3 + $0x2b0] sm:$0xff] }
0x14ff   :  { %v8539_v29 = vadd.f32 %v6546_v25, %v3303_v4 }
0x1500   :  { %v8537_v51 = vadd.f32 %v6546_v25, %v3302_v26  ;;  %v6597_v25 = vld [vmem:[%s8952_s3 + $0x2b8] sm:$0xff] }
0x1501   :  { %v7673_v4 = vpack.c.bf16 %v6597_v25, %v6596_v22  ;;  %v6621_v22 = vld [vmem:[%s8952_s3 + $0x1c0] sm:$0xff]  ;;  %v6622_v25 = vld [vmem:[%s8952_s3 + $0x1c8] sm:$0xff] }
0x1502   :  { %7244 = vmatprep.mubr.msk.f32.mxu1 %vm361_vm11, %v8537_v51  ;;  %7266 = vmatprep.mubr.msk.f32.mxu0 %vm361_vm11, %v8537_v51 }
0x1503   :  { %7245 = vmatmul.mubr.msk.f32.vlgmr.msra.gmra.mrb[34].mxu1 %vm361_vm11, %v8539_v29  ;;  %7267 = vmatmul.mubr.msk.f32.vlgmr.msra.gmra.mrb[28].mxu0 %vm361_vm11, %v8539_v29 }
0x1504   :  { %7640 = vmatpush3.bf16.msra.mxu1 %v7637_v14  ;;  %7255 = vmatprep.mubr.msk.f32.mxu1 %vm361_vm11, %v8537_v51 }
0x1505   :  { %7642 = vmatprep.subr.bf16.mxu1 %v7641_v30  ;;  %7281 = vmatprep.mubr.msk.f32.mxu0 %vm7908_vm12, %v7907_v11 }
0x1508   :  { %7644 = vmatpush3.bf16.msra.mxu1 %v7641_v30 }
0x1509   :  { %7269 = vmatprep.subr.mxu1 %v7907_v11 }
0x150b   :  { %7256 = vmatmul.mubr.msk.f32.vlgmr.msra.gmra.mrb[36].mxu1 %vm361_vm11, %v8539_v29 }
0x150c   :  { %7271 = vmatprep.mubr.msk.f32.mxu1 %vm7908_vm12, %v7907_v11 }
0x15d6   :  { %v7246_v32 = vpop.f32.mrb[34].mxu1  ;;  %v7268_v33 = vpop.f32.mrb[28].mxu0 }
0x15d7   :  { %v3401_v34 = vpop.f32.mrb[35].mxu1  ;;  %v3577_v35 = vpop.f32.mrb[29].mxu0  ;;  %v3407_v50 = vadd.f32 %v7246_v32, %v6552_v41  ;;  %v3583_v52 = vadd.f32 %v7268_v33, %v6568_v31  ;;  %v6591_v33 = vld [vmem:[%s8953_s4 + $0xd] ss:$0 sm:$0xff] }
0x15d8   :  { %v3578_v36 = vadd.f32 %v6568_v31, %v3577_v35  ;;  %v3402_v43 = vadd.f32 %v6552_v41, %v3401_v34 }
0x15da   :  { %7280 = vmatpush3.msra.mxu0 %v3578_v36  ;;  %v6583_v36 = vld [vmem:[%s8953_s4 + $0x5] ss:$0 sm:$0xff] }
0x15db   :  { %7654 = vmatprep.subr.bf16.mxu0 %v7653_v0 }
0x15de   :  { %v7257_v39 = vpop.f32.mrb[36].mxu1 }
0x15df   :  { %v3489_v40 = vpop.f32.mrb[37].mxu1  ;;  %v3495_v47 = vadd.f32 %v7257_v39, %v6560_v38  ;;  %v6599_v39 = vld [vmem:[%s8953_s4 + $0x15] ss:$0 sm:$0xff] }
0x15e0   :  { %v3490_v42 = vadd.f32 %v6560_v38, %v3489_v40 }
0x15e2   :  { %7270 = vmatpush3.xpose.msk.msra.mxu1 %vm619_vm13, %v3490_v42 }
0x15e3   :  { %7274 = vmatprep.subr.mxu1 %v7907_v11 }
0x15e5   :  { %7272 = vmatmul.mubr.msk.f32.vlgmr.msra.gmra.mrb[38].mxu1 %vm619_vm13, %v3402_v43 }
0x15e6   :  { %7275 = vmatpush3.xpose.msk.msra.mxu1 %vm619_vm13, %v3495_v47  ;;  %7276 = vmatprep.mubr.msk.f32.mxu1 %vm7908_vm12, %v7907_v11 }
0x15e7   :  { %7284 = vmatprep.subr.mxu1 %v7907_v11 }
0x15e9   :  { %7277 = vmatmul.mubr.msk.f32.vlgmr.msra.gmra.mrb[40].mxu1 %vm619_vm13, %v3407_v50 }
0x15ea   :  { %7285 = vmatpush3.msra.mxu1 %v3583_v52  ;;  %7286 = vmatprep.mubr.msk.f32.mxu1 %vm7908_vm12, %v7907_v11 }
0x15eb   :  { %7662 = vmatprep.subr.bf16.mxu1 %v7661_v2 }
0x16b8   :  { %v3658_v53 = vpop.f32.mrb[38].mxu1 }
0x16b9   :  { %v3738_v54 = vmul.f32 0.35355338, %v3658_v53  ;;  %v7273_v55 = vpop.f32.mrb[39].mxu1 }
0x16bb   :  { %v3740_v56 = vsel %vm619_vm13, %v3738_v54, -inf }
0x16bc   :  { %3741 = vmax.xlane.f32.xlu0 %v3740_v56  ;;  %v3734_v57 = vpop.f32.mrb[40].mxu1 }
0x16bd   :  { %v3739_v58 = vmul.f32 0.35355338, %v3734_v57  ;;  %v7278_v59 = vpop.f32.mrb[41].mxu1 }
0x16bf   :  { %v3743_v60 = vsel %vm619_vm13, %v3739_v58, -inf }
0x16c0   :  { %3744 = vmax.xlane.f32.xlu1 %v3743_v60 }
0x1749   :  { %v3742_v61 = vpop.xlane.xlu0 %3741 }
0x174a   :  { %v3746_v62 = vsub.f32 %v3738_v54, %v3742_v61 }
0x174c   :  { %v3748_v1 = vmul.f32 1.442695, %v3746_v62 }
0x174d   :  { %v3745_v49 = vpop.xlane.xlu1 %3744 }
0x174e   :  { %7837 = vpow2.f32 %v3748_v1  ;;  %v3747_v45 = vsub.f32 %v3739_v58, %v3745_v49 }
0x1750   :  { %v3750_v3 = vmul.f32 1.442695, %v3747_v45 }
0x1752   :  { %7839 = vpow2.f32 %v3750_v3 }
0x1758   :  { %v7838_v6 = vpop.eup %7837 }
0x1759   :  { %v3752_v8 = vsel %vm619_vm13, %v7838_v6, 0.0 }
0x175a   :  { %3753 = vadd.xlane.f32.xlu0 %v3752_v8 }
0x175c   :  { %v7840_v44 = vpop.eup %7839 }
0x175d   :  { %v3755_v48 = vsel %vm619_vm13, %v7840_v44, 0.0 }
0x175e   :  { %3756 = vadd.xlane.f32.xlu1 %v3755_v48 }
0x17e7   :  { %v3754_v10 = vpop.xlane.xlu0 %3753 }
0x17e8   :  { %7841 = vrcp.f32 %v3754_v10 }
0x17eb   :  { %v3757_v5 = vpop.xlane.xlu1 %3756 }
0x17ec   :  { %7843 = vrcp.f32 %v3757_v5  ;;  %v6615_v5 = vld [vmem:[%s8952_s3 + $0xd0] sm:$0xff] }
0x17f2   :  { %v7842_v14 = vpop.eup %7841 }
0x17f3   :  { %v3760_v15 = vmul.f32 %v7842_v14, %v7838_v6 }
0x17f5   :  { %7282 = vmatmul.mubr.msk.f32.vlgmr.msra.gmra.mrb[30].mxu0 %vm619_vm13, %v3760_v15  ;;  %v7681_v15 = vpack.c.bf16 %v6616_v12, %v6615_v5  ;;  %v6648_v12 = vld [vmem:[%s8952_s3 + $0xf0] sm:$0xff] }
0x17f6   :  { %v7844_v20 = vpop.eup %7843  ;;  %7656 = vmatpush3.bf16.msra.mxu0 %v7653_v0  ;;  %7297 = vmatprep.mubr.msk.f32.mxu0 %vm361_vm11, %v8537_v51  ;;  %v7677_v0 = vpack.c.bf16 %v6614_v37, %v6613_v7 }
0x17f7   :  { %v3761_v21 = vmul.f32 %v7844_v20, %v7840_v44  ;;  %7658 = vmatprep.subr.bf16.mxu0 %v7657_v16  ;;  %v7697_v20 = vpack.c.bf16 %v6632_v19, %v6631_v18  ;;  %v6662_v18 = vld [vmem:[%s8952_s3 + $0x2e0] sm:$0xff]  ;;  %v6663_v19 = vld [vmem:[%s8952_s3 + $0x2e8] sm:$0xff] }
0x17f9   :  { %7287 = vmatmul.mubr.msk.f32.vlgmr.msra.gmra.mrb[42].mxu1 %vm619_vm13, %v3761_v21  ;;  %v6608_v21 = vld [vmem:[%s8954_s5 + $0x28] sm:$0xff] }
0x17fa   :  { %7660 = vmatpush3.bf16.msra.mxu0 %v7657_v16  ;;  %7664 = vmatpush3.bf16.msra.mxu1 %v7661_v2  ;;  %v6629_v16 = vld [vmem:[%s8952_s3 + $0x2c0] sm:$0xff] }
0x17fb   :  { %7308 = vmatprep.mubr.msk.f32.mxu1 %vm361_vm11, %v8537_v51  ;;  %7666 = vmatprep.subr.bf16.mxu1 %v7665_v23  ;;  %v7693_v46 = vpack.c.bf16 %v6630_v17, %v6629_v16 }
0x17fc   :  { %7670 = vmatprep.subr.bf16.mxu0 %v7669_v24 }
0x17fd   :  { %7298 = vmatmul.mubr.msk.f32.vlgmr.msra.gmra.mrb[32].mxu0 %vm361_vm11, %v8539_v29 }
0x17fe   :  { %7668 = vmatpush3.bf16.msra.mxu1 %v7665_v23  ;;  %7672 = vmatpush3.bf16.msra.mxu0 %v7669_v24  ;;  %v6577_v23 = vld [vmem:[%s8954_s5 + $0x20] sm:$0xff] }
0x17ff   :  { %7319 = vmatprep.mubr.msk.f32.mxu0 %vm361_vm11, %v8537_v51  ;;  %7674 = vmatprep.subr.bf16.mxu0 %v7673_v4 }
0x1800   :  { %7322 = vmatprep.subr.mxu1 %v7907_v11 }
0x1801   :  { %7309 = vmatmul.mubr.msk.f32.vlgmr.msra.gmra.mrb[44].mxu1 %vm361_vm11, %v8539_v29 }
0x1802   :  { %7676 = vmatpush3.bf16.msra.mxu0 %v7673_v4  ;;  %7324 = vmatprep.mubr.msk.f32.mxu1 %vm7908_vm12, %v7907_v11 }
0x1803   :  { %7332 = vmatprep.subr.mxu0 %v7907_v11 }
0x1805   :  { %7320 = vmatmul.mubr.msk.f32.vlgmr.msra.gmra.mrb[34].mxu0 %vm361_vm11, %v8539_v29 }
0x1806   :  { %7334 = vmatprep.mubr.msk.f32.mxu0 %vm7908_vm12, %v7907_v11 }
0x18c8   :  { %v8637_v26 = vpop.f32.mrb[30].mxu0 }
0x18c9   :  { %v7283_v27 = vpop.f32.mrb[31].mxu0 }
0x18ca   :  { %v7685_v27 = vpack.c.bf16 %v6622_v25, %v6621_v22  ;;  %v6654_v22 = vld [vmem:[%s8952_s3 + $0x1e0] sm:$0xff]  ;;  %v6655_v25 = vld [vmem:[%s8952_s3 + $0x1e8] sm:$0xff] }
0x18cc   :  { %v8639_v28 = vpop.f32.mrb[42].mxu1 }
0x18cd   :  { %v7288_v30 = vpop.f32.mrb[43].mxu1 }
0x18d0   :  { %v7299_v31 = vpop.f32.mrb[32].mxu0 }
0x18d1   :  { %v3989_v32 = vpop.f32.mrb[33].mxu0  ;;  %v3995_v50 = vadd.f32 %v7299_v31, %v6583_v36 }
0x18d2   :  { %v3990_v41 = vadd.f32 %v6583_v36, %v3989_v32  ;;  %v6623_v32 = vld [vmem:[%s8952_s3 + $0x1d0] sm:$0xff] }
0x18d4   :  { %v7310_v34 = vpop.f32.mrb[44].mxu1 }
0x18d5   :  { %v4077_v35 = vpop.f32.mrb[45].mxu1  ;;  %v4083_v43 = vadd.f32 %v7310_v34, %v6591_v33 }
0x18d6   :  { %v4078_v38 = vadd.f32 %v6591_v33, %v4077_v35  ;;  %v6624_v33 = vld [vmem:[%s8952_s3 + $0x1d8] sm:$0xff] }
0x18d7   :  { %v7689_v34 = vpack.c.bf16 %v6624_v33, %v6623_v32 }
0x18d8   :  { %v7321_v40 = vpop.f32.mrb[34].mxu0  ;;  %7323 = vmatpush3.xpose.msk.msra.mxu1 %vm619_vm13, %v4078_v38 }
0x18d9   :  { %v4165_v42 = vpop.f32.mrb[35].mxu0  ;;  %7327 = vmatprep.subr.mxu1 %v7907_v11  ;;  %v4171_v52 = vadd.f32 %v7321_v40, %v6599_v39  ;;  %v6618_v40 = vld [vmem:[%s8953_s4 + $0x6] ss:$0 sm:$0xff] }
0x18da   :  { %v4166_v47 = vadd.f32 %v6599_v39, %v4165_v42 }
0x18db   :  { %7325 = vmatmul.mubr.msk.f32.vlgmr.msra.gmra.mrb[46].mxu1 %vm619_vm13, %v3990_v41 }
0x18dc   :  { %7328 = vmatpush3.xpose.msk.msra.mxu1 %vm619_vm13, %v4083_v43  ;;  %7333 = vmatpush3.msra.mxu0 %v4166_v47  ;;  %v6634_v43 = vld [vmem:[%s8953_s4 + $0x16] ss:$0 sm:$0xff] }
0x18dd   :  { %7329 = vmatprep.mubr.msk.f32.mxu1 %vm7908_vm12, %v7907_v11  ;;  %7337 = vmatprep.subr.mxu1 %v7907_v11 }
0x18de   :  { %7342 = vmatprep.subr.mxu0 %v6608_v21 }
0x18df   :  { %7330 = vmatmul.mubr.msk.f32.vlgmr.msra.gmra.mrb[48].mxu1 %vm619_vm13, %v3995_v50 }
0x18e0   :  { %7338 = vmatpush3.msra.mxu1 %v4171_v52  ;;  %7339 = vmatprep.mubr.msk.f32.mxu1 %vm7908_vm12, %v7907_v11 }
0x18e1   :  { %7678 = vmatprep.subr.bf16.mxu1 %v7677_v0 }
0x19ae   :  { %v4246_v53 = vpop.f32.mrb[46].mxu1 }
0x19af   :  { %v4326_v54 = vmul.f32 0.35355338, %v4246_v53  ;;  %v7326_v55 = vpop.f32.mrb[47].mxu1 }
0x19b1   :  { %v4328_v56 = vsel %vm619_vm13, %v4326_v54, -inf }
0x19b2   :  { %4329 = vmax.xlane.f32.xlu1 %v4328_v56  ;;  %v4322_v57 = vpop.f32.mrb[48].mxu1 }
0x19b3   :  { %v4327_v58 = vmul.f32 0.35355338, %v4322_v57  ;;  %v7331_v59 = vpop.f32.mrb[49].mxu1 }
0x19b5   :  { %v4331_v60 = vsel %vm619_vm13, %v4327_v58, -inf }
0x19b6   :  { %4332 = vmax.xlane.f32.xlu0 %v4331_v60 }
0x1a3f   :  { %v4330_v61 = vpop.xlane.xlu1 %4329 }
0x1a40   :  { %v4334_v62 = vsub.f32 %v4326_v54, %v4330_v61 }
0x1a42   :  { %v4336_v1 = vmul.f32 1.442695, %v4334_v62 }
0x1a43   :  { %v4333_v49 = vpop.xlane.xlu0 %4332 }
0x1a44   :  { %7845 = vpow2.f32 %v4336_v1  ;;  %v4335_v45 = vsub.f32 %v4327_v58, %v4333_v49 }
0x1a46   :  { %v4338_v3 = vmul.f32 1.442695, %v4335_v45 }
0x1a48   :  { %7847 = vpow2.f32 %v4338_v3 }
0x1a4e   :  { %v7846_v6 = vpop.eup %7845 }
0x1a4f   :  { %v4340_v8 = vsel %vm619_vm13, %v7846_v6, 0.0 }
0x1a50   :  { %4341 = vadd.xlane.f32.xlu1 %v4340_v8 }
0x1a52   :  { %v7848_v44 = vpop.eup %7847 }
0x1a53   :  { %v4343_v48 = vsel %vm619_vm13, %v7848_v44, 0.0 }
0x1a54   :  { %4344 = vadd.xlane.f32.xlu0 %v4343_v48 }
0x1add   :  { %v4342_v9 = vpop.xlane.xlu1 %4341 }
0x1ade   :  { %7849 = vrcp.f32 %v4342_v9  ;;  %v6647_v9 = vld [vmem:[%s8952_s3 + $0xe8] sm:$0xff] }
0x1ae1   :  { %v4345_v63 = vpop.xlane.xlu0 %4344 }
0x1ae2   :  { %7851 = vrcp.f32 %v4345_v63 }
0x1ae8   :  { %v7850_v2 = vpop.eup %7849 }
0x1ae9   :  { %v4348_v10 = vmul.f32 %v7850_v2, %v7846_v6  ;;  %v6643_v2 = vld [vmem:[%s8954_s5 + $0x30] sm:$0xff] }
0x1aeb   :  { %7335 = vmatmul.mubr.msk.f32.vlgmr.msra.gmra.mrb[36].mxu0 %vm619_vm13, %v4348_v10 }
0x1aec   :  { %v7852_v13 = vpop.eup %7851  ;;  %7343 = vmatpush3.msra.mxu0 %v6608_v21  ;;  %v6664_v21 = vld [vmem:[%s8952_s3 + $0x2f0] sm:$0xff] }
0x1aed   :  { %v4349_v14 = vmul.f32 %v7852_v13, %v7848_v44  ;;  %7347 = vmatprep.subr.mxu0 %v6577_v23  ;;  %v6649_v13 = vld [vmem:[%s8952_s3 + $0xf8] sm:$0xff] }
0x1aee   :  { %v7705_v17 = vpack.c.bf16 %v6649_v13, %v6648_v12  ;;  %v6676_v13 = vld [vmem:[%s8954_s5 + $0x38] sm:$0xff] }
0x1aef   :  { %7340 = vmatmul.mubr.msk.f32.vlgmr.msra.gmra.mrb[50].mxu1 %vm619_vm13, %v4349_v14 }
0x1af0   :  { %7680 = vmatpush3.bf16.msra.mxu1 %v7677_v0  ;;  %7360 = vmatprep.mubr.msk.f32.mxu1 %vm361_vm11, %v8537_v51  ;;  %v6646_v0 = vld [vmem:[%s8952_s3 + $0xe0] sm:$0xff] }
0x1af1   :  { %7682 = vmatprep.subr.bf16.mxu1 %v7681_v15  ;;  %v7701_v63 = vpack.c.bf16 %v6647_v9, %v6646_v0 }
0x1af4   :  { %7684 = vmatpush3.bf16.msra.mxu1 %v7681_v15 }
0x1af5   :  { %7694 = vmatprep.subr.bf16.mxu1 %v7693_v46 }
0x1af7   :  { %7361 = vmatmul.mubr.msk.f32.vlgmr.msra.gmra.mrb[52].mxu1 %vm361_vm11, %v8539_v29 }
0x1af8   :  { %7696 = vmatpush3.bf16.msra.mxu1 %v7693_v46  ;;  %7382 = vmatprep.mubr.msk.f32.mxu1 %vm361_vm11, %v8537_v51 }
0x1af9   :  { %7698 = vmatprep.subr.bf16.mxu1 %v7697_v20 }
0x1afc   :  { %7700 = vmatpush3.bf16.msra.mxu1 %v7697_v20  ;;  %v7717_v20 = vpack.c.bf16 %v6663_v19, %v6662_v18 }
0x1afd   :  { %7390 = vmatprep.subr.mxu1 %v7907_v11 }
0x1aff   :  { %7383 = vmatmul.mubr.msk.f32.vlgmr.msra.gmra.mrb[54].mxu1 %vm361_vm11, %v8539_v29 }
0x1b00   :  { %7392 = vmatprep.mubr.msk.f32.mxu1 %vm7908_vm12, %v7907_v11 }
0x1bbe   :  { %v4419_v24 = vpop.f32.mrb[36].mxu0 }
0x1bbf   :  { %v7336_v4 = vpop.f32.mrb[37].mxu0  ;;  %7344 = vmatprep.mubr.msk.f32.mxu0 %vm619_vm13, %v4419_v24 }
0x1bc0   :  { %v7709_v4 = vpack.c.bf16 %v6655_v25, %v6654_v22 }
0x1bc2   :  { %v4492_v30 = vpop.f32.mrb[50].mxu1 }
0x1bc3   :  { %v7341_v31 = vpop.f32.mrb[51].mxu1  ;;  %7345 = vmatmul.mubr.msk.f32.vlgmr.msra.gmra.mrb[38].mxu0 %vm619_vm13, %v4492_v30  ;;  %v6657_v30 = vld [vmem:[%s8952_s3 + $0x1f8] sm:$0xff] }
0x1bc4   :  { %7348 = vmatpush3.msra.mxu0 %v6577_v23  ;;  %7349 = vmatprep.mubr.msk.f32.mxu0 %vm619_vm13, %v8637_v26  ;;  %v6665_v23 = vld [vmem:[%s8952_s3 + $0x2f8] sm:$0xff] }
0x1bc5   :  { %7686 = vmatprep.subr.bf16.mxu0 %v7685_v27  ;;  %v7721_v24 = vpack.c.bf16 %v6665_v23, %v6664_v21 }
0x1bca   :  { %v7362_v35 = vpop.f32.mrb[52].mxu1 }
0x1bcb   :  { %v4739_v36 = vpop.f32.mrb[53].mxu1  ;;  %7350 = vmatmul.mubr.msk.f32.vlgmr.msra.gmra.mrb[38].mxu0 %vm619_vm13, %v8639_v28  ;;  %v6626_v28 = vld [vmem:[%s8953_s4 + $0xe] ss:$0 sm:$0xff]  ;;  %v4745_v50 = vadd.f32 %v7362_v35, %v6618_v40 }
0x1bcc   :  { %7688 = vmatpush3.bf16.msra.mxu0 %v7685_v27  ;;  %7371 = vmatprep.mubr.msk.f32.mxu0 %vm361_vm11, %v8537_v51  ;;  %v4740_v52 = vadd.f32 %v6618_v40, %v4739_v36  ;;  %v6656_v27 = vld [vmem:[%s8952_s3 + $0x1f0] sm:$0xff] }
0x1bcd   :  { %7690 = vmatprep.subr.bf16.mxu0 %v7689_v34 }
0x1bd0   :  { %7692 = vmatpush3.bf16.msra.mxu0 %v7689_v34  ;;  %v7713_v34 = vpack.c.bf16 %v6657_v30, %v6656_v27 }
0x1bd1   :  { %7385 = vmatprep.subr.mxu0 %v7907_v11 }
0x1bd2   :  { %v7384_v26 = vpop.f32.mrb[54].mxu1 }
0x1bd3   :  { %7372 = vmatmul.mubr.msk.f32.vlgmr.msra.gmra.mrb[40].mxu0 %vm361_vm11, %v8539_v29  ;;  %v4915_v38 = vpop.f32.mrb[55].mxu1  ;;  %v4921_v53 = vadd.f32 %v7384_v26, %v6634_v43 }
0x1bd4   :  { %7387 = vmatprep.mubr.msk.f32.mxu0 %vm7908_vm12, %v7907_v11  ;;  %v4916_v54 = vadd.f32 %v6634_v43, %v4915_v38  ;;  %v6667_v38 = vld [vmem:[%s8953_s4 + $0x17] ss:$0 sm:$0xff] }
0x1ca6   :  { %v7373_v39 = vpop.f32.mrb[40].mxu0 }
0x1ca7   :  { %v4833_v41 = vadd.f32 %v7373_v39, %v6626_v28  ;;  %v4827_v42 = vpop.f32.mrb[41].mxu0 }
0x1ca8   :  { %v4828_v47 = vadd.f32 %v6626_v28, %v4827_v42  ;;  %v6659_v42 = vld [vmem:[%s8953_s4 + $0xf] ss:$0 sm:$0xff] }
0x1ca9   :  { %7391 = vmatpush3.xpose.msk.msra.mxu1 %vm619_vm13, %v4833_v41 }
0x1caa   :  { %7386 = vmatpush3.xpose.msk.msra.mxu0 %vm619_vm13, %v4828_v47  ;;  %7400 = vmatprep.subr.mxu1 %v7907_v11 }
0x1cab   :  { %7395 = vmatprep.subr.mxu0 %v7907_v11 }
0x1cac   :  { %7393 = vmatmul.mubr.msk.f32.vlgmr.msra.gmra.mrb[56].mxu1 %vm619_vm13, %v4745_v50  ;;  %v6651_v50 = vld [vmem:[%s8953_s4 + $0x7] ss:$0 sm:$0xff] }
0x1cad   :  { %7388 = vmatmul.mubr.msk.f32.vlgmr.msra.gmra.mrb[42].mxu0 %vm619_vm13, %v4740_v52  ;;  %7401 = vmatpush3.msra.mxu1 %v4921_v53 }
0x1cae   :  { %7396 = vmatpush3.msra.mxu0 %v4916_v54  ;;  %7402 = vmatprep.mubr.msk.f32.mxu1 %vm7908_vm12, %v7907_v11 }
0x1caf   :  { %7397 = vmatprep.mubr.msk.f32.mxu0 %vm7908_vm12, %v7907_v11  ;;  %7702 = vmatprep.subr.bf16.mxu1 %v7701_v63 }
0x1cb0   :  { %7405 = vmatprep.subr.mxu0 %v6643_v2 }
0x1d7f   :  { %v5072_v55 = vpop.f32.mrb[56].mxu1 }
0x1d80   :  { %v5077_v56 = vmul.f32 0.35355338, %v5072_v55  ;;  %v4996_v57 = vpop.f32.mrb[42].mxu0  ;;  %v7394_v58 = vpop.f32.mrb[57].mxu1 }
0x1d81   :  { %v5076_v59 = vmul.f32 0.35355338, %v4996_v57  ;;  %v7389_v60 = vpop.f32.mrb[43].mxu0 }
0x1d82   :  { %v5081_v61 = vsel %vm619_vm13, %v5077_v56, -inf }
0x1d83   :  { %5082 = vmax.xlane.f32.xlu0 %v5081_v61  ;;  %v5078_v62 = vsel %vm619_vm13, %v5076_v59, -inf }
0x1d84   :  { %5079 = vmax.xlane.f32.xlu1 %v5078_v62 }
0x1e10   :  { %v5083_v1 = vpop.xlane.xlu0 %5082 }
0x1e11   :  { %v5085_v49 = vsub.f32 %v5077_v56, %v5083_v1  ;;  %v5080_v45 = vpop.xlane.xlu1 %5079 }
0x1e12   :  { %v5084_v3 = vsub.f32 %v5076_v59, %v5080_v45 }
0x1e13   :  { %v5088_v6 = vmul.f32 1.442695, %v5085_v49 }
0x1e14   :  { %v5086_v8 = vmul.f32 1.442695, %v5084_v3 }
0x1e15   :  { %7853 = vpow2.f32 %v5088_v6 }
0x1e16   :  { %7855 = vpow2.f32 %v5086_v8 }
0x1e1f   :  { %v7854_v44 = vpop.eup %7853 }
0x1e20   :  { %v7856_v48 = vpop.eup %7855  ;;  %v5093_v7 = vsel %vm619_vm13, %v7854_v44, 0.0 }
0x1e21   :  { %5094 = vadd.xlane.f32.xlu0 %v5093_v7  ;;  %v5090_v37 = vsel %vm619_vm13, %v7856_v48, 0.0 }
0x1e22   :  { %5091 = vadd.xlane.f32.xlu1 %v5090_v37 }
0x1eae   :  { %v5095_v10 = vpop.xlane.xlu0 %5094 }
0x1eaf   :  { %7857 = vrcp.f32 %v5095_v10  ;;  %v5092_v5 = vpop.xlane.xlu1 %5091 }
0x1eb0   :  { %7859 = vrcp.f32 %v5092_v5 }
0x1eb9   :  { %v7858_v14 = vpop.eup %7857 }
0x1eba   :  { %v7860_v15 = vpop.eup %7859  ;;  %v5099_v16 = vmul.f32 %v7858_v14, %v7854_v44 }
0x1ebb   :  { %v5098_v46 = vmul.f32 %v7860_v15, %v7856_v48 }
0x1ebc   :  { %7403 = vmatmul.mubr.msk.f32.vlgmr.msra.gmra.mrb[58].mxu1 %vm619_vm13, %v5099_v16 }
0x1ebd   :  { %7704 = vmatpush3.bf16.msra.mxu1 %v7701_v63  ;;  %7398 = vmatmul.mubr.msk.f32.vlgmr.msra.gmra.mrb[44].mxu0 %vm619_vm13, %v5098_v46  ;;  %v6679_v46 = vld [vmem:[%s8951_s2 + $0xb] ss:$0 sm:$0xff] }
0x1ebe   :  { %7418 = vmatprep.mubr.msk.f32.mxu1 %vm361_vm11, %v8537_v51  ;;  %7706 = vmatprep.subr.bf16.mxu1 %v7705_v17 }
0x1ebf   :  { %7406 = vmatpush3.msra.mxu0 %v6643_v2 }
0x1ec0   :  { %7710 = vmatprep.subr.bf16.mxu0 %v7709_v4 }
0x1ec1   :  { %7708 = vmatpush3.bf16.msra.mxu1 %v7705_v17 }
0x1ec2   :  { %7718 = vmatprep.subr.bf16.mxu1 %v7717_v20 }
0x1ec4   :  { %7419 = vmatmul.mubr.msk.f32.vlgmr.msra.gmra.mrb[60].mxu1 %vm361_vm11, %v8539_v29 }
0x1ec5   :  { %7720 = vmatpush3.bf16.msra.mxu1 %v7717_v20  ;;  %7440 = vmatprep.mubr.msk.f32.mxu1 %vm361_vm11, %v8537_v51 }
0x1ec6   :  { %7722 = vmatprep.subr.bf16.mxu1 %v7721_v24 }
0x1ec9   :  { %7724 = vmatpush3.bf16.msra.mxu1 %v7721_v24 }
0x1eca   :  { %7453 = vmatprep.subr.mxu1 %v7907_v11 }
0x1ecc   :  { %7441 = vmatmul.mubr.msk.f32.vlgmr.msra.gmra.mrb[62].mxu1 %vm361_vm11, %v8539_v29 }
0x1ecd   :  { %7455 = vmatprep.mubr.msk.f32.mxu1 %vm7908_vm12, %v7907_v11 }
0x1f8f   :  { %v5242_v31 = vpop.f32.mrb[58].mxu1 }
0x1f90   :  { %v5169_v32 = vpop.f32.mrb[44].mxu0  ;;  %v7404_v33 = vpop.f32.mrb[59].mxu1 }
0x1f91   :  { %v7399_v35 = vpop.f32.mrb[45].mxu0  ;;  %7407 = vmatprep.mubr.msk.f32.mxu0 %vm619_vm13, %v5169_v32 }
0x1f92   :  { %7408 = vmatmul.mubr.msk.f32.vlgmr.msra.gmra.mrb[38].mxu0 %vm619_vm13, %v5242_v31 }
0x1f93   :  { %7712 = vmatpush3.bf16.msra.mxu0 %v7709_v4  ;;  %7429 = vmatprep.mubr.msk.f32.mxu0 %vm361_vm11, %v8537_v51 }
0x1f94   :  { %7714 = vmatprep.subr.bf16.mxu0 %v7713_v34 }
0x1f97   :  { %v7420_v36 = vpop.f32.mrb[60].mxu1  ;;  %7716 = vmatpush3.bf16.msra.mxu0 %v7713_v34 }
0x1f98   :  { %v5410_v26 = vpop.f32.mrb[61].mxu1  ;;  %7443 = vmatprep.subr.mxu0 %v7907_v11  ;;  %v5416_v55 = vadd.f32 %v7420_v36, %v6651_v50 }
0x1f99   :  { %v5411_v53 = vadd.f32 %v6651_v50, %v5410_v26  ;;  %v6683_v26 = vld [vmem:[%s8955_s6 + $0x28] sm:$0xff]  ;;  %v6693_v50 = vld [vmem:[%s8957_s8 + $0x58] sm:$0xff] }
0x1f9a   :  { %7430 = vmatmul.mubr.msk.f32.vlgmr.msra.gmra.mrb[46].mxu0 %vm361_vm11, %v8539_v29 }
0x1f9b   :  { %7445 = vmatprep.mubr.msk.f32.mxu0 %vm7908_vm12, %v7907_v11 }
0x1f9f   :  { %v7442_v28 = vpop.f32.mrb[62].mxu1 }
0x1fa0   :  { %v5592_v39 = vadd.f32 %v7442_v28, %v6667_v38  ;;  %v5586_v40 = vpop.f32.mrb[63].mxu1  ;;  %v6684_v28 = vld [vmem:[%s8955_s6 + $0x30] sm:$0xff] }
0x1fa1   :  { %v5587_v41 = vadd.f32 %v6667_v38, %v5586_v40 }
0x1fa3   :  { %7454 = vmatpush3.msra.mxu1 %v5587_v41  ;;  %v6690_v41 = vld [vmem:[%s8957_s8 + $0x40] sm:$0xff] }
0x206d   :  { %v7431_v43 = vpop.f32.mrb[46].mxu0 }
0x206e   :  { %v5498_v47 = vpop.f32.mrb[47].mxu0  ;;  %v5504_v54 = vadd.f32 %v7431_v43, %v6659_v42  ;;  %v6692_v43 = vld [vmem:[%s8957_s8 + $0x50] sm:$0xff] }
0x206f   :  { %v5499_v52 = vadd.f32 %v6659_v42, %v5498_v47  ;;  %v6691_v42 = vld [vmem:[%s8957_s8 + $0x48] sm:$0xff] }
0x2070   :  { %v7733_v47 = vpack.c.bf16 %v6691_v42, %v6690_v41 }
0x2071   :  { %7444 = vmatpush3.xpose.msk.msra.mxu0 %vm619_vm13, %v5499_v52  ;;  %v7737_v52 = vpack.c.bf16 %v6693_v50, %v6692_v43  ;;  %v6701_v50 = vld [vmem:[%s8951_s2 + $0xf] ss:$0 sm:$0xff] }
0x2072   :  { %7448 = vmatprep.subr.mxu0 %v7907_v11 }
0x2074   :  { %7446 = vmatmul.mubr.msk.f32.vlgmr.msra.gmra.mrb[48].mxu0 %vm619_vm13, %v5411_v53  ;;  %v6694_v53 = vld [vmem:[%s8957_s8 + $0x60] sm:$0xff] }
0x2075   :  { %7449 = vmatpush3.xpose.msk.msra.mxu0 %vm619_vm13, %v5504_v54  ;;  %7450 = vmatprep.mubr.msk.f32.mxu0 %vm7908_vm12, %v7907_v11  ;;  %v6695_v54 = vld [vmem:[%s8957_s8 + $0x68] sm:$0xff] }
0x2076   :  { %7458 = vmatprep.subr.mxu0 %v7907_v11 }
0x2078   :  { %7451 = vmatmul.mubr.msk.f32.vlgmr.msra.gmra.mrb[50].mxu0 %vm619_vm13, %v5416_v55  ;;  %v7741_v55 = vpack.c.bf16 %v6695_v54, %v6694_v53  ;;  %v6702_v54 = vld [vmem:[%s8951_s2 + $0x10] ss:$0 sm:$0xff] }
0x2079   :  { %7459 = vmatpush3.msra.mxu0 %v5592_v39  ;;  %7460 = vmatprep.mubr.msk.f32.mxu0 %vm7908_vm12, %v7907_v11  ;;  %v6685_v39 = vld [vmem:[%s8955_s6 + $0x38] sm:$0xff] }
0x207a   :  { %7463 = vmatprep.subr.mxu0 %v6676_v13  ;;  %v7729_v40 = vpack.c.bf16 %v6685_v39, %v6684_v28 }
0x2147   :  { %v5667_v56 = vpop.f32.mrb[48].mxu0 }
0x2148   :  { %v5747_v57 = vmul.f32 0.35355338, %v5667_v56  ;;  %v7447_v58 = vpop.f32.mrb[49].mxu0 }
0x214a   :  { %v5749_v59 = vsel %vm619_vm13, %v5747_v57, -inf }
0x214b   :  { %5750 = vmax.xlane.f32.xlu1 %v5749_v59  ;;  %v5743_v60 = vpop.f32.mrb[50].mxu0 }
0x214c   :  { %v5748_v61 = vmul.f32 0.35355338, %v5743_v60  ;;  %v7452_v62 = vpop.f32.mrb[51].mxu0 }
0x214e   :  { %v5752_v1 = vsel %vm619_vm13, %v5748_v61, -inf }
0x214f   :  { %5753 = vmax.xlane.f32.xlu0 %v5752_v1  ;;  %v6680_v1 = vld [vmem:[%s8951_s2 + $0xc] ss:$0 sm:$0xff] }
0x21d8   :  { %v5751_v49 = vpop.xlane.xlu1 %5750 }
0x21d9   :  { %v5755_v45 = vsub.f32 %v5747_v57, %v5751_v49 }
0x21db   :  { %v5757_v3 = vmul.f32 1.442695, %v5755_v45 }
0x21dc   :  { %v5754_v6 = vpop.xlane.xlu0 %5753 }
0x21dd   :  { %7861 = vpow2.f32 %v5757_v3  ;;  %v5756_v8 = vsub.f32 %v5748_v61, %v5754_v6  ;;  %v6681_v6 = vld [vmem:[%s8951_s2 + $0xd] ss:$0 sm:$0xff] }
0x21df   :  { %v5759_v44 = vmul.f32 1.442695, %v5756_v8 }
0x21e1   :  { %7863 = vpow2.f32 %v5759_v44 }
0x21e7   :  { %v7862_v48 = vpop.eup %7861 }
0x21e8   :  { %v5761_v7 = vsel %vm619_vm13, %v7862_v48, 0.0 }
0x21e9   :  { %5762 = vadd.xlane.f32.xlu1 %v5761_v7 }
0x21eb   :  { %v7864_v37 = vpop.eup %7863 }
0x21ec   :  { %v5764_v0 = vsel %vm619_vm13, %v7864_v37, 0.0 }
0x21ed   :  { %5765 = vadd.xlane.f32.xlu0 %v5764_v0  ;;  %v6697_v0 = vld [vmem:[%s8957_s8 + $0x78] sm:$0xff] }
0x2276   :  { %v5763_v9 = vpop.xlane.xlu1 %5762 }
0x2277   :  { %7865 = vrcp.f32 %v5763_v9 }
0x227a   :  { %v5766_v63 = vpop.xlane.xlu0 %5765 }
0x227b   :  { %7867 = vrcp.f32 %v5766_v63  ;;  %v6687_v63 = vld [vmem:[%s8956_s7 + $0x1] ss:$0 sm:$0xff] }
0x2281   :  { %v7866_v2 = vpop.eup %7865 }
0x2282   :  { %v5769_v10 = vmul.f32 %v7866_v2, %v7862_v48 }
0x2284   :  { %7456 = vmatmul.mubr.msk.f32.vlgmr.msra.gmra.mrb[64].mxu1 %vm619_vm13, %v5769_v10 }
0x2285   :  { %v7868_v5 = vpop.eup %7867 }
0x2286   :  { %v5770_v12 = vmul.f32 %v7868_v5, %v7864_v37  ;;  %v6696_v37 = vld [vmem:[%s8957_s8 + $0x70] sm:$0xff] }
0x2287   :  { %v7745_v9 = vpack.c.bf16 %v6697_v0, %v6696_v37 }
0x2288   :  { %7461 = vmatmul.mubr.msk.f32.vlgmr.msra.gmra.mrb[52].mxu0 %vm619_vm13, %v5770_v12 }
0x2289   :  { %7464 = vmatpush3.msra.mxu0 %v6676_v13 }
0x228a   :  { %7734 = vmatprep.subr.bf16.mxu0 %v7733_v47 }
0x2357   :  { %v5840_v14 = vpop.f32.mrb[64].mxu1 }
0x2358   :  { %v7457_v15 = vpop.f32.mrb[65].mxu1  ;;  %7465 = vmatprep.mubr.msk.f32.mxu0 %vm619_vm13, %v5840_v14  ;;  %v6698_v14 = vld [vmem:[%s8951_s2 + $0xe] ss:$0 sm:$0xff] }
0x235b   :  { %v5913_v16 = vpop.f32.mrb[52].mxu0 }
0x235c   :  { %v7462_v17 = vpop.f32.mrb[53].mxu0  ;;  %7466 = vmatmul.mubr.msk.f32.vlgmr.msra.gmra.mrb[38].mxu0 %vm619_vm13, %v5913_v16 }
0x235d   :  { %7736 = vmatpush3.bf16.msra.mxu0 %v7733_v47 }
0x235e   :  { %7738 = vmatprep.subr.bf16.mxu0 %v7737_v52 }
0x2361   :  { %7740 = vmatpush3.bf16.msra.mxu0 %v7737_v52 }
0x2362   :  { %7742 = vmatprep.subr.bf16.mxu0 %v7741_v55 }
0x2365   :  { %7744 = vmatpush3.bf16.msra.mxu0 %v7741_v55 }
0x2366   :  { %7746 = vmatprep.subr.bf16.mxu0 %v7745_v9 }
0x2369   :  { %7748 = vmatpush3.bf16.msra.mxu0 %v7745_v9 }
0x242f   :  { %v7467_v18 = vpop.f32.mrb[38].mxu0 }
0x2430   :  { %v6007_v19 = vadd.f32 %v7467_v18, %v6679_v46  ;;  %v5991_v20 = vpop.f32.mrb[39].mxu0 }
0x2431   :  { %v6006_v21 = vadd.f32 %v6679_v46, %v5991_v20 }
0x2432   :  { %v6009_v23 = vadd.f32 %v6007_v19, %v8539_v29 }
0x2433   :  { %v6008_v24 = vadd.f32 %v6006_v21, %v8537_v51  ;;  %v6682_v51 = vld [vmem:[%s8955_s6 + $0x20] sm:$0xff] }
0x2434   :  { %v6013_v22 = vsel %vm361_vm11, %v6009_v23, 0.0  ;;  %v7725_v38 = vpack.c.bf16 %v6683_v26, %v6682_v51  ;;  %v6297_v26 = vld [vmem:[%s8958_s9 + $0x18] sm:$0xff] }
0x2435   :  { %6014 = vadd.xlane.f32.xlu0 %v6013_v22  ;;  %v6010_v25 = vsel %vm361_vm11, %v6008_v24, 0.0 }
0x2436   :  { %6011 = vadd.xlane.f32.xlu1 %v6010_v25  ;;  %7726 = vmatprep.subr.bf16.mxu1 %v7725_v38 }
0x2437   :  { %7728 = vmatpush3.bf16.msra.mxu1 %v7725_v38 }
0x2438   :  { %7730 = vmatprep.subr.bf16.mxu1 %v7729_v40 }
0x243b   :  { %7732 = vmatpush3.bf16.msra.mxu1 %v7729_v40 }
0x24c2   :  { %v6015_v4 = vpop.xlane.xlu0 %6014 }
0x24c3   :  { %v6017_v27 = vmul.f32 0.03125, %v6015_v4  ;;  %v6012_v30 = vpop.xlane.xlu1 %6011 }
0x24c4   :  { %v6016_v31 = vmul.f32 0.03125, %v6012_v30 }
0x24c5   :  { %v6019_v32 = vsub.f32 %v6009_v23, %v6017_v27 }
0x24c6   :  { %v6018_v33 = vsub.f32 %v6008_v24, %v6016_v31 }
0x24c7   :  { %v6021_v34 = vmul.f32 %v6019_v32, %v6019_v32 }
0x24c8   :  { %v6020_v35 = vmul.f32 %v6018_v33, %v6018_v33 }
0x24c9   :  { %v6025_v36 = vsel %vm361_vm11, %v6021_v34, 0.0  ;;  %v6294_v34 = vld [vmem:[%s8958_s9] sm:$0xff] }
0x24ca   :  { %6026 = vadd.xlane.f32.xlu0 %v6025_v36  ;;  %v6022_v29 = vsel %vm361_vm11, %v6020_v35, 0.0  ;;  %v6295_v35 = vld [vmem:[%s8958_s9 + $0x8] sm:$0xff]  ;;  %v6296_v36 = vld [vmem:[%s8958_s9 + $0x10] sm:$0xff] }
0x24cb   :  { %6023 = vadd.xlane.f32.xlu1 %v6022_v29  ;;  %v7909_v29 = vmov 0.0|0.0   ;;  %v7750_v51 = vpack.c.bf16 %v6295_v35, %v6294_v34  ;;  %v7753_v38 = vpack.c.bf16 %v6297_v26, %v6296_v36 }
0x24cc   :  { %7749 = vmatprep.subr.bf16.mxu1 %v7909_v29 }
0x2557   :  { %v6027_v56 = vpop.xlane.xlu0 %6026 }
0x2558   :  { %v6029_v57 = vmul.f32 0.03125, %v6027_v56  ;;  %v6024_v58 = vpop.xlane.xlu1 %6023 }
0x2559   :  { %v6028_v59 = vmul.f32 0.03125, %v6024_v58 }
0x255a   :  { %v6031_v60 = vadd.f32 1e-05, %v6029_v57 }
0x255b   :  { %v6030_v61 = vadd.f32 1e-05, %v6028_v59 }
0x255c   :  { %7869 = vrsqrt.f32 %v6031_v60 }
0x255d   :  { %7871 = vrsqrt.f32 %v6030_v61 }
0x2566   :  { %v7870_v62 = vpop.eup %7869 }
0x2567   :  { %v7872_v49 = vpop.eup %7871  ;;  %v6035_v45 = vmul.f32 %v7870_v62, %v6019_v32 }
0x2568   :  { %v6034_v3 = vmul.f32 %v7872_v49, %v6018_v33 }
0x2569   :  { %v6041_v8 = vmul.f32 %v6680_v1, %v6035_v45 }
0x256a   :  { %v6040_v44 = vmul.f32 %v6680_v1, %v6034_v3 }
0x256b   :  { %v6047_v7 = vadd.f32 %v6681_v6, %v6041_v8 }
0x256c   :  { %v6046_v48 = vadd.f32 %v6681_v6, %v6040_v44 }
0x256e   :  { %7476 = vmatprep.mubr.msk.f32.mxu1 %vm361_vm11, %v6046_v48 }
0x256f   :  { %7477 = vmatmul.mubr.msk.f32.vlgmr.msra.gmra.mrb[66].mxu1 %vm361_vm11, %v6047_v7 }
0x2570   :  { %7506 = vmatprep.mubr.msk.f32.mxu1 %vm7908_vm12, %v7907_v11  ;;  %7751 = vmatpush3.bf16.msra.mxu1 %v7750_v51 }
0x2571   :  { %7752 = vmatprep.subr.bf16.mxu1 %v7909_v29 }
0x2574   :  { %7754 = vmatpush3.bf16.msra.mxu1 %v7753_v38 }
0x2642   :  { %v7478_v2 = vpop.f32.mrb[66].mxu1 }
0x2643   :  { %v6139_v10 = vadd.f32 %v7478_v2, %v6687_v63  ;;  %v6133_v5 = vpop.f32.mrb[67].mxu1 }
0x2644   :  { %v6134_v12 = vadd.f32 %v6687_v63, %v6133_v5 }
0x2645   :  { %v6143_v13 = vmax.f32 %v6139_v10, 0.0  ;;  %v6703_v10 = vld [vmem:[%s8959_s10] ss:$0 sm:$0xff] }
0x2646   :  { %v6142_v11 = vmax.f32 %v6134_v12, 0.0 }
0x2648   :  { %7495 = vmatprep.mubr.msk.f32.mxu0 %vm3188_vm14, %v6142_v11 }
0x2649   :  { %7496 = vmatmul.mubr.msk.f32.vlgmr.msra.gmra.mrb[54].mxu0 %vm3188_vm14, %v6143_v13 }
0x271c   :  { %v7497_v15 = vpop.f32.mrb[54].mxu0 }
0x271d   :  { %v6235_v16 = vadd.f32 %v7497_v15, %v6698_v14  ;;  %v6229_v17 = vpop.f32.mrb[55].mxu0 }
0x271e   :  { %v6230_v46 = vadd.f32 %v6698_v14, %v6229_v17 }
0x271f   :  { %v6239_v18 = vadd.f32 %v6235_v16, %v6047_v7 }
0x2720   :  { %v6238_v19 = vadd.f32 %v6230_v46, %v6046_v48 }
0x2721   :  { %v6243_v20 = vsel %vm361_vm11, %v6239_v18, 0.0 }
0x2722   :  { %6244 = vadd.xlane.f32.xlu0 %v6243_v20  ;;  %v6240_v21 = vsel %vm361_vm11, %v6238_v19, 0.0 }
0x2723   :  { %6241 = vadd.xlane.f32.xlu1 %v6240_v21 }
0x27af   :  { %v6245_v23 = vpop.xlane.xlu0 %6244 }
0x27b0   :  { %v6247_v24 = vmul.f32 0.03125, %v6245_v23  ;;  %v6242_v22 = vpop.xlane.xlu1 %6241 }
0x27b1   :  { %v6246_v25 = vmul.f32 0.03125, %v6242_v22 }
0x27b2   :  { %v6249_v4 = vsub.f32 %v6239_v18, %v6247_v24 }
0x27b3   :  { %v6248_v27 = vsub.f32 %v6238_v19, %v6246_v25 }
0x27b4   :  { %v6251_v30 = vmul.f32 %v6249_v4, %v6249_v4 }
0x27b5   :  { %v6250_v31 = vmul.f32 %v6248_v27, %v6248_v27 }
0x27b6   :  { %v6255_v32 = vsel %vm361_vm11, %v6251_v30, 0.0 }
0x27b7   :  { %6256 = vadd.xlane.f32.xlu0 %v6255_v32  ;;  %v6252_v33 = vsel %vm361_vm11, %v6250_v31, 0.0 }
0x27b8   :  { %6253 = vadd.xlane.f32.xlu1 %v6252_v33 }
0x2844   :  { %v6257_v28 = vpop.xlane.xlu0 %6256 }
0x2845   :  { %v6259_v39 = vmul.f32 0.03125, %v6257_v28  ;;  %v6254_v40 = vpop.xlane.xlu1 %6253 }
0x2846   :  { %v6258_v41 = vmul.f32 0.03125, %v6254_v40 }
0x2847   :  { %v6261_v42 = vadd.f32 1e-05, %v6259_v39 }
0x2848   :  { %v6260_v43 = vadd.f32 1e-05, %v6258_v41 }
0x2849   :  { %7873 = vrsqrt.f32 %v6261_v42 }
0x284a   :  { %7875 = vrsqrt.f32 %v6260_v43 }
0x2853   :  { %v7874_v47 = vpop.eup %7873 }
0x2854   :  { %v7876_v52 = vpop.eup %7875  ;;  %v6265_v53 = vmul.f32 %v7874_v47, %v6249_v4 }
0x2855   :  { %v6264_v55 = vmul.f32 %v7876_v52, %v6248_v27 }
0x2856   :  { %v6271_v56 = vmul.f32 %v6701_v50, %v6265_v53 }
0x2857   :  { %v6270_v57 = vmul.f32 %v6701_v50, %v6264_v55 }
0x2858   :  { %v6277_v58 = vadd.f32 %v6702_v54, %v6271_v56 }
0x2859   :  { %v6276_v59 = vadd.f32 %v6702_v54, %v6270_v57 }
0x285a   :  { %v6285_v60 = vsel %vm361_vm11, %v6277_v58, 0.0 }
0x285b   :  { %v6278_v61 = vsel %vm361_vm11, %v6276_v59, 0.0  ;;  %v6286_v62 = vrot.slane %v6285_v60, 4 }
0x285c   :  { %v6279_v1 = vrot.slane %v6278_v61, 4 }
0x285d   :  { %v6287_v49 = vadd.f32 %v6286_v62, %v6285_v60 }
0x285e   :  { %v6280_v45 = vadd.f32 %v6279_v1, %v6278_v61 }
0x285f   :  { %v6288_v3 = vrot.slane %v6287_v49, 2 }
0x2860   :  { %v6281_v6 = vrot.slane %v6280_v45, 2 }
0x2861   :  { %v6289_v8 = vadd.f32 %v6288_v3, %v6287_v49 }
0x2862   :  { %v6282_v44 = vadd.f32 %v6281_v6, %v6280_v45 }
0x2863   :  { %v6290_v48 = vrot.slane %v6289_v8, 1 }
0x2864   :  { %v6283_v7 = vrot.slane %v6282_v44, 1 }
0x2865   :  { %v6291_v37 = vadd.f32 %v6290_v48, %v6289_v8 }
0x2866   :  { %v6284_v0 = vadd.f32 %v6283_v7, %v6282_v44 }
0x2867   :  { %v6293_v9 = vmul.f32 0.125, %v6291_v37 }
0x2868   :  { %v6292_v63 = vmul.f32 0.125, %v6284_v0 }
0x286a   :  { %v6308_v2 = vsel %vm6307_vm15, %v6293_v9, %v6292_v63 }
0x286b   :  { %7507 = vmatmul.mubr.msk.f32.vlgmr.msra.gmra.mrb[68].mxu1 %vm361_vm11, %v6308_v2 }
0x293e   :  { %v6377_v5 = vpop.f32.mrb[68].mxu1 }
0x293f   :  { %v6378_v12 = vadd.f32 %v6703_v10, %v6377_v5  ;;  %v7508_v11 = vpop.f32.mrb[69].mxu1 }
0x2941   :  { %6382 = vst.msk [vmem:[#allocation2] sm:$0x3] %vm6381_vm0, %v6378_v12 }
0x2942   :  { %7888 = shalt.err (!%p7885_p4)
}
0x2943   :  { %s7889_s27 = scalar_lea.hbm %s8960_s11, 32 }
0x2944   :  { %p7890_p5 = scmp.ne.s32.totalorder %s8960_s11, %s7889_s27  ;;  %p7893_p6 = scmp.lt.u32.totalorder %s7889_s27, %s8960_s11 }
0x2946   :  { %p7895_p7 = pnand %p7893_p6, %p7890_p5 }
0x2948   :  { %7898 = shalt.err (!%p7895_p7)
}
0x2949   :  { %6392 = dma.vmem_to_hbm [thread:$0]  %s6390_s25, 32, %s8960_s11, [#allocation3]  }
0x294a   :  { %7899 = dma.done.wait [#allocation3], 32  }
0x294b   :  { %7900 = vsyncadd [#allocation3], 4294967264 }
0x294c   :  { %6396 = vsyncpa [#allocation3], 1 }

</bundles_post_ra>
